<compile_context>
chip_gen: v5e
topology: v5e:2x2
jax: 0.10.0
libtpu: 0.0.40
codegen_flags: <defaults>
</compile_context>

<pallas_src>
import functools

import numpy as np
import jax
import jax.numpy as jnp
from jax.experimental import pallas as pl
from jax.experimental.pallas import tpu as pltpu


# ---------------------------------------------------------------------------
# Fused branch kernel (one grid step == one modality branch)
# ---------------------------------------------------------------------------
def _fused_branch_kernel(x_ref, w3_ref, w4_ref, bias_ref, p_ref, o_ref,
                         pad_ref, xcat_ref, *, N, H, W, C):
    """Run conv1..conv4 (+ReLU +train-BN) for one branch, fully in VMEM.

    x_ref    : (N*H, W*C)        lane-dense branch input (lane = w*C + c)
    w3_ref   : (3, 3*W*C, W*C)   per-branch block-band weights, 3x3 layers
    w4_ref   : (W*C, W*C)        block-diagonal 1x1 conv weight (shared)
    bias_ref : (3, W*C)          conv-bias rows for layers 1..3
    p_ref    : (W*C, W*C)        BN channel-pooling matrix (P[wC+c, w'C+c'] = [c==c'])
    o_ref    : (N*H, W*C)        lane-dense output
    pad_ref  : (N, H+2, W*C)     VMEM scratch, H-padded activations
    xcat_ref : (N*H, 3*W*C)      VMEM scratch, concatenated h-taps
    """
    WC = W * C
    NH = N * H
    inv_m = 1.0 / (N * H * W)
    eps = 1e-5
    beta = 0.001

    def bn(y):
        # One-pass train-mode BatchNorm on an (NH, WC) slab (gamma=1 folded).
        # y @ P sums each channel over its W lane-groups and re-broadcasts, so
        # the per-channel stats land replicated at every (w, c) lane position.
        yp = jnp.dot(y, p_ref[...], preferred_element_type=jnp.float32)
        y2p = jnp.dot(y * y, p_ref[...], preferred_element_type=jnp.float32)
        mean = jnp.sum(yp, axis=0, keepdims=True) * inv_m        # (1, WC)
        ex2 = jnp.sum(y2p, axis=0, keepdims=True) * inv_m        # (1, WC)
        inv = jax.lax.rsqrt(ex2 - mean * mean + eps)             # biased var
        return y * inv + (beta - mean * inv)

    # Border rows of the H-padded scratch must be zero; interior rows are
    # fully overwritten every layer, so one tiny lane-dense clear per grid
    # step suffices (scratch persists across steps / may be per-core on v7x).
    pad_ref[...] = jnp.zeros_like(pad_ref)

    x = x_ref[...]                                               # (NH, WC)

    # --- three 3x3 conv + bias + ReLU + BN layers ------------------------
    for layer in range(3):
        pad_ref[:, 1:H + 1, :] = x.reshape(N, H, WC)
        # Lane-aligned (multiples of 256) writes of the three h-taps.
        xcat_ref[:, 0:WC] = pad_ref[:, 0:H, :].reshape(NH, WC)          # X[h-1]
        xcat_ref[:, WC:2 * WC] = x                                       # X[h]
        xcat_ref[:, 2 * WC:3 * WC] = pad_ref[:, 2:H + 2, :].reshape(NH, WC)  # X[h+1]

        y = jnp.dot(xcat_ref[...], w3_ref[layer],
                    preferred_element_type=jnp.float32)          # one K=768 dot
        y = jnp.maximum(y + bias_ref[layer:layer + 1, :], 0.0)   # bias + ReLU
        x = bn(y)                                                # train-mode BN

    # --- layer 4: 1x1 conv + BN (no ReLU) --------------------------------
    # The conv4 bias (0.01) is exactly cancelled by the following train-mode
    # BN mean subtraction, so it is intentionally omitted.
    z = jnp.dot(x, w4_ref[...], preferred_element_type=jnp.float32)
    o_ref[...] = bn(z)


def fused_forward_pallas(x_stacked, w3s, w4p, biases, pmat, *, N, H, W, C):
    """x_stacked: (2, N*H, W*C); returns (2, N*H, W*C)."""
    WC = W * C
    NH = N * H
    kernel = functools.partial(_fused_branch_kernel, N=N, H=H, W=W, C=C)
    return pl.pallas_call(
        kernel,
        out_shape=jax.ShapeDtypeStruct((2, NH, WC), jnp.float32),
        grid=(2,),                                               # one step per branch
        in_specs=[
            pl.BlockSpec((None, NH, WC), lambda b: (b, 0, 0)),
            pl.BlockSpec((None, 3, 3 * WC, WC), lambda b: (b, 0, 0, 0)),
            pl.BlockSpec((WC, WC), lambda b: (0, 0)),
            pl.BlockSpec((3, WC), lambda b: (0, 0)),
            pl.BlockSpec((WC, WC), lambda b: (0, 0)),
        ],
        out_specs=pl.BlockSpec((None, NH, WC), lambda b: (b, 0, 0)),
        scratch_shapes=[pltpu.VMEM((N, H + 2, WC), jnp.float32),
                        pltpu.VMEM((NH, 3 * WC), jnp.float32)],
        # TODO(synk): on v7x, switch to pltpu.CORE_PARALLEL (or pl.core_map)
        # if the Mosaic dump shows both branches landing on one TensorCore.
        compiler_params=pltpu.CompilerParams(
            dimension_semantics=("parallel",)),
    )(x_stacked, w3s, w4p, biases, pmat)


# ---------------------------------------------------------------------------
# Parameter init (mirrors the module's __init__) and packing for the kernel
# ---------------------------------------------------------------------------
def _kaiming_uniform_hwio(key, K, cin, cout):
    # torch.nn.init.kaiming_uniform_ with a=0: bound = sqrt(6 / fan_in)
    fan_in = cin * K * K
    bound = (6.0 / fan_in) ** 0.5
    return jax.random.uniform(key, (K, K, cin, cout), jnp.float32, -bound, bound)


def init_params(key, c_img, n_feat, n_final):
    ks = jax.random.split(key, 7)
    return {
        "w1_m1": _kaiming_uniform_hwio(ks[0], 3, c_img, n_feat),
        "w1_m2": _kaiming_uniform_hwio(ks[1], 3, c_img, n_feat),
        "w2_m1": _kaiming_uniform_hwio(ks[2], 3, n_feat, 2 * n_feat),
        "w2_m2": _kaiming_uniform_hwio(ks[3], 3, n_feat, 2 * n_feat),
        "w3_m1": _kaiming_uniform_hwio(ks[4], 3, 2 * n_feat, n_feat),
        "w3_m2": _kaiming_uniform_hwio(ks[5], 3, 2 * n_feat, n_feat),
        "w4":    _kaiming_uniform_hwio(ks[6], 1, n_feat, n_final),
        # conv biases = 0.01, BN gamma = 1, BN beta = 0.001 (handled in packing/kernel)
    }


def _padded_channels(c_img, n_feat, n_final):
    c = max(c_img, n_feat, 2 * n_feat, n_final)
    return ((c + 7) // 8) * 8


def pack_params(p, c_img, n_feat, n_final, *, W):
    """Build lane-dense block-band weights, bias rows and BN pooling matrix."""
    C = _padded_channels(c_img, n_feat, n_final)
    WC = W * C

    def pad_w(w):                                  # (K,K,cin,cout) -> (K,K,C,C)
        cin, cout = w.shape[2], w.shape[3]
        return jnp.pad(w, ((0, 0), (0, 0), (0, C - cin), (0, C - cout)))

    # sel[w_in, w_out, j] = 1  iff  w_in - w_out + 1 == j   (w-tap picker; it
    # also encodes the W-border zero padding for free).
    wi = np.arange(W)[:, None]
    wo = np.arange(W)[None, :]
    sel = np.stack([(wi - wo + 1 == j) for j in range(3)], axis=-1).astype(np.float32)
    sel = jnp.asarray(sel)                         # (W, W, 3)

    def band3(w):                                  # (3,3,C,C) -> (3*WC, WC)
        b = jnp.einsum("pqj,djio->dpiqo", sel, w)  # (3, W, C, W, C)
        return b.reshape(3 * WC, WC)

    def diag1(w):                                  # (1,1,C,C) -> (WC, WC)
        b = jnp.einsum("pq,io->piqo", jnp.eye(W, dtype=jnp.float32), w[0, 0])
        return b.reshape(WC, WC)

    def bias_row(cout):                            # conv bias 0.01 on real channels
        b = jnp.pad(jnp.full((cout,), 0.01, jnp.float32), (0, C - cout))
        return jnp.tile(b, W)                      # (WC,)

    w3s = jnp.stack([
        jnp.stack([band3(pad_w(p["w1_m1"])),
                   band3(pad_w(p["w2_m1"])),
                   band3(pad_w(p["w3_m1"]))]),
        jnp.stack([band3(pad_w(p["w1_m2"])),
                   band3(pad_w(p["w2_m2"])),
                   band3(pad_w(p["w3_m2"]))]),
    ])                                             # (2, 3, 3*WC, WC)
    w4p = diag1(pad_w(p["w4"]))                    # (WC, WC), shared across branches
    biases = jnp.stack([bias_row(n_feat), bias_row(2 * n_feat), bias_row(n_feat)])
    # BN channel-pooling matrix: P[w*C+c, w'*C+c'] = [c == c']
    pmat = jnp.einsum("pq,io->piqo", jnp.ones((W, W), jnp.float32),
                      jnp.eye(C, dtype=jnp.float32)).reshape(WC, WC)
    return w3s, w4p, biases, pmat


# ---------------------------------------------------------------------------
# Forward pass
# ---------------------------------------------------------------------------
@functools.partial(jax.jit, static_argnames=("n_final",))
def forward(x1_nchw, x2_nchw, packed, n_final):
    w3s, w4p, biases, pmat = packed
    N, c_img, H, W = x1_nchw.shape
    WC = w4p.shape[0]
    C = WC // W

    def to_slab(x):                                # NCHW -> lane-dense (N*H, W*C)
        x = jnp.transpose(x, (0, 2, 3, 1))         # NHWC
        x = jnp.pad(x, ((0, 0), (0, 0), (0, 0), (0, C - c_img)))
        return x.reshape(N * H, W * C)

    x_stacked = jnp.stack([to_slab(x1_nchw), to_slab(x2_nchw)])   # (2, NH, WC)
    out = fused_forward_pallas(x_stacked, w3s, w4p, biases, pmat,
                               N=N, H=H, W=W, C=C)
    y = out.reshape(2, N, H, W, C)[..., :n_final]  # drop padded channels
    y = jnp.transpose(y, (0, 1, 4, 2, 3))          # (2, N, n_final, H, W)
    return y[0], y[1]


# ---------------------------------------------------------------------------
# Pure-JAX reference (semantics of the PyTorch module) for a sanity check
# ---------------------------------------------------------------------------
def _reference_forward(x1_nchw, x2_nchw, params):
    def conv(x, w):                                # NHWC activations, HWIO weights
        pad = "SAME" if w.shape[0] == 3 else "VALID"
        y = jax.lax.conv_general_dilated(
            x, w, window_strides=(1, 1), padding=pad,
            dimension_numbers=("NHWC", "HWIO", "NHWC"),
            precision=jax.lax.Precision.HIGHEST)
        return y + 0.01                            # conv bias

    def bn(x):                                     # train-mode BN
        mean = jnp.mean(x, axis=(0, 1, 2), keepdims=True)
        var = jnp.mean(jnp.square(x - mean), axis=(0, 1, 2), keepdims=True)
        return (x - mean) * jax.lax.rsqrt(var + 1e-5) + 0.001

    def branch(x_nchw, mod):
        y = jnp.transpose(x_nchw, (0, 2, 3, 1))
        y = bn(jax.nn.relu(conv(y, params[f"w1_{mod}"])))
        y = bn(jax.nn.relu(conv(y, params[f"w2_{mod}"])))
        y = bn(jax.nn.relu(conv(y, params[f"w3_{mod}"])))
        y = bn(conv(y, params["w4"]))
        return jnp.transpose(y, (0, 3, 1, 2))

    return branch(x1_nchw, "m1"), branch(x2_nchw, "m2")


# ---------------------------------------------------------------------------
if __name__ == "__main__":
    numberOfImageChannels = 4
    nFeaturesIntermediateLayers = 8
    nFeaturesFinalLayer = 3
    N, H, W = 2, 16, 16

    root = jax.random.PRNGKey(0)
    k_params, k_x1, k_x2 = jax.random.split(root, 3)

    params = init_params(k_params, numberOfImageChannels,
                         nFeaturesIntermediateLayers, nFeaturesFinalLayer)
    packed = pack_params(params, numberOfImageChannels,
                         nFeaturesIntermediateLayers, nFeaturesFinalLayer, W=W)

    x1 = jax.random.normal(k_x1, (N, numberOfImageChannels, H, W), jnp.float32)
    x2 = jax.random.normal(k_x2, (N, numberOfImageChannels, H, W), jnp.float32)

    y1, y2 = forward(x1, x2, packed, nFeaturesFinalLayer)
    jax.block_until_ready((y1, y2))

    assert y1.shape == (N, nFeaturesFinalLayer, H, W)
    assert y2.shape == (N, nFeaturesFinalLayer, H, W)
    assert bool(jnp.all(jnp.isfinite(y1))) and bool(jnp.all(jnp.isfinite(y2)))

    # Sanity check against a straightforward XLA reference of the same math.
    r1, r2 = _reference_forward(x1, x2, params)
    assert bool(jnp.allclose(y1, r1, atol=1e-2, rtol=1e-2)), \
        f"branch1 mismatch, max|diff|={float(jnp.max(jnp.abs(y1 - r1)))}"
    assert bool(jnp.allclose(y2, r2, atol=1e-2, rtol=1e-2)), \
        f"branch2 mismatch, max|diff|={float(jnp.max(jnp.abs(y2 - r2)))}"

    print("KERNEL_OK")
</pallas_src>

<mosaic_0001>
module attributes {stable_mosaic.version = 11 : i64} {
  func.func @_fused_branch_kernel(%arg0: i32, %arg1: memref<1x32x256xf32, #tpu.memory_space<vmem>>, %arg2: memref<1x3x768x256xf32, #tpu.memory_space<vmem>>, %arg3: memref<256x256xf32, #tpu.memory_space<vmem>>, %arg4: memref<3x256xf32, #tpu.memory_space<vmem>>, %arg5: memref<256x256xf32, #tpu.memory_space<vmem>>, %arg6: memref<1x32x256xf32, #tpu.memory_space<vmem>>, %arg7: memref<2x18x256xf32, #tpu.memory_space<vmem>>, %arg8: memref<32x768xf32, #tpu.memory_space<vmem>>) attributes {dimension_semantics = [#tpu.dimension_semantics<parallel>], iteration_bounds = array<i64: 2>, scalar_prefetch = 0 : i64, scratch_operands = 2 : i64, tpu.core_type = #tpu.core_type<tc>, window_params = [{transform_indices = @transform_0, window_bounds = array<i64: 1, 32, 256>}, {transform_indices = @transform_1, window_bounds = array<i64: 1, 3, 768, 256>}, {pipeline_mode = #tpu.pipeline_mode<synchronous>, transform_indices = @transform_2, window_bounds = array<i64: 256, 256>}, {pipeline_mode = #tpu.pipeline_mode<synchronous>, transform_indices = @transform_3, window_bounds = array<i64: 3, 256>}, {pipeline_mode = #tpu.pipeline_mode<synchronous>, transform_indices = @transform_4, window_bounds = array<i64: 256, 256>}, {transform_indices = @transform_5, window_bounds = array<i64: 1, 32, 256>}]} {
    %cst = arith.constant 0.000000e+00 : f32
    %0 = vector.broadcast %cst : f32 to vector<2x18x256xf32>
    %c0 = arith.constant 0 : index
    %c0_0 = arith.constant 0 : index
    %c0_1 = arith.constant 0 : index
    %1 = vector.load %arg7[%c0, %c0_0, %c0_1] : memref<2x18x256xf32, #tpu.memory_space<vmem>>, vector<2x18x256xf32>
    tpu.vector_store %arg7[%c0, %c0_0, %c0_1], %0 {strides = array<i32>} : memref<2x18x256xf32, #tpu.memory_space<vmem>>, vector<2x18x256xf32>,
    %c0_2 = arith.constant 0 : index
    %c0_3 = arith.constant 0 : index
    %c0_4 = arith.constant 0 : index
    %2 = vector.load %arg1[%c0_2, %c0_3, %c0_4] : memref<1x32x256xf32, #tpu.memory_space<vmem>>, vector<1x32x256xf32>
    %3 = vector.shape_cast %2 : vector<1x32x256xf32> to vector<32x256xf32>
    %4 = vector.shape_cast %3 : vector<32x256xf32> to vector<2x16x256xf32>
    %c0_5 = arith.constant 0 : index
    %c1 = arith.constant 1 : index
    %c0_6 = arith.constant 0 : index
    %5 = vector.load %arg7[%c0_5, %c1, %c0_6] : memref<2x18x256xf32, #tpu.memory_space<vmem>>, vector<2x16x256xf32>
    tpu.vector_store %arg7[%c0_5, %c1, %c0_6], %4 {strides = array<i32>} : memref<2x18x256xf32, #tpu.memory_space<vmem>>, vector<2x16x256xf32>,
    %c0_7 = arith.constant 0 : index
    %c0_8 = arith.constant 0 : index
    %c0_9 = arith.constant 0 : index
    %6 = vector.load %arg7[%c0_7, %c0_8, %c0_9] : memref<2x18x256xf32, #tpu.memory_space<vmem>>, vector<2x16x256xf32>
    %7 = vector.shape_cast %6 : vector<2x16x256xf32> to vector<32x256xf32>
    %c0_10 = arith.constant 0 : index
    %c0_11 = arith.constant 0 : index
    %8 = vector.load %arg8[%c0_10, %c0_11] : memref<32x768xf32, #tpu.memory_space<vmem>>, vector<32x256xf32>
    tpu.vector_store %arg8[%c0_10, %c0_11], %7 {strides = array<i32>} : memref<32x768xf32, #tpu.memory_space<vmem>>, vector<32x256xf32>,
    %c0_12 = arith.constant 0 : index
    %c256 = arith.constant 256 : index
    %9 = vector.load %arg8[%c0_12, %c256] : memref<32x768xf32, #tpu.memory_space<vmem>>, vector<32x256xf32>
    tpu.vector_store %arg8[%c0_12, %c256], %3 {strides = array<i32>} : memref<32x768xf32, #tpu.memory_space<vmem>>, vector<32x256xf32>,
    %c0_13 = arith.constant 0 : index
    %c2 = arith.constant 2 : index
    %c0_14 = arith.constant 0 : index
    %10 = vector.load %arg7[%c0_13, %c2, %c0_14] : memref<2x18x256xf32, #tpu.memory_space<vmem>>, vector<2x16x256xf32>
    %11 = vector.shape_cast %10 : vector<2x16x256xf32> to vector<32x256xf32>
    %c0_15 = arith.constant 0 : index
    %c512 = arith.constant 512 : index
    %12 = vector.load %arg8[%c0_15, %c512] : memref<32x768xf32, #tpu.memory_space<vmem>>, vector<32x256xf32>
    tpu.vector_store %arg8[%c0_15, %c512], %11 {strides = array<i32>} : memref<32x768xf32, #tpu.memory_space<vmem>>, vector<32x256xf32>,
    %c0_16 = arith.constant 0 : index
    %c0_17 = arith.constant 0 : index
    %13 = vector.load %arg8[%c0_16, %c0_17] : memref<32x768xf32, #tpu.memory_space<vmem>>, vector<32x768xf32>
    %c0_18 = arith.constant 0 : index
    %c0_19 = arith.constant 0 : index
    %c0_20 = arith.constant 0 : index
    %c0_21 = arith.constant 0 : index
    %14 = vector.load %arg2[%c0_18, %c0_19, %c0_20, %c0_21] : memref<1x3x768x256xf32, #tpu.memory_space<vmem>>, vector<1x1x768x256xf32>
    %15 = vector.shape_cast %14 : vector<1x1x768x256xf32> to vector<768x256xf32>
    %cst_22 = arith.constant dense<0.000000e+00> : vector<32x256xf32>
    %16 = tpu.matmul %13, %15, %cst_22 {dimension_numbers = #tpu.dot_dimension_numbers<[1], [0], [0], [1], [0, 0, 1, 1], [], []>} : vector<32x768xf32>, vector<768x256xf32>, vector<32x256xf32> -> vector<32x256xf32>
    %c0_23 = arith.constant 0 : index
    %c0_24 = arith.constant 0 : index
    %17 = vector.load %arg4[%c0_23, %c0_24] : memref<3x256xf32, #tpu.memory_space<vmem>>, vector<1x256xf32>
    %18 = vector.broadcast %17 : vector<1x256xf32> to vector<32x256xf32>
    %19 = arith.addf %16, %18 : vector<32x256xf32>
    %cst_25 = arith.constant 0.000000e+00 : f32
    %20 = vector.broadcast %cst_25 : f32 to vector<32x256xf32>
    %21 = arith.maximumf %19, %20 : vector<32x256xf32>
    %c0_26 = arith.constant 0 : index
    %c0_27 = arith.constant 0 : index
    %22 = vector.load %arg5[%c0_26, %c0_27] : memref<256x256xf32, #tpu.memory_space<vmem>>, vector<256x256xf32>
    %cst_28 = arith.constant dense<0.000000e+00> : vector<32x256xf32>
    %23 = tpu.matmul %21, %22, %cst_28 {dimension_numbers = #tpu.dot_dimension_numbers<[1], [0], [0], [1], [0, 0, 1, 1], [], []>} : vector<32x256xf32>, vector<256x256xf32>, vector<32x256xf32> -> vector<32x256xf32>
    %24 = arith.mulf %21, %21 : vector<32x256xf32>
    %c0_29 = arith.constant 0 : index
    %c0_30 = arith.constant 0 : index
    %25 = vector.load %arg5[%c0_29, %c0_30] : memref<256x256xf32, #tpu.memory_space<vmem>>, vector<256x256xf32>
    %cst_31 = arith.constant dense<0.000000e+00> : vector<32x256xf32>
    %26 = tpu.matmul %24, %25, %cst_31 {dimension_numbers = #tpu.dot_dimension_numbers<[1], [0], [0], [1], [0, 0, 1, 1], [], []>} : vector<32x256xf32>, vector<256x256xf32>, vector<32x256xf32> -> vector<32x256xf32>
    %cst_32 = arith.constant dense<0.000000e+00> : vector<256xf32>
    %27 = vector.multi_reduction <add>, %23, %cst_32 [0] : vector<32x256xf32> to vector<256xf32>
    %28 = vector.shape_cast %27 : vector<256xf32> to vector<1x256xf32>
    %cst_33 = arith.constant 0.001953125 : f32
    %29 = vector.broadcast %cst_33 : f32 to vector<1x256xf32>
    %30 = arith.mulf %28, %29 : vector<1x256xf32>
    %cst_34 = arith.constant dense<0.000000e+00> : vector<256xf32>
    %31 = vector.multi_reduction <add>, %26, %cst_34 [0] : vector<32x256xf32> to vector<256xf32>
    %32 = vector.shape_cast %31 : vector<256xf32> to vector<1x256xf32>
    %cst_35 = arith.constant 0.001953125 : f32
    %33 = vector.broadcast %cst_35 : f32 to vector<1x256xf32>
    %34 = arith.mulf %32, %33 : vector<1x256xf32>
    %35 = arith.mulf %30, %30 : vector<1x256xf32>
    %36 = arith.subf %34, %35 : vector<1x256xf32>
    %cst_36 = arith.constant 9.99999974E-6 : f32
    %37 = vector.broadcast %cst_36 : f32 to vector<1x256xf32>
    %38 = arith.addf %36, %37 : vector<1x256xf32>
    %39 = math.rsqrt %38 : vector<1x256xf32>
    %40 = vector.broadcast %39 : vector<1x256xf32> to vector<32x256xf32>
    %41 = arith.mulf %21, %40 : vector<32x256xf32>
    %42 = arith.mulf %30, %39 : vector<1x256xf32>
    %cst_37 = arith.constant 1.000000e-03 : f32
    %43 = vector.broadcast %cst_37 : f32 to vector<1x256xf32>
    %44 = arith.subf %43, %42 : vector<1x256xf32>
    %45 = vector.broadcast %44 : vector<1x256xf32> to vector<32x256xf32>
    %46 = arith.addf %41, %45 : vector<32x256xf32>
    %47 = vector.shape_cast %46 : vector<32x256xf32> to vector<2x16x256xf32>
    %c0_38 = arith.constant 0 : index
    %c1_39 = arith.constant 1 : index
    %c0_40 = arith.constant 0 : index
    %48 = vector.load %arg7[%c0_38, %c1_39, %c0_40] : memref<2x18x256xf32, #tpu.memory_space<vmem>>, vector<2x16x256xf32>
    tpu.vector_store %arg7[%c0_38, %c1_39, %c0_40], %47 {strides = array<i32>} : memref<2x18x256xf32, #tpu.memory_space<vmem>>, vector<2x16x256xf32>,
    %c0_41 = arith.constant 0 : index
    %c0_42 = arith.constant 0 : index
    %c0_43 = arith.constant 0 : index
    %49 = vector.load %arg7[%c0_41, %c0_42, %c0_43] : memref<2x18x256xf32, #tpu.memory_space<vmem>>, vector<2x16x256xf32>
    %50 = vector.shape_cast %49 : vector<2x16x256xf32> to vector<32x256xf32>
    %c0_44 = arith.constant 0 : index
    %c0_45 = arith.constant 0 : index
    %51 = vector.load %arg8[%c0_44, %c0_45] : memref<32x768xf32, #tpu.memory_space<vmem>>, vector<32x256xf32>
    tpu.vector_store %arg8[%c0_44, %c0_45], %50 {strides = array<i32>} : memref<32x768xf32, #tpu.memory_space<vmem>>, vector<32x256xf32>,
    %c0_46 = arith.constant 0 : index
    %c256_47 = arith.constant 256 : index
    %52 = vector.load %arg8[%c0_46, %c256_47] : memref<32x768xf32, #tpu.memory_space<vmem>>, vector<32x256xf32>
    tpu.vector_store %arg8[%c0_46, %c256_47], %46 {strides = array<i32>} : memref<32x768xf32, #tpu.memory_space<vmem>>, vector<32x256xf32>,
    %c0_48 = arith.constant 0 : index
    %c2_49 = arith.constant 2 : index
    %c0_50 = arith.constant 0 : index
    %53 = vector.load %arg7[%c0_48, %c2_49, %c0_50] : memref<2x18x256xf32, #tpu.memory_space<vmem>>, vector<2x16x256xf32>
    %54 = vector.shape_cast %53 : vector<2x16x256xf32> to vector<32x256xf32>
    %c0_51 = arith.constant 0 : index
    %c512_52 = arith.constant 512 : index
    %55 = vector.load %arg8[%c0_51, %c512_52] : memref<32x768xf32, #tpu.memory_space<vmem>>, vector<32x256xf32>
    tpu.vector_store %arg8[%c0_51, %c512_52], %54 {strides = array<i32>} : memref<32x768xf32, #tpu.memory_space<vmem>>, vector<32x256xf32>,
    %c0_53 = arith.constant 0 : index
    %c0_54 = arith.constant 0 : index
    %56 = vector.load %arg8[%c0_53, %c0_54] : memref<32x768xf32, #tpu.memory_space<vmem>>, vector<32x768xf32>
    %c0_55 = arith.constant 0 : index
    %c1_56 = arith.constant 1 : index
    %c0_57 = arith.constant 0 : index
    %c0_58 = arith.constant 0 : index
    %57 = vector.load %arg2[%c0_55, %c1_56, %c0_57, %c0_58] : memref<1x3x768x256xf32, #tpu.memory_space<vmem>>, vector<1x1x768x256xf32>
    %58 = vector.shape_cast %57 : vector<1x1x768x256xf32> to vector<768x256xf32>
    %cst_59 = arith.constant dense<0.000000e+00> : vector<32x256xf32>
    %59 = tpu.matmul %56, %58, %cst_59 {dimension_numbers = #tpu.dot_dimension_numbers<[1], [0], [0], [1], [0, 0, 1, 1], [], []>} : vector<32x768xf32>, vector<768x256xf32>, vector<32x256xf32> -> vector<32x256xf32>
    %c1_60 = arith.constant 1 : index
    %c0_61 = arith.constant 0 : index
    %60 = vector.load %arg4[%c1_60, %c0_61] : memref<3x256xf32, #tpu.memory_space<vmem>>, vector<1x256xf32>
    %61 = vector.broadcast %60 : vector<1x256xf32> to vector<32x256xf32>
    %62 = arith.addf %59, %61 : vector<32x256xf32>
    %cst_62 = arith.constant 0.000000e+00 : f32
    %63 = vector.broadcast %cst_62 : f32 to vector<32x256xf32>
    %64 = arith.maximumf %62, %63 : vector<32x256xf32>
    %c0_63 = arith.constant 0 : index
    %c0_64 = arith.constant 0 : index
    %65 = vector.load %arg5[%c0_63, %c0_64] : memref<256x256xf32, #tpu.memory_space<vmem>>, vector<256x256xf32>
    %cst_65 = arith.constant dense<0.000000e+00> : vector<32x256xf32>
    %66 = tpu.matmul %64, %65, %cst_65 {dimension_numbers = #tpu.dot_dimension_numbers<[1], [0], [0], [1], [0, 0, 1, 1], [], []>} : vector<32x256xf32>, vector<256x256xf32>, vector<32x256xf32> -> vector<32x256xf32>
    %67 = arith.mulf %64, %64 : vector<32x256xf32>
    %c0_66 = arith.constant 0 : index
    %c0_67 = arith.constant 0 : index
    %68 = vector.load %arg5[%c0_66, %c0_67] : memref<256x256xf32, #tpu.memory_space<vmem>>, vector<256x256xf32>
    %cst_68 = arith.constant dense<0.000000e+00> : vector<32x256xf32>
    %69 = tpu.matmul %67, %68, %cst_68 {dimension_numbers = #tpu.dot_dimension_numbers<[1], [0], [0], [1], [0, 0, 1, 1], [], []>} : vector<32x256xf32>, vector<256x256xf32>, vector<32x256xf32> -> vector<32x256xf32>
    %cst_69 = arith.constant dense<0.000000e+00> : vector<256xf32>
    %70 = vector.multi_reduction <add>, %66, %cst_69 [0] : vector<32x256xf32> to vector<256xf32>
    %71 = vector.shape_cast %70 : vector<256xf32> to vector<1x256xf32>
    %cst_70 = arith.constant 0.001953125 : f32
    %72 = vector.broadcast %cst_70 : f32 to vector<1x256xf32>
    %73 = arith.mulf %71, %72 : vector<1x256xf32>
    %cst_71 = arith.constant dense<0.000000e+00> : vector<256xf32>
    %74 = vector.multi_reduction <add>, %69, %cst_71 [0] : vector<32x256xf32> to vector<256xf32>
    %75 = vector.shape_cast %74 : vector<256xf32> to vector<1x256xf32>
    %cst_72 = arith.constant 0.001953125 : f32
    %76 = vector.broadcast %cst_72 : f32 to vector<1x256xf32>
    %77 = arith.mulf %75, %76 : vector<1x256xf32>
    %78 = arith.mulf %73, %73 : vector<1x256xf32>
    %79 = arith.subf %77, %78 : vector<1x256xf32>
    %cst_73 = arith.constant 9.99999974E-6 : f32
    %80 = vector.broadcast %cst_73 : f32 to vector<1x256xf32>
    %81 = arith.addf %79, %80 : vector<1x256xf32>
    %82 = math.rsqrt %81 : vector<1x256xf32>
    %83 = vector.broadcast %82 : vector<1x256xf32> to vector<32x256xf32>
    %84 = arith.mulf %64, %83 : vector<32x256xf32>
    %85 = arith.mulf %73, %82 : vector<1x256xf32>
    %cst_74 = arith.constant 1.000000e-03 : f32
    %86 = vector.broadcast %cst_74 : f32 to vector<1x256xf32>
    %87 = arith.subf %86, %85 : vector<1x256xf32>
    %88 = vector.broadcast %87 : vector<1x256xf32> to vector<32x256xf32>
    %89 = arith.addf %84, %88 : vector<32x256xf32>
    %90 = vector.shape_cast %89 : vector<32x256xf32> to vector<2x16x256xf32>
    %c0_75 = arith.constant 0 : index
    %c1_76 = arith.constant 1 : index
    %c0_77 = arith.constant 0 : index
    %91 = vector.load %arg7[%c0_75, %c1_76, %c0_77] : memref<2x18x256xf32, #tpu.memory_space<vmem>>, vector<2x16x256xf32>
    tpu.vector_store %arg7[%c0_75, %c1_76, %c0_77], %90 {strides = array<i32>} : memref<2x18x256xf32, #tpu.memory_space<vmem>>, vector<2x16x256xf32>,
    %c0_78 = arith.constant 0 : index
    %c0_79 = arith.constant 0 : index
    %c0_80 = arith.constant 0 : index
    %92 = vector.load %arg7[%c0_78, %c0_79, %c0_80] : memref<2x18x256xf32, #tpu.memory_space<vmem>>, vector<2x16x256xf32>
    %93 = vector.shape_cast %92 : vector<2x16x256xf32> to vector<32x256xf32>
    %c0_81 = arith.constant 0 : index
    %c0_82 = arith.constant 0 : index
    %94 = vector.load %arg8[%c0_81, %c0_82] : memref<32x768xf32, #tpu.memory_space<vmem>>, vector<32x256xf32>
    tpu.vector_store %arg8[%c0_81, %c0_82], %93 {strides = array<i32>} : memref<32x768xf32, #tpu.memory_space<vmem>>, vector<32x256xf32>,
    %c0_83 = arith.constant 0 : index
    %c256_84 = arith.constant 256 : index
    %95 = vector.load %arg8[%c0_83, %c256_84] : memref<32x768xf32, #tpu.memory_space<vmem>>, vector<32x256xf32>
    tpu.vector_store %arg8[%c0_83, %c256_84], %89 {strides = array<i32>} : memref<32x768xf32, #tpu.memory_space<vmem>>, vector<32x256xf32>,
    %c0_85 = arith.constant 0 : index
    %c2_86 = arith.constant 2 : index
    %c0_87 = arith.constant 0 : index
    %96 = vector.load %arg7[%c0_85, %c2_86, %c0_87] : memref<2x18x256xf32, #tpu.memory_space<vmem>>, vector<2x16x256xf32>
    %97 = vector.shape_cast %96 : vector<2x16x256xf32> to vector<32x256xf32>
    %c0_88 = arith.constant 0 : index
    %c512_89 = arith.constant 512 : index
    %98 = vector.load %arg8[%c0_88, %c512_89] : memref<32x768xf32, #tpu.memory_space<vmem>>, vector<32x256xf32>
    tpu.vector_store %arg8[%c0_88, %c512_89], %97 {strides = array<i32>} : memref<32x768xf32, #tpu.memory_space<vmem>>, vector<32x256xf32>,
    %c0_90 = arith.constant 0 : index
    %c0_91 = arith.constant 0 : index
    %99 = vector.load %arg8[%c0_90, %c0_91] : memref<32x768xf32, #tpu.memory_space<vmem>>, vector<32x768xf32>
    %c0_92 = arith.constant 0 : index
    %c2_93 = arith.constant 2 : index
    %c0_94 = arith.constant 0 : index
    %c0_95 = arith.constant 0 : index
    %100 = vector.load %arg2[%c0_92, %c2_93, %c0_94, %c0_95] : memref<1x3x768x256xf32, #tpu.memory_space<vmem>>, vector<1x1x768x256xf32>
    %101 = vector.shape_cast %100 : vector<1x1x768x256xf32> to vector<768x256xf32>
    %cst_96 = arith.constant dense<0.000000e+00> : vector<32x256xf32>
    %102 = tpu.matmul %99, %101, %cst_96 {dimension_numbers = #tpu.dot_dimension_numbers<[1], [0], [0], [1], [0, 0, 1, 1], [], []>} : vector<32x768xf32>, vector<768x256xf32>, vector<32x256xf32> -> vector<32x256xf32>
    %c2_97 = arith.constant 2 : index
    %c0_98 = arith.constant 0 : index
    %103 = vector.load %arg4[%c2_97, %c0_98] : memref<3x256xf32, #tpu.memory_space<vmem>>, vector<1x256xf32>
    %104 = vector.broadcast %103 : vector<1x256xf32> to vector<32x256xf32>
    %105 = arith.addf %102, %104 : vector<32x256xf32>
    %cst_99 = arith.constant 0.000000e+00 : f32
    %106 = vector.broadcast %cst_99 : f32 to vector<32x256xf32>
    %107 = arith.maximumf %105, %106 : vector<32x256xf32>
    %c0_100 = arith.constant 0 : index
    %c0_101 = arith.constant 0 : index
    %108 = vector.load %arg5[%c0_100, %c0_101] : memref<256x256xf32, #tpu.memory_space<vmem>>, vector<256x256xf32>
    %cst_102 = arith.constant dense<0.000000e+00> : vector<32x256xf32>
    %109 = tpu.matmul %107, %108, %cst_102 {dimension_numbers = #tpu.dot_dimension_numbers<[1], [0], [0], [1], [0, 0, 1, 1], [], []>} : vector<32x256xf32>, vector<256x256xf32>, vector<32x256xf32> -> vector<32x256xf32>
    %110 = arith.mulf %107, %107 : vector<32x256xf32>
    %c0_103 = arith.constant 0 : index
    %c0_104 = arith.constant 0 : index
    %111 = vector.load %arg5[%c0_103, %c0_104] : memref<256x256xf32, #tpu.memory_space<vmem>>, vector<256x256xf32>
    %cst_105 = arith.constant dense<0.000000e+00> : vector<32x256xf32>
    %112 = tpu.matmul %110, %111, %cst_105 {dimension_numbers = #tpu.dot_dimension_numbers<[1], [0], [0], [1], [0, 0, 1, 1], [], []>} : vector<32x256xf32>, vector<256x256xf32>, vector<32x256xf32> -> vector<32x256xf32>
    %cst_106 = arith.constant dense<0.000000e+00> : vector<256xf32>
    %113 = vector.multi_reduction <add>, %109, %cst_106 [0] : vector<32x256xf32> to vector<256xf32>
    %114 = vector.shape_cast %113 : vector<256xf32> to vector<1x256xf32>
    %cst_107 = arith.constant 0.001953125 : f32
    %115 = vector.broadcast %cst_107 : f32 to vector<1x256xf32>
    %116 = arith.mulf %114, %115 : vector<1x256xf32>
    %cst_108 = arith.constant dense<0.000000e+00> : vector<256xf32>
    %117 = vector.multi_reduction <add>, %112, %cst_108 [0] : vector<32x256xf32> to vector<256xf32>
    %118 = vector.shape_cast %117 : vector<256xf32> to vector<1x256xf32>
    %cst_109 = arith.constant 0.001953125 : f32
    %119 = vector.broadcast %cst_109 : f32 to vector<1x256xf32>
    %120 = arith.mulf %118, %119 : vector<1x256xf32>
    %121 = arith.mulf %116, %116 : vector<1x256xf32>
    %122 = arith.subf %120, %121 : vector<1x256xf32>
    %cst_110 = arith.constant 9.99999974E-6 : f32
    %123 = vector.broadcast %cst_110 : f32 to vector<1x256xf32>
    %124 = arith.addf %122, %123 : vector<1x256xf32>
    %125 = math.rsqrt %124 : vector<1x256xf32>
    %126 = vector.broadcast %125 : vector<1x256xf32> to vector<32x256xf32>
    %127 = arith.mulf %107, %126 : vector<32x256xf32>
    %128 = arith.mulf %116, %125 : vector<1x256xf32>
    %cst_111 = arith.constant 1.000000e-03 : f32
    %129 = vector.broadcast %cst_111 : f32 to vector<1x256xf32>
    %130 = arith.subf %129, %128 : vector<1x256xf32>
    %131 = vector.broadcast %130 : vector<1x256xf32> to vector<32x256xf32>
    %132 = arith.addf %127, %131 : vector<32x256xf32>
    %c0_112 = arith.constant 0 : index
    %c0_113 = arith.constant 0 : index
    %133 = vector.load %arg3[%c0_112, %c0_113] : memref<256x256xf32, #tpu.memory_space<vmem>>, vector<256x256xf32>
    %cst_114 = arith.constant dense<0.000000e+00> : vector<32x256xf32>
    %134 = tpu.matmul %132, %133, %cst_114 {dimension_numbers = #tpu.dot_dimension_numbers<[1], [0], [0], [1], [0, 0, 1, 1], [], []>} : vector<32x256xf32>, vector<256x256xf32>, vector<32x256xf32> -> vector<32x256xf32>
    %c0_115 = arith.constant 0 : index
    %c0_116 = arith.constant 0 : index
    %135 = vector.load %arg5[%c0_115, %c0_116] : memref<256x256xf32, #tpu.memory_space<vmem>>, vector<256x256xf32>
    %cst_117 = arith.constant dense<0.000000e+00> : vector<32x256xf32>
    %136 = tpu.matmul %134, %135, %cst_117 {dimension_numbers = #tpu.dot_dimension_numbers<[1], [0], [0], [1], [0, 0, 1, 1], [], []>} : vector<32x256xf32>, vector<256x256xf32>, vector<32x256xf32> -> vector<32x256xf32>
    %137 = arith.mulf %134, %134 : vector<32x256xf32>
    %c0_118 = arith.constant 0 : index
    %c0_119 = arith.constant 0 : index
    %138 = vector.load %arg5[%c0_118, %c0_119] : memref<256x256xf32, #tpu.memory_space<vmem>>, vector<256x256xf32>
    %cst_120 = arith.constant dense<0.000000e+00> : vector<32x256xf32>
    %139 = tpu.matmul %137, %138, %cst_120 {dimension_numbers = #tpu.dot_dimension_numbers<[1], [0], [0], [1], [0, 0, 1, 1], [], []>} : vector<32x256xf32>, vector<256x256xf32>, vector<32x256xf32> -> vector<32x256xf32>
    %cst_121 = arith.constant dense<0.000000e+00> : vector<256xf32>
    %140 = vector.multi_reduction <add>, %136, %cst_121 [0] : vector<32x256xf32> to vector<256xf32>
    %141 = vector.shape_cast %140 : vector<256xf32> to vector<1x256xf32>
    %cst_122 = arith.constant 0.001953125 : f32
    %142 = vector.broadcast %cst_122 : f32 to vector<1x256xf32>
    %143 = arith.mulf %141, %142 : vector<1x256xf32>
    %cst_123 = arith.constant dense<0.000000e+00> : vector<256xf32>
    %144 = vector.multi_reduction <add>, %139, %cst_123 [0] : vector<32x256xf32> to vector<256xf32>
    %145 = vector.shape_cast %144 : vector<256xf32> to vector<1x256xf32>
    %cst_124 = arith.constant 0.001953125 : f32
    %146 = vector.broadcast %cst_124 : f32 to vector<1x256xf32>
    %147 = arith.mulf %145, %146 : vector<1x256xf32>
    %148 = arith.mulf %143, %143 : vector<1x256xf32>
    %149 = arith.subf %147, %148 : vector<1x256xf32>
    %cst_125 = arith.constant 9.99999974E-6 : f32
    %150 = vector.broadcast %cst_125 : f32 to vector<1x256xf32>
    %151 = arith.addf %149, %150 : vector<1x256xf32>
    %152 = math.rsqrt %151 : vector<1x256xf32>
    %153 = vector.broadcast %152 : vector<1x256xf32> to vector<32x256xf32>
    %154 = arith.mulf %134, %153 : vector<32x256xf32>
    %155 = arith.mulf %143, %152 : vector<1x256xf32>
    %cst_126 = arith.constant 1.000000e-03 : f32
    %156 = vector.broadcast %cst_126 : f32 to vector<1x256xf32>
    %157 = arith.subf %156, %155 : vector<1x256xf32>
    %158 = vector.broadcast %157 : vector<1x256xf32> to vector<32x256xf32>
    %159 = arith.addf %154, %158 : vector<32x256xf32>
    %c0_127 = arith.constant 0 : index
    %c0_128 = arith.constant 0 : index
    %c0_129 = arith.constant 0 : index
    %160 = vector.load %arg6[%c0_127, %c0_128, %c0_129] : memref<1x32x256xf32, #tpu.memory_space<vmem>>, vector<1x32x256xf32>
    %161 = vector.shape_cast %160 : vector<1x32x256xf32> to vector<32x256xf32>
    %162 = vector.shape_cast %159 : vector<32x256xf32> to vector<1x32x256xf32>
    tpu.vector_store %arg6[%c0_127, %c0_128, %c0_129], %162 {strides = array<i32>} : memref<1x32x256xf32, #tpu.memory_space<vmem>>, vector<1x32x256xf32>,
    return
  }
  func.func @transform_0(%arg0: i32) -> (i32, i32, i32) {
    %c0_i32 = arith.constant 0 : i32
    %c0_i32_0 = arith.constant 0 : i32
    %c0_i32_1 = arith.constant 0 : i32
    return %arg0, %c0_i32, %c0_i32_0 : i32, i32, i32
  }
  func.func @transform_1(%arg0: i32) -> (i32, i32, i32, i32) {
    %c0_i32 = arith.constant 0 : i32
    %c0_i32_0 = arith.constant 0 : i32
    %c0_i32_1 = arith.constant 0 : i32
    %c0_i32_2 = arith.constant 0 : i32
    return %arg0, %c0_i32, %c0_i32_0, %c0_i32_1 : i32, i32, i32, i32
  }
  func.func @transform_2(%arg0: i32) -> (i32, i32) {
    %c0_i32 = arith.constant 0 : i32
    %c0_i32_0 = arith.constant 0 : i32
    %c0_i32_1 = arith.constant 0 : i32
    return %c0_i32, %c0_i32_0 : i32, i32
  }
  func.func @transform_3(%arg0: i32) -> (i32, i32) {
    %c0_i32 = arith.constant 0 : i32
    %c0_i32_0 = arith.constant 0 : i32
    %c0_i32_1 = arith.constant 0 : i32
    return %c0_i32, %c0_i32_0 : i32, i32
  }
  func.func @transform_4(%arg0: i32) -> (i32, i32) {
    %c0_i32 = arith.constant 0 : i32
    %c0_i32_0 = arith.constant 0 : i32
    %c0_i32_1 = arith.constant 0 : i32
    return %c0_i32, %c0_i32_0 : i32, i32
  }
  func.func @transform_5(%arg0: i32) -> (i32, i32, i32) {
    %c0_i32 = arith.constant 0 : i32
    %c0_i32_0 = arith.constant 0 : i32
    %c0_i32_1 = arith.constant 0 : i32
    return %arg0, %c0_i32, %c0_i32_0 : i32, i32, i32
  }
}

</mosaic_0001>

<bundles_post_ra>
// kernel: forward.1
= control target key start
LH: loop header
LB: loop body
LE: loop exit
PB: predicated region body
PF: predicated region fallthrough
CT: control target
= control target key end

     0   :  { %10 = vsyncpa [#allocation5], 0  ;;  %s7617_s0 = inlined_call_operand.vmem [shape: f32[2,32,256], index: 0, kind: input, shape index: {}]   ;;  %s7618_s1 = inlined_call_operand.hbm [shape: f32[2,3,768,256], index: 1, kind: input, shape index: {}]   ;;  %s7619_s2 = inlined_call_operand.hbm [shape: f32[256,256], index: 2, kind: input, shape index: {}]   ;;  %s7620_s3 = inlined_call_operand.hbm [shape: f32[3,256], index: 3, kind: input, shape index: {}]   ;;  %s7621_s4 = inlined_call_operand.hbm [shape: f32[256,256], index: 4, kind: input, shape index: {}]   ;;  %s7622_s5 = inlined_call_operand.vmem [shape: f32[2,32,256], index: 5, kind: output, shape index: {}]  }
   0x1   :  { %12 = vsyncpa [#allocation5 + $0x1], 0 }
   0x2   :  { %13 = vsyncpa [#allocation7], 0 }
   0x3   :  { %14 = vsyncpa [#allocation10], 0  ;;  %s5010_s18 = smov 0   ;;  %s5012_s19 = smov 0  }
   0x4   :  { %s5014_s20 = smov 0   ;;  %s5016_s21 = smov 0  }
   0x5 LB: > { %s5029_s22 = sadd.s32 4294967295, %s4972_s21   ;;  %p66_p0 = scmp.ne.s32.totalorder %s4964_s19, %s4960_s18  ;;  %s4972_s21 = sphi %s5016_s21, %s7670_s21   ;;  %s4968_s20 = sphi %s5014_s20, %s7669_s20   ;;  %s4964_s19 = sphi %s5012_s19, %s7668_s19   ;;  %s4960_s18 = sphi %s5010_s18, %s7667_s18  }
   0x6   : > { %p67_p1 = scmp.eq.s32.totalorder %s5029_s22, 0  ;;  %p4252_p2 = scmp.ge.s32.totalorder %s4972_s21, 1 }
   0x7   : > { %p166_p3 = scmp.lt.s32.totalorder %s4972_s21, 3  ;;  %s177_s26 = sshll.u32 %s7619_s2, 4  ;;  %s178_s26 = int_to_ptr.hbm [resolvable:$true] %s177_s26 }
   0x8   : > { %p5037_p4 = por %p67_p1, %p66_p0  ;;  %s4974_s28 = smov [#allocation6]  }
   0x9   : > { %p5044_p5 = pnand %p4252_p2, %p166_p3  ;;  %s179_s29 = sshll.u32 %s4974_s28, 4  ;;  %s180_s29 = int_to_ptr.vmem [resolvable:$true] %s179_s29 }
   0xa   : > { %s192_s8 = sshll.u32 %s7620_s3, 4  ;;  %s4975_s9 = smov 256   ;;  %s193_s8 = int_to_ptr.hbm [resolvable:$true] %s192_s8 }
   0xb   : > { %p4671_p6 = pneg %p5044_p5  ;;  %s4976_s10 = smov 16  }
   0xc   : > { %s4977_s11 = smov [#allocation8]   ;;  %s203_s15 = sshll.u32 %s7621_s4, 4  ;;  %s204_s15 = int_to_ptr.hbm [resolvable:$true] %s203_s15 }
   0xd   : > { %p5052_p7 = pnand %p4671_p6, %p67_p1  ;;  %s194_s12 = sshll.u32 %s4977_s11, 4  ;;  %s195_s12 = int_to_ptr.vmem [resolvable:$true] %s194_s12 }
   0xe   : > { %s4978_s16 = smov [#allocation9]   ;;  %s5070_s18 = sadd.s32 1, %s4972_s21  }
   0xf   : > { %4674 = dma.hbm_to_vmem [thread:$0]  (!%p5052_p7), %s178_s26, 8192, %s180_s29, [#allocation7], %s4975_s9, %s4975_s9, %s4976_s10  }
  0x10   : > { %4677 = dma.hbm_to_vmem [thread:$0]  (!%p5052_p7), %s193_s8, 128, %s195_s12, [#allocation7]  }
  0x11   : > { %s205_s17 = sshll.u32 %s4978_s16, 4  ;;  %s50_s24 = ssub.s32 %s4972_s21, %s5070_s18  ;;  %s206_s17 = int_to_ptr.vmem [resolvable:$true] %s205_s17 }
  0x12   : > { %4680 = dma.hbm_to_vmem [thread:$0]  (!%p5052_p7), %s204_s15, 8192, %s206_s17, [#allocation10], %s4975_s9, %s4975_s9, %s4976_s10  }
  0x13   : > { %s53_s25 = sadd.s32 1, %s4968_s20  ;;  %p51_p8 = scmp.eq.s32.totalorder %s50_s24, 0 }
  0x14   : > { %p60_p9 = scmp.ne.s32.totalorder %s4968_s20, %s4964_s19  ;;  %p61_p10 = scmp.eq.s32.totalorder %s4972_s21, 0 }
  0x15   : > { %p4688_p11 = scmp.lt.s32.totalorder %s4972_s21, 2  ;;  %s227_s28 = sand.u32 1, %s4968_s20  }
  0x16   : > { %s5085_s26 = scalar_select %p51_p8, %s4968_s20, %s53_s25  }
  0x17   : > { %p62_p12 = por %p61_p10, %p60_p9  ;;  %s4654_s29 = smul.u32 4608, %s227_s28 }
  0x18   : > { %s4655_s6 = smul.u32 4608, %s4972_s21  ;;  %s228_s15 = scalar_lea.sflag [#allocation5], %s227_s28 }
  0x19   : > { %p5089_p13 = pnand %p4688_p11, %p62_p12  ;;  %s231_s12 = scalar_lea.vmem [#allocation4], %s4654_s29 }
  0x1a   : > { %s236_s11 = scalar_lea.hbm %s7618_s1, %s4655_s6  ;;  %s239_s13 = sshll.u32 %s231_s12, 4  ;;  %s240_s13 = int_to_ptr.vmem [resolvable:$true] %s239_s13 }
  0x1b   : > { %s237_s14 = sshll.u32 %s236_s11, 4  ;;  %p4904_p2 = pneg %p5089_p13  ;;  %s238_s14 = int_to_ptr.hbm [resolvable:$true] %s237_s14 }
  0x1c   : > { %s4900_s16 = sshra.s32 %s238_s14, 4  ;;  %s4907_s25 = scalar_lea.hbm %s7618_s1, 9216  ;;  %s4901_s16 = int_to_ptr.hbm [resolvable:$true] %s4900_s16 }
  0x1d   : > { %s4902_s17 = scalar_lea.hbm %s4901_s16, 4608  ;;  %p4908_p7 = scmp.lt.s32.totalorder %s4901_s16, %s7618_s1 }
  0x1e   : > { %p4903_p0 = scmp.ne.s32.totalorder %s4901_s16, %s4902_s17  ;;  %p4909_p8 = scmp.lt.s32.totalorder %s4907_s25, %s4902_s17 }
  0x20   : > { %p4905_p3 = pnand %p4904_p2, %p4903_p0  ;;  %p4910_p9 = por %p4909_p8, %p4908_p7 }
  0x22   : > { %p4906_p6 = pneg %p4905_p3 }
  0x24   : > { %p4911_p10 = pnand %p4910_p9, %p4906_p6 }
  0x26   : > { %4914 = shalt.err (!%p4911_p10)
}
  0x27   : > { %4684 = dma.hbm_to_vmem [thread:$0]  (!%p5089_p13), %s238_s14, 73728, %s240_s13, %s228_s15, %s4975_s9, %s4975_s9, %s4976_s10  }
  0x28   : > { %251 = sbr.rel (%p5044_p5) target bundleno = 1796 (0x704), region = 40 }
  0x2d   : > { %s253_s28 = sand.u32 1, %s4964_s19  }
  0x2e   : > { %s4656_s29 = smul.u32 4608, %s253_s28  ;;  %s254_s8 = scalar_lea.sflag [#allocation5], %s253_s28 }
  0x30   : > { %s5112_s11 = scalar_lea.vmem [#allocation4], %s4656_s29 }
  0x31   : > { %4947 = dma.done.wait (%p5037_p4), %s254_s8, 73728  }
  0x32   : > { %4949 = vsyncadd (%p5037_p4), %s254_s8, 4294893568 }
  0x33   : > { %4951 = dma.done.wait (%p67_p1), [#allocation7], 8320  }
  0x34   : > { %4953 = vsyncadd (%p67_p1), [#allocation7], 4294958976 }
  0x35   : > { %4955 = dma.done.wait (%p67_p1), [#allocation10], 8192  }
  0x36   : > { %4957 = vsyncadd (%p67_p1), [#allocation10], 4294959104  ;;  %v4979_v0 = vmov 0.0   ;;  %v519_v1 = vld [vmem:[%s5112_s11 + $0xf0] sm:$0xff]  ;;  %v517_v3 = vld [vmem:[%s5112_s11 + $0xe0] sm:$0xff]  ;;  %p305_p1 = scmp.lt.s32.totalorder %s5029_s22, 1 }
  0x37   : > { %315 = vst [vmem:[#allocation2 + $0x30] sm:$0xff] %v4979_v0  ;;  %v583_v2 = vld [vmem:[%s5112_s11 + $0x2f0] sm:$0xff]  ;;  %687 = vmatpush.msra.mxu0 %v519_v1  ;;  %v581_v5 = vld [vmem:[%s5112_s11 + $0x2e0] sm:$0xff]  ;;  %vm343_vm0 = vcmask 1040384   ;;  %vm428_vm1 = vcmask 1045504  }
  0x38   : > { %316 = vst [vmem:[#allocation2] sm:$0xff] %v4979_v0  ;;  %745 = vmatpush.msra.mxu2 %v583_v2  ;;  %v551_v4 = vld [vmem:[%s5112_s11 + $0x1f0] sm:$0xff]  ;;  %v549_v8 = vld [vmem:[%s5112_s11 + $0x1e0] sm:$0xff]  ;;  %s7672_s22 = smov (!%p305_p1, %s5029_s22), 1 }
  0x39   : > { %319 = vst [vmem:[#allocation2 + $0x50] sm:$0x3] %v4979_v0  ;;  %v615_v6 = vld [vmem:[%s5112_s11 + $0x3f0] sm:$0xff]  ;;  %716 = vmatpush.msra.mxu1 %v551_v4  ;;  %688 = vmatpush.msra.mxu0 %v517_v3  ;;  %v613_v10 = vld [vmem:[%s5112_s11 + $0x3e0] sm:$0xff]  ;;  %s4652_s23 = sshll.u32 %s7672_s22, 6 }
  0x3a   : > { %320 = vst [vmem:[#allocation2 + $0x20] sm:$0x3] %v4979_v0  ;;  %774 = vmatpush.msra.mxu3 %v615_v6  ;;  %v515_v7 = vld [vmem:[%s5112_s11 + $0xd0] sm:$0xff]  ;;  %746 = vmatpush.msra.mxu2 %v581_v5  ;;  %v513_v12 = vld [vmem:[%s5112_s11 + $0xc0] sm:$0xff]  ;;  %s5178_s10 = scalar_lea.vmem %s7617_s0, %s4652_s23  ;;  %s314_s13 = scalar_lea.vmem %s7622_s5, %s4652_s23 }
  0x3b   : > { %321 = vst [vmem:[#allocation2 + $0x8] sm:$0xff] %v4979_v0  ;;  %v579_v9 = vld [vmem:[%s5112_s11 + $0x2d0] sm:$0xff]  ;;  %717 = vmatpush.msra.mxu1 %v549_v8  ;;  %v577_v13 = vld [vmem:[%s5112_s11 + $0x2c0] sm:$0xff]  ;;  %689 = vmatpush.msra.mxu0 %v515_v7  ;;  %v5195_v53 = vld [vmem:[%s5178_s10 + $0x8] sm:$0xff] }
  0x3c   : > { %322 = vst [vmem:[#allocation2 + $0x38] sm:$0xff] %v4979_v0  ;;  %v547_v11 = vld [vmem:[%s5112_s11 + $0x1d0] sm:$0xff]  ;;  %775 = vmatpush.msra.mxu3 %v613_v10  ;;  %747 = vmatpush.msra.mxu2 %v579_v9  ;;  %v545_v15 = vld [vmem:[%s5112_s11 + $0x1c0] sm:$0xff]  ;;  %v345_v56 = vrot.slane %v5195_v53, 7  ;;  %v5219_v5 = vld [vmem:[%s5178_s10 + $0x18] sm:$0xff] }
  0x3d   : > { %325 = vst [vmem:[#allocation2 + $0x10] sm:$0x3] %v4979_v0  ;;  %v611_v14 = vld [vmem:[%s5112_s11 + $0x3d0] sm:$0xff]  ;;  %v609_v16 = vld [vmem:[%s5112_s11 + $0x3c0] sm:$0xff]  ;;  %718 = vmatpush.msra.mxu1 %v547_v11  ;;  %690 = vmatpush.msra.mxu0 %v513_v12  ;;  %v348_v6 = vrot.slane %v5219_v5, 7  ;;  %v520_v8 = vld [vmem:[%s5112_s11 + $0xf8] sm:$0xff] }
  0x3e   : > { %326 = vst [vmem:[#allocation2 + $0x40] sm:$0x3] %v4979_v0  ;;  %776 = vmatpush.msra.mxu3 %v611_v14  ;;  %v511_v17 = vld [vmem:[%s5112_s11 + $0xb0] sm:$0xff]  ;;  %748 = vmatpush.msra.mxu2 %v577_v13  ;;  %v509_v21 = vld [vmem:[%s5112_s11 + $0xa0] sm:$0xff]  ;;  %v518_v13 = vld [vmem:[%s5112_s11 + $0xe8] sm:$0xff] }
  0x3f   : > { %v575_v18 = vld [vmem:[%s5112_s11 + $0x2b0] sm:$0xff]  ;;  %719 = vmatpush.msra.mxu1 %v545_v15  ;;  %v573_v22 = vld [vmem:[%s5112_s11 + $0x2a0] sm:$0xff]  ;;  %691 = vmatpush.msra.mxu0 %v511_v17  ;;  %369 = vst [vmem:[#allocation2] sm:$0xfe] %v345_v56  ;;  %v552_v14 = vld [vmem:[%s5112_s11 + $0x1f8] sm:$0xff] }
  0x40   : > { %v543_v19 = vld [vmem:[%s5112_s11 + $0x1b0] sm:$0xff]  ;;  %777 = vmatpush.msra.mxu3 %v609_v16  ;;  %749 = vmatpush.msra.mxu2 %v575_v18  ;;  %v541_v23 = vld [vmem:[%s5112_s11 + $0x1a0] sm:$0xff]  ;;  %373 = vst [vmem:[#allocation2 + $0x20] sm:$0x1] %v348_v6 }
  0x41   : > { %v607_v20 = vld [vmem:[%s5112_s11 + $0x3b0] sm:$0xff]  ;;  %v605_v24 = vld [vmem:[%s5112_s11 + $0x3a0] sm:$0xff]  ;;  %720 = vmatpush.msra.mxu1 %v543_v19  ;;  %692 = vmatpush.msra.mxu0 %v509_v21  ;;  %v516_v19 = vld [vmem:[%s5112_s11 + $0xd8] sm:$0xff] }
  0x42   : > { %778 = vmatpush.msra.mxu3 %v607_v20  ;;  %v507_v25 = vld [vmem:[%s5112_s11 + $0x90] sm:$0xff]  ;;  %750 = vmatpush.msra.mxu2 %v573_v22  ;;  %v505_v29 = vld [vmem:[%s5112_s11 + $0x80] sm:$0xff]  ;;  %v550_v20 = vld [vmem:[%s5112_s11 + $0x1e8] sm:$0xff] }
  0x43   : > { %v571_v26 = vld [vmem:[%s5112_s11 + $0x290] sm:$0xff]  ;;  %721 = vmatpush.msra.mxu1 %v541_v23  ;;  %v569_v30 = vld [vmem:[%s5112_s11 + $0x280] sm:$0xff]  ;;  %693 = vmatpush.msra.mxu0 %v507_v25  ;;  %v5245_v21 = vld [vmem:[%s5178_s10 + $0x28] sm:$0xff] }
  0x44   : > { %v539_v27 = vld [vmem:[%s5112_s11 + $0x190] sm:$0xff]  ;;  %779 = vmatpush.msra.mxu3 %v605_v24  ;;  %751 = vmatpush.msra.mxu2 %v571_v26  ;;  %v537_v31 = vld [vmem:[%s5112_s11 + $0x180] sm:$0xff]  ;;  %v351_v24 = vrot.slane %v5245_v21, 7  ;;  %v514_v25 = vld [vmem:[%s5112_s11 + $0xc8] sm:$0xff] }
  0x45   : > { %v603_v28 = vld [vmem:[%s5112_s11 + $0x390] sm:$0xff]  ;;  %v601_v32 = vld [vmem:[%s5112_s11 + $0x380] sm:$0xff]  ;;  %722 = vmatpush.msra.mxu1 %v539_v27  ;;  %694 = vmatpush.msra.mxu0 %v505_v29  ;;  %v548_v26 = vld [vmem:[%s5112_s11 + $0x1d8] sm:$0xff] }
  0x46   : > { %780 = vmatpush.msra.mxu3 %v603_v28  ;;  %v503_v33 = vld [vmem:[%s5112_s11 + $0x70] sm:$0xff]  ;;  %752 = vmatpush.msra.mxu2 %v569_v30  ;;  %v501_v37 = vld [vmem:[%s5112_s11 + $0x60] sm:$0xff]  ;;  %375 = vst [vmem:[#allocation2 + $0x38] sm:$0xfe] %v351_v24 }
  0x47   : > { %v567_v34 = vld [vmem:[%s5112_s11 + $0x270] sm:$0xff]  ;;  %723 = vmatpush.msra.mxu1 %v537_v31  ;;  %v565_v38 = vld [vmem:[%s5112_s11 + $0x260] sm:$0xff]  ;;  %695 = vmatpush.msra.mxu0 %v503_v33  ;;  %v512_v31 = vld [vmem:[%s5112_s11 + $0xb8] sm:$0xff] }
  0x48   : > { %v535_v35 = vld [vmem:[%s5112_s11 + $0x170] sm:$0xff]  ;;  %781 = vmatpush.msra.mxu3 %v601_v32  ;;  %753 = vmatpush.msra.mxu2 %v567_v34  ;;  %v533_v39 = vld [vmem:[%s5112_s11 + $0x160] sm:$0xff]  ;;  %v546_v32 = vld [vmem:[%s5112_s11 + $0x1c8] sm:$0xff] }
  0x49   : > { %v599_v36 = vld [vmem:[%s5112_s11 + $0x370] sm:$0xff]  ;;  %v597_v40 = vld [vmem:[%s5112_s11 + $0x360] sm:$0xff]  ;;  %724 = vmatpush.msra.mxu1 %v535_v35  ;;  %696 = vmatpush.msra.mxu0 %v501_v37  ;;  %v5279_v37 = vsel %vm343_vm0, %v345_v56, %v348_v6  ;;  %v532_v6 = vld [vmem:[%s5112_s11 + $0x158] sm:$0xff] }
  0x4a   : > { %782 = vmatpush.msra.mxu3 %v599_v36  ;;  %v499_v41 = vld [vmem:[%s5112_s11 + $0x50] sm:$0xff]  ;;  %754 = vmatpush.msra.mxu2 %v565_v38  ;;  %v497_v45 = vld [vmem:[%s5112_s11 + $0x40] sm:$0xff]  ;;  %v5272_v36 = vld [vmem:[%s5178_s10 + $0x38] sm:$0xff] }
  0x4b   : > { %v563_v42 = vld [vmem:[%s5112_s11 + $0x250] sm:$0xff]  ;;  %725 = vmatpush.msra.mxu1 %v533_v39  ;;  %v561_v46 = vld [vmem:[%s5112_s11 + $0x240] sm:$0xff]  ;;  %697 = vmatpush.msra.mxu0 %v499_v41  ;;  %v354_v38 = vrot.slane %v5272_v36, 7  ;;  %v510_v39 = vld [vmem:[%s5112_s11 + $0xa8] sm:$0xff] }
  0x4c   : > { %v531_v43 = vld [vmem:[%s5112_s11 + $0x150] sm:$0xff]  ;;  %783 = vmatpush.msra.mxu3 %v597_v40  ;;  %v5187_v47 = vld [vmem:[%s5178_s10] sm:$0xff]  ;;  %755 = vmatpush.msra.mxu2 %v563_v42  ;;  %v544_v40 = vld [vmem:[%s5112_s11 + $0x1b8] sm:$0xff] }
  0x4d   : > { %v595_v44 = vld [vmem:[%s5112_s11 + $0x350] sm:$0xff]  ;;  %v529_v48 = vld [vmem:[%s5112_s11 + $0x140] sm:$0xff]  ;;  %v344_v50 = vrot.slane %v5187_v47, 7  ;;  %726 = vmatpush.msra.mxu1 %v531_v43  ;;  %698 = vmatpush.msra.mxu0 %v497_v45  ;;  %379 = vst [vmem:[#allocation2 + $0x40] sm:$0x1] %v354_v38  ;;  %v508_v43 = vld [vmem:[%s5112_s11 + $0x98] sm:$0xff] }
  0x4e   : > { %v593_v49 = vld [vmem:[%s5112_s11 + $0x340] sm:$0xff]  ;;  %784 = vmatpush.msra.mxu3 %v595_v44  ;;  %v495_v51 = vld [vmem:[%s5112_s11 + $0x30] sm:$0xff]  ;;  %756 = vmatpush.msra.mxu2 %v561_v46  ;;  %v542_v44 = vld [vmem:[%s5112_s11 + $0x1a8] sm:$0xff] }
  0x4f   : > { %v559_v52 = vld [vmem:[%s5112_s11 + $0x230] sm:$0xff]  ;;  %368 = vst [vmem:[#allocation2 + $0x30] sm:$0xfe] %v344_v50  ;;  %727 = vmatpush.msra.mxu1 %v529_v48  ;;  %v493_v57 = vld [vmem:[%s5112_s11 + $0x20] sm:$0xff]  ;;  %699 = vmatpush.msra.mxu0 %v495_v51  ;;  %v506_v48 = vld [vmem:[%s5112_s11 + $0x88] sm:$0xff] }
  0x50   : > { %v527_v54 = vld [vmem:[%s5112_s11 + $0x130] sm:$0xff]  ;;  %785 = vmatpush.msra.mxu3 %v593_v49  ;;  %v557_v58 = vld [vmem:[%s5112_s11 + $0x220] sm:$0xff]  ;;  %757 = vmatpush.msra.mxu2 %v559_v52  ;;  %v540_v49 = vld [vmem:[%s5112_s11 + $0x198] sm:$0xff] }
  0x51   : > { %v591_v55 = vld [vmem:[%s5112_s11 + $0x330] sm:$0xff]  ;;  %v525_v59 = vld [vmem:[%s5112_s11 + $0x120] sm:$0xff]  ;;  %728 = vmatpush.msra.mxu1 %v527_v54  ;;  %700 = vmatpush.msra.mxu0 %v493_v57  ;;  %v504_v54 = vld [vmem:[%s5112_s11 + $0x78] sm:$0xff] }
  0x52   : > { %v589_v60 = vld [vmem:[%s5112_s11 + $0x320] sm:$0xff]  ;;  %786 = vmatpush.msra.mxu3 %v591_v55  ;;  %v491_v61 = vld [vmem:[%s5112_s11 + $0x10] sm:$0xff]  ;;  %758 = vmatpush.msra.mxu2 %v557_v58  ;;  %v538_v55 = vld [vmem:[%s5112_s11 + $0x188] sm:$0xff] }
  0x53   : > { %v555_v62 = vld [vmem:[%s5112_s11 + $0x210] sm:$0xff]  ;;  %729 = vmatpush.msra.mxu1 %v525_v59  ;;  %v489_v3 = vld [vmem:[%s5112_s11] sm:$0xff]  ;;  %701 = vmatpush.msra.mxu0 %v491_v61  ;;  %v5308_v58 = vld [vmem:[#allocation2 + $0x38] sm:$0xff] }
  0x54   : > { %v5211_v63 = vld [vmem:[%s5178_s10 + $0x10] sm:$0xff]  ;;  %787 = vmatpush.msra.mxu3 %v589_v60  ;;  %v553_v4 = vld [vmem:[%s5112_s11 + $0x200] sm:$0xff]  ;;  %759 = vmatpush.msra.mxu2 %v555_v62  ;;  %v502_v59 = vld [vmem:[%s5112_s11 + $0x68] sm:$0xff] }
  0x55   : > { %v523_v0 = vld [vmem:[%s5112_s11 + $0x110] sm:$0xff]  ;;  %v346_v2 = vrot.slane %v5211_v63, 7  ;;  %v521_v9 = vld [vmem:[%s5112_s11 + $0x100] sm:$0xff]  ;;  %702 = vmatpush.msra.mxu0 %v489_v3  ;;  %v536_v60 = vld [vmem:[%s5112_s11 + $0x178] sm:$0xff] }
  0x56   : > { %v587_v1 = vld [vmem:[%s5112_s11 + $0x310] sm:$0xff]  ;;  %730 = vmatpush.msra.mxu1 %v523_v0  ;;  %760 = vmatpush.msra.mxu2 %v553_v4  ;;  %v585_v10 = vld [vmem:[%s5112_s11 + $0x300] sm:$0xff]  ;;  %v500_v0 = vld [vmem:[%s5112_s11 + $0x58] sm:$0xff] }
  0x57   : > { %372 = vst [vmem:[#allocation2 + $0x50] sm:$0x1] %v346_v2  ;;  %788 = vmatpush.msra.mxu3 %v587_v1  ;;  %v5222_v7 = vld [vmem:[#allocation2 + $0x30] sm:$0xff]  ;;  %761 = vmatmul.f32.vlgmr.msra.gmra.mxu2 %v5187_v47  ;;  %v5230_v12 = vld [vmem:[#allocation2] sm:$0xff]  ;;  %v5261_v29 = vsel %vm343_vm0, %v344_v50, %v346_v2  ;;  %v534_v1 = vld [vmem:[%s5112_s11 + $0x168] sm:$0xff] }
  0x58   : > { %v647_v11 = vld [vmem:[%s5112_s11 + $0x4f0] sm:$0xff]  ;;  %703 = vmatmul.f32.vlgmr.msra.gmra.mxu0 %v5222_v7  ;;  %861 = vmatpush.msrb.mxu2 %v520_v8  ;;  %v5235_v15 = vld [vmem:[%s5178_s10 + $0x20] sm:$0xff]  ;;  %v498_v4 = vld [vmem:[%s5112_s11 + $0x48] sm:$0xff] }
  0x59   : > { %731 = vmatpush.msra.mxu1 %v521_v9  ;;  %789 = vmatpush.msra.mxu3 %v585_v10  ;;  %v645_v16 = vld [vmem:[%s5112_s11 + $0x4e0] sm:$0xff]  ;;  %v679_v17 = vld [vmem:[%s5112_s11 + $0x5f0] sm:$0xff]  ;;  %v350_v18 = vrot.slane %v5235_v15, 7 }
  0x5a   : > { %803 = vmatpush.msrb.mxu0 %v647_v11  ;;  %732 = vmatmul.f32.vlgmr.msra.gmra.mxu1 %v5230_v12  ;;  %v643_v22 = vld [vmem:[%s5112_s11 + $0x4d0] sm:$0xff]  ;;  %v677_v23 = vld [vmem:[%s5112_s11 + $0x5e0] sm:$0xff]  ;;  %v496_v11 = vld [vmem:[%s5112_s11 + $0x38] sm:$0xff] }
  0x5b   : > { %790 = vmatmul.f32.vlgmr.msra.gmra.mxu3 %v5195_v53  ;;  %862 = vmatpush.msrb.mxu2 %v518_v13  ;;  %374 = vst [vmem:[#allocation2 + $0x8] sm:$0xfe] %v350_v18  ;;  %v641_v27 = vld [vmem:[%s5112_s11 + $0x4c0] sm:$0xff]  ;;  %v675_v28 = vld [vmem:[%s5112_s11 + $0x5d0] sm:$0xff]  ;;  %v530_v13 = vld [vmem:[%s5112_s11 + $0x148] sm:$0xff] }
  0x5c   : > { %890 = vmatpush.msrb.mxu3 %v552_v14  ;;  %804 = vmatpush.msrb.mxu0 %v645_v16  ;;  %v5264_v30 = vld [vmem:[%s5178_s10 + $0x30] sm:$0xff]  ;;  %v673_v35 = vld [vmem:[%s5112_s11 + $0x5c0] sm:$0xff] }
  0x5d   : > { %832 = vmatpush.msrb.mxu1 %v679_v17  ;;  %863 = vmatpush.msrb.mxu2 %v516_v19  ;;  %v352_v33 = vrot.slane %v5264_v30, 7  ;;  %v639_v34 = vld [vmem:[%s5112_s11 + $0x4b0] sm:$0xff]  ;;  %v637_v41 = vld [vmem:[%s5112_s11 + $0x4a0] sm:$0xff]  ;;  %v5342_v17 = vsel %vm343_vm0, %v351_v24, %v354_v38  ;;  %v494_v19 = vld [vmem:[%s5112_s11 + $0x28] sm:$0xff] }
  0x5e   : > { %891 = vmatpush.msrb.mxu3 %v550_v20  ;;  %805 = vmatpush.msrb.mxu0 %v643_v22  ;;  %v671_v42 = vld [vmem:[%s5112_s11 + $0x5b0] sm:$0xff]  ;;  %v669_v46 = vld [vmem:[%s5112_s11 + $0x5a0] sm:$0xff]  ;;  %v528_v20 = vld [vmem:[%s5112_s11 + $0x138] sm:$0xff] }
  0x5f   : > { %833 = vmatpush.msrb.mxu1 %v677_v23  ;;  %864 = vmatpush.msrb.mxu2 %v514_v25  ;;  %378 = vst [vmem:[#allocation2 + $0x10] sm:$0x1] %v352_v33  ;;  %v635_v45 = vld [vmem:[%s5112_s11 + $0x490] sm:$0xff]  ;;  %v633_v50 = vld [vmem:[%s5112_s11 + $0x480] sm:$0xff]  ;;  %v5329_v10 = vsel %vm343_vm0, %v350_v18, %v352_v33  ;;  %v492_v25 = vld [vmem:[%s5112_s11 + $0x18] sm:$0xff] }
  0x60   : > { %892 = vmatpush.msrb.mxu3 %v548_v26  ;;  %806 = vmatpush.msrb.mxu0 %v641_v27  ;;  %v667_v51 = vld [vmem:[%s5112_s11 + $0x590] sm:$0xff]  ;;  %v665_v57 = vld [vmem:[%s5112_s11 + $0x580] sm:$0xff]  ;;  %v526_v24 = vld [vmem:[%s5112_s11 + $0x128] sm:$0xff]  ;;  %v430_v27 = vrot.slane %v5261_v29, 2 }
  0x61   : > { %834 = vmatpush.msrb.mxu1 %v675_v28  ;;  %706 = vmatmul.f32.gmra.mxu0 %v5261_v29  ;;  %v631_v56 = vld [vmem:[%s5112_s11 + $0x470] sm:$0xff]  ;;  %v629_v61 = vld [vmem:[%s5112_s11 + $0x460] sm:$0xff]  ;;  %v490_v33 = vld [vmem:[%s5112_s11 + $0x8] sm:$0xff] }
  0x62   : > { %764 = vmatmul.f32.gmra.mxu2 %v5211_v63  ;;  %893 = vmatpush.msrb.mxu3 %v546_v32  ;;  %v5300_v52 = vld [vmem:[#allocation2 + $0x8] sm:$0xff]  ;;  %v663_v62 = vld [vmem:[%s5112_s11 + $0x570] sm:$0xff]  ;;  %v661_v3 = vld [vmem:[%s5112_s11 + $0x560] sm:$0xff] }
  0x63   : > { %865 = vmatpush.msrb.mxu2 %v512_v31  ;;  %807 = vmatpush.msrb.mxu0 %v639_v34  ;;  %v627_v2 = vld [vmem:[%s5112_s11 + $0x450] sm:$0xff]  ;;  %v625_v8 = vld [vmem:[%s5112_s11 + $0x440] sm:$0xff]  ;;  %v524_v34 = vld [vmem:[%s5112_s11 + $0x118] sm:$0xff] }
  0x64   : > { %835 = vmatpush.msrb.mxu1 %v673_v35  ;;  %793 = vmatmul.f32.gmra.mxu3 %v5219_v5  ;;  %v659_v9 = vld [vmem:[%s5112_s11 + $0x550] sm:$0xff]  ;;  %v657_v16 = vld [vmem:[%s5112_s11 + $0x540] sm:$0xff] }
  0x65   : > { %735 = vmatmul.f32.gmra.mxu1 %v5279_v37  ;;  %866 = vmatpush.msrb.mxu2 %v510_v39  ;;  %v623_v14 = vld [vmem:[%s5112_s11 + $0x430] sm:$0xff]  ;;  %v621_v22 = vld [vmem:[%s5112_s11 + $0x420] sm:$0xff] }
  0x66   : > { %894 = vmatpush.msrb.mxu3 %v544_v40  ;;  %808 = vmatpush.msrb.mxu0 %v637_v41  ;;  %v404_v18 = vld [vmem:[#allocation2 + $0x30] sm:$0xfc]  ;;  %v405_v28 = vld [vmem:[#allocation2] sm:$0xfc]  ;;  %v433_v40 = vrot.slane %v5279_v37, 2 }
  0x67   : > { %836 = vmatpush.msrb.mxu1 %v671_v42  ;;  %867 = vmatpush.msrb.mxu2 %v508_v43  ;;  %v655_v23 = vld [vmem:[%s5112_s11 + $0x530] sm:$0xff]  ;;  %v429_v26 = vrot.slane %v404_v18, 2  ;;  %v653_v32 = vld [vmem:[%s5112_s11 + $0x520] sm:$0xff]  ;;  %v432_v39 = vrot.slane %v405_v28, 2  ;;  %v522_v42 = vld [vmem:[%s5112_s11 + $0x108] sm:$0xff] }
  0x68   : > { %895 = vmatpush.msrb.mxu3 %v542_v44  ;;  %809 = vmatpush.msrb.mxu0 %v635_v45  ;;  %v619_v31 = vld [vmem:[%s5112_s11 + $0x410] sm:$0xff]  ;;  %v617_v35 = vld [vmem:[%s5112_s11 + $0x400] sm:$0xff]  ;;  %v648_v43 = vld [vmem:[%s5112_s11 + $0x4f8] sm:$0xff] }
  0x69   : > { %837 = vmatpush.msrb.mxu1 %v669_v46  ;;  %868 = vmatpush.msrb.mxu2 %v506_v48  ;;  %v651_v38 = vld [vmem:[%s5112_s11 + $0x510] sm:$0xff]  ;;  %v5361_v41 = vsel %vm428_vm1, %v429_v26, %v430_v27  ;;  %v649_v44 = vld [vmem:[%s5112_s11 + $0x500] sm:$0xff]  ;;  %v584_v45 = vld [vmem:[%s5112_s11 + $0x2f8] sm:$0xff]  ;;  %v5370_v46 = vsel %vm428_vm1, %v432_v39, %v433_v40 }
  0x6a   : > { %896 = vmatpush.msrb.mxu3 %v540_v49  ;;  %810 = vmatpush.msrb.mxu0 %v633_v50  ;;  %v408_v48 = vld [vmem:[#allocation2 + $0x50] sm:$0x3]  ;;  %v646_v49 = vld [vmem:[%s5112_s11 + $0x4e8] sm:$0xff]  ;;  %v680_v50 = vld [vmem:[%s5112_s11 + $0x5f8] sm:$0xff] }
  0x6b   : > { %838 = vmatpush.msrb.mxu1 %v667_v51  ;;  %709 = vmatmul.f32.gmra.mxu0 %v5300_v52  ;;  %v582_v51 = vld [vmem:[%s5112_s11 + $0x2e8] sm:$0xff]  ;;  %v608_v18 = vld [vmem:[%s5112_s11 + $0x3b8] sm:$0xff] }
  0x6c   : > { %767 = vmatmul.f32.gmra.mxu2 %v5235_v15  ;;  %897 = vmatpush.msrb.mxu3 %v538_v55  ;;  %v678_v55 = vld [vmem:[%s5112_s11 + $0x5e8] sm:$0xff]  ;;  %v604_v28 = vld [vmem:[%s5112_s11 + $0x398] sm:$0xff] }
  0x6d   : > { %869 = vmatpush.msrb.mxu2 %v504_v54  ;;  %811 = vmatpush.msrb.mxu0 %v631_v56  ;;  %v616_v54 = vld [vmem:[%s5112_s11 + $0x3f8] sm:$0xff]  ;;  %v435_v56 = vrot.slane %v408_v48, 2  ;;  %v634_v26 = vld [vmem:[%s5112_s11 + $0x488] sm:$0xff] }
  0x6e   : > { %839 = vmatpush.msrb.mxu1 %v665_v57  ;;  %796 = vmatmul.f32.gmra.mxu3 %v5245_v21  ;;  %v409_v57 = vld [vmem:[#allocation2 + $0x20] sm:$0x3]  ;;  %v602_v39 = vld [vmem:[%s5112_s11 + $0x388] sm:$0xff]  ;;  %v600_v48 = vld [vmem:[%s5112_s11 + $0x378] sm:$0xff] }
  0x6f   : > { %738 = vmatmul.f32.gmra.mxu1 %v5308_v58  ;;  %870 = vmatpush.msrb.mxu2 %v502_v59  ;;  %v580_v59 = vld [vmem:[%s5112_s11 + $0x2d8] sm:$0xff] }
  0x70   : > { %898 = vmatpush.msrb.mxu3 %v536_v60  ;;  %812 = vmatpush.msrb.mxu0 %v629_v61  ;;  %v614_v60 = vld [vmem:[%s5112_s11 + $0x3e8] sm:$0xff] }
  0x71   : > { %840 = vmatpush.msrb.mxu1 %v663_v62  ;;  %871 = vmatpush.msrb.mxu2 %v500_v0  ;;  %v642_v61 = vld [vmem:[%s5112_s11 + $0x4c8] sm:$0xff]  ;;  %v676_v62 = vld [vmem:[%s5112_s11 + $0x5d8] sm:$0xff] }
  0x72   : > { %899 = vmatpush.msrb.mxu3 %v534_v1  ;;  %813 = vmatpush.msrb.mxu0 %v627_v2  ;;  %v612_v0 = vld [vmem:[%s5112_s11 + $0x3d8] sm:$0xff]  ;;  %v437_v1 = vrot.slane %v409_v57, 2  ;;  %v5387_v2 = vsel %vm428_vm1, %v430_v27, %v435_v56 }
  0x73   : > { %841 = vmatpush.msrb.mxu1 %v661_v3  ;;  %872 = vmatpush.msrb.mxu2 %v498_v4  ;;  %v640_v3 = vld [vmem:[%s5112_s11 + $0x4b8] sm:$0xff]  ;;  %v674_v4 = vld [vmem:[%s5112_s11 + $0x5c8] sm:$0xff] }
  0x74   : > { %900 = vmatpush.msrb.mxu3 %v532_v6  ;;  %814 = vmatpush.msrb.mxu0 %v625_v8  ;;  %v576_v6 = vld [vmem:[%s5112_s11 + $0x2b8] sm:$0xff]  ;;  %v610_v8 = vld [vmem:[%s5112_s11 + $0x3c8] sm:$0xff] }
  0x75   : > { %842 = vmatpush.msrb.mxu1 %v659_v9  ;;  %712 = vmatmul.f32.gmra.mxu0 %v5329_v10  ;;  %v5396_v9 = vsel %vm428_vm1, %v433_v40, %v437_v1  ;;  %v668_v27 = vld [vmem:[%s5112_s11 + $0x598] sm:$0xff] }
  0x76   : > { %770 = vmatmul.f32.gmra.mxu2 %v5264_v30  ;;  %901 = vmatpush.msrb.mxu3 %v530_v13  ;;  %v638_v13 = vld [vmem:[%s5112_s11 + $0x4a8] sm:$0xff]  ;;  %v660_v56 = vld [vmem:[%s5112_s11 + $0x558] sm:$0xff] }
  0x77   : > { %873 = vmatpush.msrb.mxu2 %v496_v11  ;;  %815 = vmatpush.msrb.mxu0 %v623_v14  ;;  %v410_v11 = vld [vmem:[#allocation2 + $0x8] sm:$0xfc]  ;;  %v672_v14 = vld [vmem:[%s5112_s11 + $0x5b8] sm:$0xff] }
  0x78   : > { %843 = vmatpush.msrb.mxu1 %v657_v16  ;;  %799 = vmatmul.f32.gmra.mxu3 %v5272_v36  ;;  %v574_v16 = vld [vmem:[%s5112_s11 + $0x2a8] sm:$0xff]  ;;  %v596_v57 = vld [vmem:[%s5112_s11 + $0x358] sm:$0xff] }
  0x79   : > { %741 = vmatmul.f32.gmra.mxu1 %v5342_v17  ;;  %874 = vmatpush.msrb.mxu2 %v494_v19  ;;  %v670_v19 = vld [vmem:[%s5112_s11 + $0x5a8] sm:$0xff] }
  0x7a   : > { %902 = vmatpush.msrb.mxu3 %v528_v20  ;;  %816 = vmatpush.msrb.mxu0 %v621_v22  ;;  %v439_v20 = vrot.slane %v410_v11, 2  ;;  %v440_v22 = vrot.slane %v5329_v10, 2  ;;  %v654_v11 = vld [vmem:[%s5112_s11 + $0x528] sm:$0xff] }
  0x7b   : > { %844 = vmatpush.msrb.mxu1 %v655_v23  ;;  %875 = vmatpush.msrb.mxu2 %v492_v25  ;;  %v411_v23 = vld [vmem:[#allocation2 + $0x38] sm:$0xfc] }
  0x7c   : > { %903 = vmatpush.msrb.mxu3 %v526_v24  ;;  %817 = vmatpush.msrb.mxu0 %v619_v31  ;;  %v572_v25 = vld [vmem:[%s5112_s11 + $0x298] sm:$0xff]  ;;  %v606_v24 = vld [vmem:[%s5112_s11 + $0x3a8] sm:$0xff]  ;;  %v442_v31 = vrot.slane %v411_v23, 2  ;;  %v5514_v23 = vld [vmem:[#allocation9 + $0x98] sm:$0xff] }
  0x7d   : > { %845 = vmatpush.msrb.mxu1 %v653_v32  ;;  %876 = vmatpush.msrb.mxu2 %v490_v33  ;;  %v443_v32 = vrot.slane %v5342_v17, 2  ;;  %v5415_v33 = vsel %vm428_vm1, %v439_v20, %v440_v22  ;;  %v586_v20 = vld [vmem:[%s5112_s11 + $0x308] sm:$0xff] }
  0x7e   : > { %904 = vmatpush.msrb.mxu3 %v524_v34  ;;  %818 = vmatpush.msrb.mxu0 %v617_v35  ;;  %v632_v34 = vld [vmem:[%s5112_s11 + $0x478] sm:$0xff]  ;;  %v666_v35 = vld [vmem:[%s5112_s11 + $0x588] sm:$0xff] }
  0x7f   : > { %846 = vmatpush.msrb.mxu1 %v651_v38  ;;  %819 = vmatmul.f32.vlgmr.msrb.gmra.mxu0 %v5361_v41  ;;  %v568_v38 = vld [vmem:[%s5112_s11 + $0x278] sm:$0xff]  ;;  %v5424_v40 = vsel %vm428_vm1, %v442_v31, %v443_v32  ;;  %v5532_v31 = vld [vmem:[#allocation9 + $0x68] sm:$0xff] }
  0x80   : > { %877 = vmatmul.f32.vlgmr.msrb.gmra.mxu2 %v5222_v7  ;;  %905 = vmatpush.msrb.mxu3 %v522_v42  ;;  %v644_v7 = vld [vmem:[%s5112_s11 + $0x4d8] sm:$0xff]  ;;  %v414_v42 = vld [vmem:[#allocation2 + $0x10] sm:$0x3] }
  0x81   : > { %977 = vmatpush.msra.mxu2 %v648_v43  ;;  %847 = vmatpush.msrb.mxu1 %v649_v44  ;;  %v630_v43 = vld [vmem:[%s5112_s11 + $0x468] sm:$0xff]  ;;  %v664_v44 = vld [vmem:[%s5112_s11 + $0x578] sm:$0xff] }
  0x82   : > { %919 = vmatpush.msra.mxu0 %v584_v45  ;;  %848 = vmatmul.f32.vlgmr.msrb.gmra.mxu1 %v5370_v46  ;;  %v566_v45 = vld [vmem:[%s5112_s11 + $0x268] sm:$0xff] }
  0x83   : > { %906 = vmatmul.f32.vlgmr.msrb.gmra.mxu3 %v5230_v12  ;;  %978 = vmatpush.msra.mxu2 %v646_v49  ;;  %v578_v12 = vld [vmem:[%s5112_s11 + $0x2c8] sm:$0xff] }
  0x84   : > { %1006 = vmatpush.msra.mxu3 %v680_v50  ;;  %920 = vmatpush.msra.mxu0 %v582_v51  ;;  %v662_v49 = vld [vmem:[%s5112_s11 + $0x568] sm:$0xff]  ;;  %v445_v50 = vrot.slane %v414_v42, 2  ;;  %v415_v51 = vld [vmem:[#allocation2 + $0x40] sm:$0x3]  ;;  %v5552_v42 = vld [vmem:[#allocation9 + $0x30] sm:$0xff] }
  0x85   : > { %948 = vmatpush.msra.mxu1 %v616_v54  ;;  %979 = vmatpush.msra.mxu2 %v644_v7  ;;  %v564_v54 = vld [vmem:[%s5112_s11 + $0x258] sm:$0xff]  ;;  %v598_v7 = vld [vmem:[%s5112_s11 + $0x368] sm:$0xff] }
  0x86   : > { %1007 = vmatpush.msra.mxu3 %v678_v55  ;;  %921 = vmatpush.msra.mxu0 %v580_v59  ;;  %v626_v55 = vld [vmem:[%s5112_s11 + $0x448] sm:$0xff]  ;;  %v447_v59 = vrot.slane %v415_v51, 2 }
  0x87   : > { %949 = vmatpush.msra.mxu1 %v614_v60  ;;  %980 = vmatpush.msra.mxu2 %v642_v61  ;;  %v446_v60 = vsel %vm428_vm1, %v440_v22, %v445_v50  ;;  %v624_v61 = vld [vmem:[%s5112_s11 + $0x438] sm:$0xff]  ;;  %v5570_v50 = vld [vmem:[#allocation9 + $0x18] sm:$0xff] }
  0x88   : > { %1008 = vmatpush.msra.mxu3 %v676_v62  ;;  %922 = vmatpush.msra.mxu0 %v578_v12  ;;  %v658_v62 = vld [vmem:[%s5112_s11 + $0x548] sm:$0xff]  ;;  %v560_v12 = vld [vmem:[%s5112_s11 + $0x238] sm:$0xff]  ;;  %v448_v1 = vsel %vm428_vm1, %v443_v32, %v447_v59 }
  0x89   : > { %950 = vmatpush.msra.mxu1 %v612_v0  ;;  %822 = vmatmul.f32.gmra.mxu0 %v5387_v2  ;;  %v594_v0 = vld [vmem:[%s5112_s11 + $0x348] sm:$0xff]  ;;  %v5510_v22 = vld [vmem:[#allocation9 + $0x90] sm:$0xff] }
  0x8a   : > { %880 = vmatmul.f32.gmra.mxu2 %v5261_v29  ;;  %1009 = vmatpush.msra.mxu3 %v674_v4  ;;  %v636_v29 = vld [vmem:[%s5112_s11 + $0x498] sm:$0xff] }
  0x8b   : > { %981 = vmatpush.msra.mxu2 %v640_v3  ;;  %923 = vmatpush.msra.mxu0 %v576_v6  ;;  %v622_v3 = vld [vmem:[%s5112_s11 + $0x428] sm:$0xff]  ;;  %v656_v4 = vld [vmem:[%s5112_s11 + $0x538] sm:$0xff] }
  0x8c   : > { %951 = vmatpush.msra.mxu1 %v610_v8  ;;  %909 = vmatmul.f32.gmra.mxu3 %v5279_v37  ;;  %v570_v37 = vld [vmem:[%s5112_s11 + $0x288] sm:$0xff]  ;;  %v592_v8 = vld [vmem:[%s5112_s11 + $0x338] sm:$0xff] }
  0x8d   : > { %851 = vmatmul.f32.gmra.mxu1 %v5396_v9  ;;  %982 = vmatpush.msra.mxu2 %v638_v13  ;;  %v558_v6 = vld [vmem:[%s5112_s11 + $0x228] sm:$0xff]  ;;  %v556_v13 = vld [vmem:[%s5112_s11 + $0x218] sm:$0xff] }
  0x8e   : > { %1010 = vmatpush.msra.mxu3 %v672_v14  ;;  %924 = vmatpush.msra.mxu0 %v574_v16  ;;  %v590_v14 = vld [vmem:[%s5112_s11 + $0x328] sm:$0xff]  ;;  %v5534_v32 = vld [vmem:[#allocation9 + $0x50] sm:$0xff] }
  0x8f   : > { %952 = vmatpush.msra.mxu1 %v608_v18  ;;  %983 = vmatpush.msra.mxu2 %v636_v29  ;;  %v618_v16 = vld [vmem:[%s5112_s11 + $0x408] sm:$0xff]  ;;  %v652_v18 = vld [vmem:[%s5112_s11 + $0x518] sm:$0xff] }
  0x90   : > { %1011 = vmatpush.msra.mxu3 %v670_v19  ;;  %925 = vmatpush.msra.mxu0 %v572_v25  ;;  %v554_v29 = vld [vmem:[%s5112_s11 + $0x208] sm:$0xff]  ;;  %v588_v19 = vld [vmem:[%s5112_s11 + $0x318] sm:$0xff] }
  0x91   : > { %953 = vmatpush.msra.mxu1 %v606_v24  ;;  %984 = vmatpush.msra.mxu2 %v634_v26  ;;  %v5518_v25 = vld [vmem:[#allocation9 + $0x80] sm:$0xff]  ;;  %v5520_v24 = vld [vmem:[#allocation9 + $0x88] sm:$0xff]  ;;  %v5524_v26 = vld [vmem:[#allocation9 + $0x70] sm:$0xff] }
  0x92   : > { %1012 = vmatpush.msra.mxu3 %v668_v27  ;;  %926 = vmatpush.msra.mxu0 %v570_v37  ;;  %v5526_v27 = vld [vmem:[#allocation9 + $0x78] sm:$0xff] }
  0x93   : > { %954 = vmatpush.msra.mxu1 %v604_v28  ;;  %825 = vmatmul.f32.gmra.mxu0 %v5415_v33  ;;  %v5530_v28 = vld [vmem:[#allocation9 + $0x60] sm:$0xff] }
  0x94   : > { %883 = vmatmul.f32.gmra.mxu2 %v5300_v52  ;;  %1013 = vmatpush.msra.mxu3 %v666_v35  ;;  %v628_v52 = vld [vmem:[%s5112_s11 + $0x458] sm:$0xff]  ;;  %v5542_v35 = vld [vmem:[#allocation9 + $0x40] sm:$0xff] }
  0x95   : > { %985 = vmatpush.msra.mxu2 %v632_v34  ;;  %927 = vmatpush.msra.mxu0 %v568_v38  ;;  %v5538_v34 = vld [vmem:[#allocation9 + $0x58] sm:$0xff]  ;;  %v5544_v38 = vld [vmem:[#allocation9 + $0x48] sm:$0xff] }
  0x96   : > { %955 = vmatpush.msra.mxu1 %v602_v39  ;;  %912 = vmatmul.f32.gmra.mxu3 %v5308_v58  ;;  %v562_v58 = vld [vmem:[%s5112_s11 + $0x248] sm:$0xff] }
  0x97   : > { %854 = vmatmul.f32.gmra.mxu1 %v5424_v40  ;;  %986 = vmatpush.msra.mxu2 %v630_v43  ;;  %v5554_v43 = vld [vmem:[#allocation9 + $0x38] sm:$0xff] }
  0x98   : > { %1014 = vmatpush.msra.mxu3 %v664_v44  ;;  %928 = vmatpush.msra.mxu0 %v566_v45 }
  0x99   : > { %956 = vmatpush.msra.mxu1 %v600_v48  ;;  %987 = vmatpush.msra.mxu2 %v628_v52  ;;  %v5562_v48 = vld [vmem:[#allocation9 + $0x20] sm:$0xff]  ;;  %v5564_v52 = vld [vmem:[#allocation9 + $0x28] sm:$0xff] }
  0x9a   : > { %1015 = vmatpush.msra.mxu3 %v662_v49  ;;  %929 = vmatpush.msra.mxu0 %v564_v54  ;;  %v5566_v49 = vld [vmem:[#allocation9 + $0x10] sm:$0xff]  ;;  %v5574_v54 = vld [vmem:[#allocation9] sm:$0xff] }
  0x9b   : > { %957 = vmatpush.msra.mxu1 %v598_v7  ;;  %988 = vmatpush.msra.mxu2 %v626_v55  ;;  %v5576_v7 = vld [vmem:[#allocation9 + $0x8] sm:$0xff] }
  0x9c   : > { %1016 = vmatpush.msra.mxu3 %v660_v56  ;;  %930 = vmatpush.msra.mxu0 %v562_v58  ;;  %v5584_v56 = vld [vmem:[#allocation8] ss:$4 sm:$0x3] }
  0x9d   : > { %958 = vmatpush.msra.mxu1 %v596_v57  ;;  %828 = vmatmul.f32.gmra.mxu0 %v446_v60  ;;  %v5593_v57 = vperm.slane %v5584_v56, 0 }
  0x9e   : > { %886 = vmatmul.f32.gmra.mxu2 %v5329_v10  ;;  %1017 = vmatpush.msra.mxu3 %v658_v62  ;;  %v620_v10 = vld [vmem:[%s5112_s11 + $0x418] sm:$0xff] }
  0x9f   : > { %989 = vmatpush.msra.mxu2 %v624_v61  ;;  %931 = vmatpush.msra.mxu0 %v560_v12  ;;  %v5602_v61 = vld [vmem:[#allocation9 + $0x1f0] sm:$0xff]  ;;  %v5608_v12 = vld [vmem:[#allocation9 + $0x1e8] sm:$0xff] }
  0xa0   : > { %959 = vmatpush.msra.mxu1 %v594_v0  ;;  %915 = vmatmul.f32.gmra.mxu3 %v5342_v17  ;;  %v650_v17 = vld [vmem:[%s5112_s11 + $0x508] sm:$0xff] }
  0xa1   : > { %857 = vmatmul.f32.gmra.mxu1 %v448_v1  ;;  %990 = vmatpush.msra.mxu2 %v622_v3  ;;  %v5616_v3 = vld [vmem:[#allocation9 + $0x1e0] sm:$0xff] }
  0xa2   : > { %1018 = vmatpush.msra.mxu3 %v656_v4  ;;  %932 = vmatpush.msra.mxu0 %v558_v6  ;;  %v5619_v4 = vld [vmem:[#allocation9 + $0x1d8] sm:$0xff] }
  0xa3   : > { %960 = vmatpush.msra.mxu1 %v592_v8  ;;  %991 = vmatpush.msra.mxu2 %v620_v10 }
  0xa4   : > { %1019 = vmatpush.msra.mxu3 %v654_v11  ;;  %933 = vmatpush.msra.mxu0 %v556_v13  ;;  %v5629_v11 = vld [vmem:[#allocation9 + $0x1d0] sm:$0xff]  ;;  %v5634_v13 = vld [vmem:[#allocation9 + $0x1c8] sm:$0xff] }
  0xa5   : > { %961 = vmatpush.msra.mxu1 %v590_v14  ;;  %992 = vmatpush.msra.mxu2 %v618_v16  ;;  %v5636_v14 = vld [vmem:[#allocation9 + $0x1c0] sm:$0xff]  ;;  %v5638_v16 = vld [vmem:[#allocation9 + $0x1b8] sm:$0xff] }
  0xa6   : > { %1020 = vmatpush.msra.mxu3 %v652_v18  ;;  %934 = vmatpush.msra.mxu0 %v554_v29  ;;  %v5642_v29 = vld [vmem:[#allocation9 + $0x1b0] sm:$0xff] }
  0xa7   : > { %962 = vmatpush.msra.mxu1 %v588_v19  ;;  %935 = vmatmul.f32.vlgmr.msra.gmra.mxu0 %v5187_v47  ;;  %v5475_v47 = vld [vmem:[#allocation9 + $0xf0] sm:$0xff] }
  0xa8   : > { %993 = vmatmul.f32.vlgmr.msra.gmra.mxu2 %v5361_v41  ;;  %1021 = vmatpush.msra.mxu3 %v650_v17  ;;  %v5500_v41 = vld [vmem:[#allocation9 + $0xb0] sm:$0xff]  ;;  %v5649_v17 = vld [vmem:[#allocation9 + $0x1a8] sm:$0xff] }
  0xa9   : > { %963 = vmatpush.msra.mxu1 %v586_v20  ;;  %1022 = vmatmul.f32.vlgmr.msra.gmra.mxu3 %v5370_v46  ;;  %v5502_v46 = vld [vmem:[#allocation9 + $0xb8] sm:$0xff] }
  0xaa   : > { %964 = vmatmul.f32.vlgmr.msra.gmra.mxu1 %v5195_v53  ;;  %v5477_v53 = vld [vmem:[#allocation9 + $0xf8] sm:$0xff]  ;;  %1107 = vmatpush.msrb.mxu0 %v5475_v47 }
  0xab   : > { %1165 = vmatpush.msrb.mxu2 %v5477_v53  ;;  %1136 = vmatpush.msrb.mxu1 %v5602_v61 }
  0xad   : > { %1137 = vmatpush.msrb.mxu1 %v5616_v3 }
  0xaf   : > { %938 = vmatmul.f32.gmra.mxu0 %v5211_v63  ;;  %v5482_v63 = vld [vmem:[#allocation9 + $0xe0] sm:$0xff]  ;;  %1138 = vmatpush.msrb.mxu1 %v5629_v11 }
  0xb0   : > { %996 = vmatmul.f32.gmra.mxu2 %v5387_v2  ;;  %1108 = vmatpush.msrb.mxu0 %v5482_v63  ;;  %v5506_v2 = vld [vmem:[#allocation9 + $0xa0] sm:$0xff] }
  0xb1   : > { %1025 = vmatmul.f32.gmra.mxu3 %v5396_v9  ;;  %v5508_v9 = vld [vmem:[#allocation9 + $0xa8] sm:$0xff]  ;;  %1139 = vmatpush.msrb.mxu1 %v5636_v14 }
  0xb2   : > { %967 = vmatmul.f32.gmra.mxu1 %v5219_v5  ;;  %v5484_v5 = vld [vmem:[#allocation9 + $0xe8] sm:$0xff] }
  0xb3   : > { %1166 = vmatpush.msrb.mxu2 %v5484_v5  ;;  %1140 = vmatpush.msrb.mxu1 %v5642_v29 }
  0xb7   : > { %941 = vmatmul.f32.gmra.mxu0 %v5235_v15  ;;  %v5486_v15 = vld [vmem:[#allocation9 + $0xd0] sm:$0xff] }
  0xb8   : > { %999 = vmatmul.f32.gmra.mxu2 %v5415_v33  ;;  %1109 = vmatpush.msrb.mxu0 %v5486_v15 }
  0xb9   : > { %1028 = vmatmul.f32.gmra.mxu3 %v5424_v40 }
  0xba   : > { %970 = vmatmul.f32.gmra.mxu1 %v5245_v21  ;;  %v5490_v21 = vld [vmem:[#allocation9 + $0xd8] sm:$0xff] }
  0xbb   : > { %1167 = vmatpush.msrb.mxu2 %v5490_v21 }
  0xbf   : > { %944 = vmatmul.f32.gmra.mxu0 %v5264_v30  ;;  %v5494_v30 = vld [vmem:[#allocation9 + $0xc0] sm:$0xff] }
  0xc0   : > { %1002 = vmatmul.f32.gmra.mxu2 %v446_v60  ;;  %1110 = vmatpush.msrb.mxu0 %v5494_v30  ;;  %v5599_v60 = vld [vmem:[#allocation9 + $0x1f8] sm:$0xff] }
  0xc1   : > { %1031 = vmatmul.f32.gmra.mxu3 %v448_v1 }
  0xc2   : > { %973 = vmatmul.f32.gmra.mxu1 %v5272_v36  ;;  %v5496_v36 = vld [vmem:[#allocation9 + $0xc8] sm:$0xff]  ;;  %1111 = vmatpush.msrb.mxu0 %v5500_v41 }
  0xc3   : > { %1168 = vmatpush.msrb.mxu2 %v5496_v36  ;;  %1194 = vmatpush.msrb.mxu3 %v5599_v60 }
  0xc4   : > { %1112 = vmatpush.msrb.mxu0 %v5506_v2 }
  0xc5   : > { %1169 = vmatpush.msrb.mxu2 %v5502_v46  ;;  %1195 = vmatpush.msrb.mxu3 %v5608_v12 }
  0xc6   : > { %1113 = vmatpush.msrb.mxu0 %v5510_v22 }
  0xc7   : > { %1170 = vmatpush.msrb.mxu2 %v5508_v9  ;;  %1196 = vmatpush.msrb.mxu3 %v5619_v4 }
  0xc8   : > { %1114 = vmatpush.msrb.mxu0 %v5518_v25 }
  0xc9   : > { %1171 = vmatpush.msrb.mxu2 %v5514_v23  ;;  %1197 = vmatpush.msrb.mxu3 %v5634_v13 }
  0xca   : > { %1115 = vmatpush.msrb.mxu0 %v5524_v26 }
  0xcb   : > { %1172 = vmatpush.msrb.mxu2 %v5520_v24  ;;  %1198 = vmatpush.msrb.mxu3 %v5638_v16 }
  0xcc   : > { %1116 = vmatpush.msrb.mxu0 %v5530_v28 }
  0xcd   : > { %1173 = vmatpush.msrb.mxu2 %v5526_v27  ;;  %1199 = vmatpush.msrb.mxu3 %v5649_v17 }
  0xce   : > { %1117 = vmatpush.msrb.mxu0 %v5534_v32 }
  0xcf   : > { %1174 = vmatpush.msrb.mxu2 %v5532_v31 }
  0xd0   : > { %1118 = vmatpush.msrb.mxu0 %v5542_v35 }
  0xd1   : > { %1175 = vmatpush.msrb.mxu2 %v5538_v34 }
  0xd2   : > { %1119 = vmatpush.msrb.mxu0 %v5552_v42 }
  0xd3   : > { %1176 = vmatpush.msrb.mxu2 %v5544_v38 }
  0xd4   : > { %1120 = vmatpush.msrb.mxu0 %v5562_v48 }
  0xd5   : > { %v704_v37 = vpop.f32.mrf.mxu0  ;;  %1177 = vmatpush.msrb.mxu2 %v5554_v43 }
  0xd6   : > { %1121 = vmatpush.msrb.mxu0 %v5566_v49  ;;  %v705_v0 = vadd.f32 %v704_v37, %v5593_v57 }
  0xd7   : > { %v733_v33 = vpop.f32.mrf.mxu1  ;;  %1178 = vmatpush.msrb.mxu2 %v5564_v52 }
  0xd8   : > { %1122 = vmatpush.msrb.mxu0 %v5574_v54  ;;  %v734_v8 = vadd.f32 %v733_v33, %v705_v0  ;;  %v5710_v33 = vld [vmem:[#allocation9 + $0x158] sm:$0xff]  ;;  %v5760_v0 = vld [vmem:[#allocation9 + $0x100] sm:$0xff] }
  0xd9   : > { %1179 = vmatpush.msrb.mxu2 %v5570_v50 }
  0xda   : > { %v5546_v39 = vpop.f32.mrf.mxu2  ;;  %1231 = vmatpush.msra.mxu0 %v5475_v47 }
  0xdb   : > { %1180 = vmatpush.msrb.mxu2 %v5576_v7  ;;  %v763_v18 = vadd.f32 %v5546_v39, %v734_v8 }
  0xdc   : > { %1232 = vmatpush.msra.mxu0 %v5482_v63  ;;  %v5661_v63 = vld [vmem:[#allocation9 + $0x1a0] sm:$0xff] }
  0xdd   : > { %1289 = vmatpush.msra.mxu2 %v5477_v53  ;;  %1141 = vmatpush.msrb.mxu1 %v5661_v63 }
  0xde   : > { %v5550_v40 = vpop.f32.mrf.mxu3  ;;  %v5556_v44 = vpop.f32.mrf.mxu0  ;;  %1233 = vmatpush.msra.mxu0 %v5486_v15 }
  0xdf   : > { %1290 = vmatpush.msra.mxu2 %v5484_v5  ;;  %v708_v20 = vadd.f32 %v5556_v44, %v5593_v57  ;;  %v792_v47 = vadd.f32 %v5550_v40, %v763_v18  ;;  %v5663_v5 = vld [vmem:[#allocation9 + $0x198] sm:$0xff]  ;;  %v5719_v40 = vld [vmem:[#allocation9 + $0x148] sm:$0xff] }
  0xe0   : > { %1234 = vmatpush.msra.mxu0 %v5494_v30  ;;  %1200 = vmatpush.msrb.mxu3 %v5663_v5 }
  0xe1   : > { %1291 = vmatpush.msra.mxu2 %v5490_v21 }
  0xe2   : > { %v5560_v45 = vpop.f32.mrf.mxu1  ;;  %1235 = vmatpush.msra.mxu0 %v5500_v41 }
  0xe3   : > { %1292 = vmatpush.msra.mxu2 %v5496_v36  ;;  %v737_v21 = vadd.f32 %v5560_v45, %v708_v20  ;;  %v5670_v36 = vld [vmem:[#allocation9 + $0x190] sm:$0xff] }
  0xe4   : > { %1236 = vmatpush.msra.mxu0 %v5506_v2  ;;  %1142 = vmatpush.msrb.mxu1 %v5670_v36  ;;  %v5677_v2 = vld [vmem:[#allocation9 + $0x180] sm:$0xff]  ;;  %v5729_v45 = vld [vmem:[#allocation9 + $0x130] sm:$0xff] }
  0xe5   : > { %v5572_v51 = vpop.f32.mrf.mxu2  ;;  %1293 = vmatpush.msra.mxu2 %v5502_v46  ;;  %v5675_v46 = vld [vmem:[#allocation9 + $0x188] sm:$0xff] }
  0xe6   : > { %1237 = vmatpush.msra.mxu0 %v5510_v22  ;;  %1201 = vmatpush.msrb.mxu3 %v5675_v46  ;;  %v5682_v22 = vld [vmem:[#allocation9 + $0x178] sm:$0xff] }
  0xe7   : > { %v5580_v55 = vpop.f32.mrf.mxu3  ;;  %1294 = vmatpush.msra.mxu2 %v5508_v9  ;;  %1143 = vmatpush.msrb.mxu1 %v5677_v2 }
  0xe8   : > { %v5586_v58 = vpop.f32.mrf.mxu0  ;;  %1238 = vmatpush.msra.mxu0 %v5518_v25  ;;  %v5685_v25 = vld [vmem:[#allocation9 + $0x170] sm:$0xff]  ;;  %1202 = vmatpush.msrb.mxu3 %v5682_v22 }
  0xe9   : > { %1295 = vmatpush.msra.mxu2 %v5514_v23  ;;  %v766_v23 = vadd.f32 %v5572_v51, %v737_v21  ;;  %1144 = vmatpush.msrb.mxu1 %v5685_v25  ;;  %v711_v37 = vadd.f32 %v5586_v58, %v5593_v57  ;;  %v5749_v58 = vld [vmem:[#allocation9 + $0x110] sm:$0xff] }
  0xea   : > { %1239 = vmatpush.msra.mxu0 %v5524_v26 }
  0xeb   : > { %1296 = vmatpush.msra.mxu2 %v5520_v24 }
  0xec   : > { %v5595_v59 = vpop.f32.mrf.mxu1  ;;  %1240 = vmatpush.msra.mxu0 %v5530_v28  ;;  %v5699_v28 = vld [vmem:[#allocation9 + $0x160] sm:$0xff] }
  0xed   : > { %1297 = vmatpush.msra.mxu2 %v5526_v27  ;;  %v5695_v27 = vld [vmem:[#allocation9 + $0x168] sm:$0xff]  ;;  %1145 = vmatpush.msrb.mxu1 %v5699_v28 }
  0xee   : > { %1241 = vmatpush.msra.mxu0 %v5534_v32  ;;  %1203 = vmatpush.msrb.mxu3 %v5695_v27 }
  0xef   : > { %v5604_v62 = vpop.f32.mrf.mxu2  ;;  %1298 = vmatpush.msra.mxu2 %v5532_v31  ;;  %v795_v31 = vadd.f32 %v5580_v55, %v766_v23 }
  0xf0   : > { %1242 = vmatpush.msra.mxu0 %v5542_v35  ;;  %1204 = vmatpush.msrb.mxu3 %v5710_v33 }
  0xf1   : > { %v5614_v1 = vpop.f32.mrf.mxu3  ;;  %1299 = vmatpush.msra.mxu2 %v5538_v34  ;;  %v5712_v34 = vld [vmem:[#allocation9 + $0x150] sm:$0xff] }
  0xf2   : > { %v5621_v6 = vpop.f32.mrf.mxu0  ;;  %1243 = vmatpush.msra.mxu0 %v5552_v42  ;;  %1146 = vmatpush.msrb.mxu1 %v5712_v34  ;;  %v5721_v42 = vld [vmem:[#allocation9 + $0x140] sm:$0xff] }
  0xf3   : > { %1300 = vmatpush.msra.mxu2 %v5544_v38  ;;  %v740_v38 = vadd.f32 %v5595_v59, %v711_v37  ;;  %1205 = vmatpush.msrb.mxu3 %v5719_v40  ;;  %v714_v55 = vadd.f32 %v5621_v6, %v5593_v57  ;;  %v5758_v57 = vld [vmem:[#allocation9 + $0x108] sm:$0xff] }
  0xf4   : > { %1244 = vmatpush.msra.mxu0 %v5562_v48  ;;  %1147 = vmatpush.msrb.mxu1 %v5721_v42 }
  0xf5   : > { %1301 = vmatpush.msra.mxu2 %v5554_v43  ;;  %v5724_v43 = vld [vmem:[#allocation9 + $0x138] sm:$0xff] }
  0xf6   : > { %v5627_v10 = vpop.f32.mrf.mxu1  ;;  %1245 = vmatpush.msra.mxu0 %v5566_v49  ;;  %1206 = vmatpush.msrb.mxu3 %v5724_v43  ;;  %v5735_v49 = vld [vmem:[#allocation9 + $0x128] sm:$0xff] }
  0xf7   : > { %1302 = vmatpush.msra.mxu2 %v5564_v52  ;;  %v769_v52 = vadd.f32 %v5604_v62, %v740_v38  ;;  %1148 = vmatpush.msrb.mxu1 %v5729_v45  ;;  %v743_v8 = vadd.f32 %v5627_v10, %v714_v55 }
  0xf8   : > { %1246 = vmatpush.msra.mxu0 %v5574_v54  ;;  %1207 = vmatpush.msrb.mxu3 %v5735_v49 }
  0xf9   : > { %v5645_v19 = vpop.f32.mrf.mxu2  ;;  %1303 = vmatpush.msra.mxu2 %v5570_v50  ;;  %v5737_v50 = vld [vmem:[#allocation9 + $0x120] sm:$0xff]  ;;  %v798_v59 = vadd.f32 %v5614_v1, %v769_v52 }
  0xfa   : > { %1149 = vmatpush.msrb.mxu1 %v5737_v50 }
  0xfb   : > { %v5658_v53 = vpop.f32.mrf.mxu3  ;;  %1304 = vmatpush.msra.mxu2 %v5576_v7  ;;  %v5747_v7 = vld [vmem:[#allocation9 + $0x118] sm:$0xff] }
  0xfc   : > { %v820_v15 = vpop.f32.mrf.mxu0  ;;  %1208 = vmatpush.msrb.mxu3 %v5747_v7  ;;  %1150 = vmatpush.msrb.mxu1 %v5749_v58 }
  0xfd   : > { %v821_v30 = vadd.f32 %v820_v15, %v792_v47  ;;  %v772_v47 = vadd.f32 %v5645_v19, %v743_v8 }
  0xfe   : > { %1209 = vmatpush.msrb.mxu3 %v5758_v57  ;;  %1151 = vmatpush.msrb.mxu1 %v5760_v0 }
  0xff   : > { %v849_v41 = vpop.f32.mrf.mxu1 }
 0x100   : > { %v850_v9 = vadd.f32 %v849_v41, %v821_v30  ;;  %1318 = vmatpush.msra.mxu3 %v5599_v60  ;;  %1260 = vmatpush.msra.mxu1 %v5602_v61  ;;  %v801_v60 = vadd.f32 %v5658_v53, %v772_v47 }
 0x102   : > { %v5689_v24 = vmax.f32 %v850_v9, 0.0  ;;  %1319 = vmatpush.msra.mxu3 %v5608_v12  ;;  %1261 = vmatpush.msra.mxu1 %v5616_v3  ;;  %v5780_v3 = vperm.slane %v5584_v56, 1 }
 0x103   : > { %v5691_v26 = vpop.f32.mrf.mxu2 }
 0x104   : > { %1123 = vmatmul.f32.vlgmr.msrb.gmra.mxu0 %v5689_v24  ;;  %1181 = vmatmul.f32.vlgmr.msrb.gmra.mxu2 %v5689_v24  ;;  %v1223_v21 = vmul.f32 %v5689_v24, %v5689_v24 }
 0x105   : > { %1320 = vmatpush.msra.mxu3 %v5619_v4  ;;  %1262 = vmatpush.msra.mxu1 %v5629_v11 }
 0x106   : > { %v5706_v32 = vpop.f32.mrf.mxu3  ;;  %v823_v35 = vpop.f32.mrf.mxu0 }
 0x107   : > { %v824_v39 = vadd.f32 %v823_v35, %v795_v31  ;;  %1321 = vmatpush.msra.mxu3 %v5634_v13  ;;  %1263 = vmatpush.msra.mxu1 %v5636_v14  ;;  %v879_v13 = vadd.f32 %v5691_v26, %v5780_v3 }
 0x109   : > { %1322 = vmatpush.msra.mxu3 %v5638_v16  ;;  %1264 = vmatpush.msra.mxu1 %v5642_v29  ;;  %v908_v16 = vadd.f32 %v5706_v32, %v879_v13 }
 0x10a   : > { %v852_v44 = vpop.f32.mrf.mxu1 }
 0x10b   : > { %v853_v48 = vadd.f32 %v852_v44, %v824_v39  ;;  %1323 = vmatpush.msra.mxu3 %v5649_v17  ;;  %1265 = vmatpush.msra.mxu1 %v5661_v63 }
 0x10d   : > { %v5739_v51 = vmax.f32 %v853_v48, 0.0  ;;  %v5741_v54 = vpop.f32.mrf.mxu2  ;;  %1324 = vmatpush.msra.mxu3 %v5663_v5  ;;  %1266 = vmatpush.msra.mxu1 %v5670_v36 }
 0x10e   : > { %v882_v5 = vadd.f32 %v5741_v54, %v5780_v3 }
 0x10f   : > { %1126 = vmatmul.f32.gmra.mxu0 %v5739_v51  ;;  %1184 = vmatmul.f32.gmra.mxu2 %v5739_v51  ;;  %v5754_v62 = vpop.f32.mrf.mxu3  ;;  %v1225_v37 = vmul.f32 %v5739_v51, %v5739_v51 }
 0x110   : > { %v826_v6 = vpop.f32.mrf.mxu0  ;;  %1325 = vmatpush.msra.mxu3 %v5675_v46  ;;  %1267 = vmatpush.msra.mxu1 %v5677_v2  ;;  %v911_v41 = vadd.f32 %v5754_v62, %v882_v5 }
 0x111   : > { %v827_v18 = vadd.f32 %v826_v6, %v798_v59 }
 0x112   : > { %1326 = vmatpush.msra.mxu3 %v5682_v22  ;;  %1268 = vmatpush.msra.mxu1 %v5685_v25 }
 0x114   : > { %v855_v1 = vpop.f32.mrf.mxu1  ;;  %1327 = vmatpush.msra.mxu3 %v5695_v27  ;;  %1269 = vmatpush.msra.mxu1 %v5699_v28 }
 0x115   : > { %v856_v20 = vadd.f32 %v855_v1, %v827_v18 }
 0x116   : > { %1328 = vmatpush.msra.mxu3 %v5710_v33  ;;  %1270 = vmatpush.msra.mxu1 %v5712_v34 }
 0x117   : > { %v5770_v15 = vmax.f32 %v856_v20, 0.0  ;;  %v884_v10 = vpop.f32.mrf.mxu2 }
 0x118   : > { %1329 = vmatpush.msra.mxu3 %v5719_v40  ;;  %1271 = vmatpush.msra.mxu1 %v5721_v42  ;;  %v885_v26 = vadd.f32 %v884_v10, %v5780_v3 }
 0x119   : > { %1129 = vmatmul.f32.gmra.mxu0 %v5770_v15  ;;  %1187 = vmatmul.f32.gmra.mxu2 %v5770_v15  ;;  %v913_v61 = vpop.f32.mrf.mxu3  ;;  %v1227_v44 = vmul.f32 %v5770_v15, %v5770_v15 }
 0x11a   : > { %v829_v12 = vpop.f32.mrf.mxu0  ;;  %1330 = vmatpush.msra.mxu3 %v5724_v43  ;;  %1272 = vmatpush.msra.mxu1 %v5729_v45  ;;  %v914_v32 = vadd.f32 %v913_v61, %v885_v26 }
 0x11b   : > { %v830_v19 = vadd.f32 %v829_v12, %v801_v60 }
 0x11c   : > { %1331 = vmatpush.msra.mxu3 %v5735_v49  ;;  %1273 = vmatpush.msra.mxu1 %v5737_v50 }
 0x11e   : > { %v858_v4 = vpop.f32.mrf.mxu1  ;;  %1332 = vmatpush.msra.mxu3 %v5747_v7  ;;  %1274 = vmatpush.msra.mxu1 %v5749_v58 }
 0x11f   : > { %v859_v11 = vadd.f32 %v858_v4, %v830_v19 }
 0x120   : > { %1333 = vmatpush.msra.mxu3 %v5758_v57  ;;  %1275 = vmatpush.msra.mxu1 %v5760_v0 }
 0x121   : > { %v5790_v56 = vmax.f32 %v859_v11, 0.0  ;;  %v887_v14 = vpop.f32.mrf.mxu2 }
 0x122   : > { %v888_v42 = vadd.f32 %v887_v14, %v5780_v3 }
 0x123   : > { %1132 = vmatmul.f32.gmra.mxu0 %v5790_v56  ;;  %1190 = vmatmul.f32.gmra.mxu2 %v5790_v56  ;;  %v916_v29 = vpop.f32.mrf.mxu3  ;;  %v1229_v62 = vmul.f32 %v5790_v56, %v5790_v56 }
 0x124   : > { %v936_v17 = vpop.f32.mrf.mxu0  ;;  %v917_v52 = vadd.f32 %v916_v29, %v888_v42 }
 0x125   : > { %v937_v53 = vadd.f32 %v936_v17, %v908_v16 }
 0x127   : > { %v965_v63 = vpop.f32.mrf.mxu1 }
 0x128   : > { %v966_v30 = vadd.f32 %v965_v63, %v937_v53 }
 0x12b   : > { %v994_v36 = vpop.f32.mrf.mxu2  ;;  %1247 = vmatmul.f32.vlgmr.msra.gmra.mxu0 %v1223_v21  ;;  %1305 = vmatmul.f32.vlgmr.msra.gmra.mxu2 %v1223_v21 }
 0x12c   : > { %v995_v46 = vadd.f32 %v994_v36, %v966_v30  ;;  %v939_v2 = vpop.f32.mrf.mxu0  ;;  %v1023_v9 = vpop.f32.mrf.mxu3 }
 0x12d   : > { %v940_v22 = vadd.f32 %v939_v2, %v911_v41 }
 0x12e   : > { %v1024_v23 = vadd.f32 %v1023_v9, %v995_v46 }
 0x12f   : > { %v968_v25 = vpop.f32.mrf.mxu1 }
 0x130   : > { %v5815_v27 = vmax.f32 %v1024_v23, 0.0  ;;  %v969_v28 = vadd.f32 %v968_v25, %v940_v22 }
 0x132   : > { %1152 = vmatmul.f32.vlgmr.msrb.gmra.mxu1 %v5815_v27  ;;  %1210 = vmatmul.f32.vlgmr.msrb.gmra.mxu3 %v5815_v27  ;;  %v1224_v20 = vmul.f32 %v5815_v27, %v5815_v27 }
 0x133   : > { %v997_v31 = vpop.f32.mrf.mxu2  ;;  %1250 = vmatmul.f32.gmra.mxu0 %v1225_v37  ;;  %1308 = vmatmul.f32.gmra.mxu2 %v1225_v37 }
 0x134   : > { %v998_v33 = vadd.f32 %v997_v31, %v969_v28  ;;  %v942_v34 = vpop.f32.mrf.mxu0  ;;  %v1026_v35 = vpop.f32.mrf.mxu3 }
 0x135   : > { %v943_v38 = vadd.f32 %v942_v34, %v914_v32  ;;  %v4360_v32 = vld [vmem:[%s5112_s11 + $0x8f0] sm:$0xff] }
 0x136   : > { %v1027_v39 = vadd.f32 %v1026_v35, %v998_v33  ;;  %1843 = vmatpush.msrb.mxu2 %v4360_v32 }
 0x137   : > { %v971_v40 = vpop.f32.mrf.mxu1 }
 0x138   : > { %v5826_v43 = vmax.f32 %v1027_v39, 0.0  ;;  %v972_v45 = vadd.f32 %v971_v40, %v943_v38  ;;  %v4358_v39 = vld [vmem:[%s5112_s11 + $0x8e0] sm:$0xff] }
 0x139   : > { %1844 = vmatpush.msrb.mxu2 %v4358_v39  ;;  %v4340_v39 = vld [vmem:[%s5112_s11 + $0x850] sm:$0xff] }
 0x13a   : > { %1155 = vmatmul.f32.gmra.mxu1 %v5826_v43  ;;  %1213 = vmatmul.f32.gmra.mxu3 %v5826_v43  ;;  %v1226_v47 = vmul.f32 %v5826_v43, %v5826_v43 }
 0x13b   : > { %v1000_v48 = vpop.f32.mrf.mxu2  ;;  %1253 = vmatmul.f32.gmra.mxu0 %v1227_v44  ;;  %1311 = vmatmul.f32.gmra.mxu2 %v1227_v44 }
 0x13c   : > { %v1001_v49 = vadd.f32 %v1000_v48, %v972_v45  ;;  %v945_v50 = vpop.f32.mrf.mxu0  ;;  %v1029_v54 = vpop.f32.mrf.mxu3  ;;  %v4356_v45 = vld [vmem:[%s5112_s11 + $0x8d0] sm:$0xff] }
 0x13d   : > { %v946_v55 = vadd.f32 %v945_v50, %v917_v52  ;;  %1845 = vmatpush.msrb.mxu2 %v4356_v45  ;;  %v4392_v50 = vld [vmem:[%s5112_s11 + $0x9f0] sm:$0xff] }
 0x13e   : > { %v1030_v7 = vadd.f32 %v1029_v54, %v1001_v49  ;;  %v4354_v49 = vld [vmem:[%s5112_s11 + $0x8c0] sm:$0xff]  ;;  %1872 = vmatpush.msrb.mxu3 %v4392_v50 }
 0x13f   : > { %v974_v58 = vpop.f32.mrf.mxu1  ;;  %1846 = vmatpush.msrb.mxu2 %v4354_v49 }
 0x140   : > { %v5832_v59 = vmax.f32 %v1030_v7, 0.0  ;;  %v975_v57 = vadd.f32 %v974_v58, %v946_v55  ;;  %v4352_v58 = vld [vmem:[%s5112_s11 + $0x8b0] sm:$0xff] }
 0x141   : > { %1847 = vmatpush.msrb.mxu2 %v4352_v58 }
 0x142   : > { %1158 = vmatmul.f32.gmra.mxu1 %v5832_v59  ;;  %1216 = vmatmul.f32.gmra.mxu3 %v5832_v59  ;;  %v1228_v10 = vmul.f32 %v5832_v59, %v5832_v59 }
 0x143   : > { %v1003_v0 = vpop.f32.mrf.mxu2  ;;  %1256 = vmatmul.f32.gmra.mxu0 %v1229_v62  ;;  %1314 = vmatmul.f32.gmra.mxu2 %v1229_v62  ;;  %v4390_v62 = vld [vmem:[%s5112_s11 + $0x9e0] sm:$0xff] }
 0x144   : > { %v1004_v6 = vadd.f32 %v1003_v0, %v975_v57  ;;  %v1032_v8 = vpop.f32.mrf.mxu3  ;;  %1873 = vmatpush.msrb.mxu3 %v4390_v62  ;;  %v4320_v62 = vld [vmem:[%s5112_s11 + $0x7b0] sm:$0xff] }
 0x146   : > { %v1033_v18 = vadd.f32 %v1032_v8, %v1004_v6  ;;  %v4296_v6 = vld [vmem:[%s5112_s11 + $0x6f0] sm:$0xff]  ;;  %v4350_v8 = vld [vmem:[%s5112_s11 + $0x8a0] sm:$0xff] }
 0x147   : > { %1785 = vmatpush.msrb.mxu0 %v4296_v6  ;;  %1848 = vmatpush.msrb.mxu2 %v4350_v8  ;;  %v4374_v6 = vld [vmem:[%s5112_s11 + $0x960] sm:$0xff] }
 0x148   : > { %v5838_v1 = vmax.f32 %v1033_v18, 0.0  ;;  %v4388_v18 = vld [vmem:[%s5112_s11 + $0x9d0] sm:$0xff] }
 0x149   : > { %1874 = vmatpush.msrb.mxu3 %v4388_v18 }
 0x14a   : > { %1161 = vmatmul.f32.gmra.mxu1 %v5838_v1  ;;  %1219 = vmatmul.f32.gmra.mxu3 %v5838_v1  ;;  %v1230_v60 = vmul.f32 %v5838_v1, %v5838_v1 }
 0x152   : > { %1276 = vmatmul.f32.vlgmr.msra.gmra.mxu1 %v1224_v20  ;;  %1334 = vmatmul.f32.vlgmr.msra.gmra.mxu3 %v1224_v20 }
 0x15a   : > { %1279 = vmatmul.f32.gmra.mxu1 %v1226_v47  ;;  %1337 = vmatmul.f32.gmra.mxu3 %v1226_v47 }
 0x162   : > { %1282 = vmatmul.f32.gmra.mxu1 %v1228_v10  ;;  %1340 = vmatmul.f32.gmra.mxu3 %v1228_v10  ;;  %v4294_v10 = vld [vmem:[%s5112_s11 + $0x6e0] sm:$0xff] }
 0x163   : > { %1786 = vmatpush.msrb.mxu0 %v4294_v10  ;;  %v4280_v10 = vld [vmem:[%s5112_s11 + $0x670] sm:$0xff] }
 0x16a   : > { %1285 = vmatmul.f32.gmra.mxu1 %v1230_v60  ;;  %1343 = vmatmul.f32.gmra.mxu3 %v1230_v60  ;;  %v4348_v60 = vld [vmem:[%s5112_s11 + $0x890] sm:$0xff] }
 0x16b   : > { %1849 = vmatpush.msrb.mxu2 %v4348_v60  ;;  %v4334_v60 = vld [vmem:[%s5112_s11 + $0x820] sm:$0xff] }
 0x181   : > { %v1124_v61 = vpop.f32.mrf.mxu0 }
 0x187   : > { %v1182_v12 = vpop.f32.mrf.mxu2 }
 0x18c   : > { %v1127_v3 = vpop.f32.mrf.mxu0 }
 0x192   : > { %v1185_v4 = vpop.f32.mrf.mxu2 }
 0x196   : > { %v1130_v11 = vpop.f32.mrf.mxu0 }
 0x19c   : > { %v1188_v16 = vpop.f32.mrf.mxu2 }
 0x1a0   : > { %v1133_v17 = vpop.f32.mrf.mxu0 }
 0x1a6   : > { %v1191_v63 = vpop.f32.mrf.mxu2 }
 0x1a8   : > { %v1248_v30 = vpop.f32.mrf.mxu0 }
 0x1ae   : > { %v5850_v41 = vpop.f32.mrf.mxu2 }
 0x1af   : > { %v1153_v19 = vpop.f32.mrf.mxu1 }
 0x1b0   : > { %v1154_v9 = vadd.f32 %v1153_v19, %v1124_v61  ;;  %v1251_v23 = vpop.f32.mrf.mxu0  ;;  %v4386_v61 = vld [vmem:[%s5112_s11 + $0x9c0] sm:$0xff] }
 0x1b1   : > { %1875 = vmatpush.msrb.mxu3 %v4386_v61  ;;  %v4372_v61 = vld [vmem:[%s5112_s11 + $0x950] sm:$0xff] }
 0x1b5   : > { %v1211_v13 = vpop.f32.mrf.mxu3 }
 0x1b6   : > { %v1212_v33 = vadd.f32 %v1211_v13, %v1182_v12  ;;  %v1309_v40 = vpop.f32.mrf.mxu2  ;;  %v4346_v13 = vld [vmem:[%s5112_s11 + $0x880] sm:$0xff] }
 0x1b7   : > { %v1156_v14 = vpop.f32.mrf.mxu1  ;;  %1850 = vmatpush.msrb.mxu2 %v4346_v13  ;;  %v4332_v13 = vld [vmem:[%s5112_s11 + $0x810] sm:$0xff] }
 0x1b8   : > { %v1157_v46 = vadd.f32 %v1156_v14, %v1127_v3  ;;  %v1254_v54 = vpop.f32.mrf.mxu0  ;;  %v4384_v14 = vld [vmem:[%s5112_s11 + $0x9b0] sm:$0xff] }
 0x1b9   : > { %1876 = vmatpush.msrb.mxu3 %v4384_v14  ;;  %v4370_v14 = vld [vmem:[%s5112_s11 + $0x940] sm:$0xff] }
 0x1ba   : > { %v1347_v25 = vadd.f32 %v1157_v46, %v1154_v9  ;;  %v4382_v46 = vld [vmem:[%s5112_s11 + $0x9a0] sm:$0xff] }
 0x1bb   : > { %1877 = vmatpush.msrb.mxu3 %v4382_v46 }
 0x1bd   : > { %v1214_v29 = vpop.f32.mrf.mxu3 }
 0x1be   : > { %v1215_v37 = vadd.f32 %v1214_v29, %v1185_v4  ;;  %v1312_v12 = vpop.f32.mrf.mxu2 }
 0x1bf   : > { %v1159_v53 = vpop.f32.mrf.mxu1 }
 0x1c0   : > { %v1160_v22 = vadd.f32 %v1159_v53, %v1130_v11  ;;  %v1356_v42 = vadd.f32 %v1215_v37, %v1212_v33  ;;  %v4292_v11 = vld [vmem:[%s5112_s11 + $0x6d0] sm:$0xff] }
 0x1c1   : > { %1787 = vmatpush.msrb.mxu0 %v4292_v11  ;;  %v4328_v53 = vld [vmem:[%s5112_s11 + $0x7f0] sm:$0xff] }
 0x1c2   : > { %v1348_v28 = vadd.f32 %v1347_v25, %v1160_v22  ;;  %1814 = vmatpush.msrb.mxu1 %v4328_v53  ;;  %v4288_v25 = vld [vmem:[%s5112_s11 + $0x6b0] sm:$0xff] }
 0x1c3   : > { %v4368_v53 = vld [vmem:[%s5112_s11 + $0x930] sm:$0xff] }
 0x1c5   : > { %v1217_v5 = vpop.f32.mrf.mxu3 }
 0x1c6   : > { %v1218_v34 = vadd.f32 %v1217_v5, %v1188_v16  ;;  %v4344_v5 = vld [vmem:[%s5112_s11 + $0x870] sm:$0xff] }
 0x1c7   : > { %v1162_v21 = vpop.f32.mrf.mxu1  ;;  %1851 = vmatpush.msrb.mxu2 %v4344_v5 }
 0x1c8   : > { %v1163_v26 = vadd.f32 %v1162_v21, %v1133_v17  ;;  %v1357_v48 = vadd.f32 %v1356_v42, %v1218_v34  ;;  %v1257_v21 = vpop.f32.mrf.mxu0 }
 0x1ca   : > { %v1349_v35 = vadd.f32 %v1348_v28, %v1163_v26  ;;  %v4342_v26 = vld [vmem:[%s5112_s11 + $0x860] sm:$0xff]  ;;  %v4380_v28 = vld [vmem:[%s5112_s11 + $0x990] sm:$0xff] }
 0x1cb   : > { %1852 = vmatpush.msrb.mxu2 %v4342_v26  ;;  %1878 = vmatpush.msrb.mxu3 %v4380_v28  ;;  %v4310_v28 = vld [vmem:[%s5112_s11 + $0x760] sm:$0xff] }
 0x1cc   : > { %v1350_v52 = vrot.slane %v1349_v35, 4 }
 0x1cd   : > { %v1220_v36 = vpop.f32.mrf.mxu3  ;;  %1853 = vmatpush.msrb.mxu2 %v4340_v39 }
 0x1ce   : > { %v1221_v44 = vadd.f32 %v1220_v36, %v1191_v63  ;;  %v1351_v57 = vadd.f32 %v1350_v52, %v1349_v35  ;;  %v4290_v63 = vld [vmem:[%s5112_s11 + $0x6c0] sm:$0xff]  ;;  %v4324_v35 = vld [vmem:[%s5112_s11 + $0x7d0] sm:$0xff]  ;;  %v1315_v52 = vpop.f32.mrf.mxu2 }
 0x1cf   : > { %v1277_v2 = vpop.f32.mrf.mxu1  ;;  %1788 = vmatpush.msrb.mxu0 %v4290_v63 }
 0x1d0   : > { %v1358_v55 = vadd.f32 %v1357_v48, %v1221_v44  ;;  %v1352_v3 = vrot.slane %v1351_v57, 2  ;;  %v1278_v19 = vadd.f32 %v1277_v2, %v1248_v30  ;;  %v4338_v48 = vld [vmem:[%s5112_s11 + $0x840] sm:$0xff] }
 0x1d1   : > { %1789 = vmatpush.msrb.mxu0 %v4288_v25  ;;  %1854 = vmatpush.msrb.mxu2 %v4338_v48 }
 0x1d2   : > { %v1359_v20 = vrot.slane %v1358_v55, 4  ;;  %v1353_v30 = vadd.f32 %v1352_v3, %v1351_v57  ;;  %v4282_v57 = vld [vmem:[%s5112_s11 + $0x680] sm:$0xff] }
 0x1d3   : > { %v4278_v3 = vld [vmem:[%s5112_s11 + $0x660] sm:$0xff] }
 0x1d4   : > { %v1360_v16 = vadd.f32 %v1359_v20, %v1358_v55  ;;  %v1354_v42 = vrot.slane %v1353_v30, 1 }
 0x1d5   : > { %v5852_v31 = vpop.f32.mrf.mxu3 }
 0x1d6   : > { %v1361_v37 = vrot.slane %v1360_v16, 2  ;;  %v1336_v32 = vadd.f32 %v5852_v31, %v5850_v41  ;;  %v4322_v41 = vld [vmem:[%s5112_s11 + $0x7c0] sm:$0xff]  ;;  %v4284_v31 = vld [vmem:[%s5112_s11 + $0x690] sm:$0xff]  ;;  %v1355_v8 = vadd.f32 %v1354_v42, %v1353_v30 }
 0x1d7   : > { %v1280_v38 = vpop.f32.mrf.mxu1  ;;  %v4312_v30 = vld [vmem:[%s5112_s11 + $0x770] sm:$0xff] }
 0x1d8   : > { %v1281_v47 = vadd.f32 %v1280_v38, %v1251_v23  ;;  %v4326_v23 = vld [vmem:[%s5112_s11 + $0x7e0] sm:$0xff]  ;;  %v1362_v49 = vadd.f32 %v1361_v37, %v1360_v16  ;;  %v5904_v63 = vmul.f32 0.001953125, %v1355_v8  ;;  %v4424_v8 = vld [vmem:[%s5112_s11 + $0xaf0] sm:$0xff] }
 0x1d9   : > { %1815 = vmatpush.msrb.mxu1 %v4326_v23  ;;  %v4286_v38 = vld [vmem:[%s5112_s11 + $0x6a0] sm:$0xff]  ;;  %v4297_v23 = vld [vmem:[%s5112_s11 + $0x6f8] sm:$0xff] }
 0x1da   : > { %v1367_v17 = vadd.f32 %v1281_v47, %v1278_v19  ;;  %1790 = vmatpush.msrb.mxu0 %v4286_v38  ;;  %v4318_v47 = vld [vmem:[%s5112_s11 + $0x7a0] sm:$0xff]  ;;  %v1363_v19 = vrot.slane %v1362_v49, 1  ;;  %v1387_v25 = vmul.f32 %v5904_v63, %v5904_v63 }
 0x1db   : > { %1816 = vmatpush.msrb.mxu1 %v4324_v35  ;;  %v4314_v16 = vld [vmem:[%s5112_s11 + $0x780] sm:$0xff]  ;;  %v4308_v35 = vld [vmem:[%s5112_s11 + $0x750] sm:$0xff] }
 0x1dc   : > { %1791 = vmatpush.msrb.mxu0 %v4284_v31  ;;  %v4270_v38 = vld [vmem:[%s5112_s11 + $0x620] sm:$0xff] }
 0x1dd   : > { %v1338_v7 = vpop.f32.mrf.mxu3  ;;  %1817 = vmatpush.msrb.mxu1 %v4322_v41  ;;  %v4306_v41 = vld [vmem:[%s5112_s11 + $0x740] sm:$0xff] }
 0x1de   : > { %v1339_v2 = vadd.f32 %v1338_v7, %v1309_v40  ;;  %v4378_v40 = vld [vmem:[%s5112_s11 + $0x980] sm:$0xff]  ;;  %1792 = vmatpush.msrb.mxu0 %v4282_v57  ;;  %v4327_v57 = vld [vmem:[%s5112_s11 + $0x7e8] sm:$0xff] }
 0x1df   : > { %v1283_v0 = vpop.f32.mrf.mxu1  ;;  %1879 = vmatpush.msrb.mxu3 %v4378_v40  ;;  %1818 = vmatpush.msrb.mxu1 %v4320_v62  ;;  %v4289_v62 = vld [vmem:[%s5112_s11 + $0x6b8] sm:$0xff] }
 0x1e0   : > { %v1284_v4 = vadd.f32 %v1283_v0, %v1254_v54  ;;  %v1376_v44 = vadd.f32 %v1339_v2, %v1336_v32  ;;  %v4376_v54 = vld [vmem:[%s5112_s11 + $0x970] sm:$0xff]  ;;  %1793 = vmatpush.msrb.mxu0 %v4280_v10  ;;  %v4422_v10 = vld [vmem:[%s5112_s11 + $0xae0] sm:$0xff] }
 0x1e1   : > { %1880 = vmatpush.msrb.mxu3 %v4376_v54  ;;  %v4336_v0 = vld [vmem:[%s5112_s11 + $0x830] sm:$0xff]  ;;  %1819 = vmatpush.msrb.mxu1 %v4318_v47 }
 0x1e2   : > { %v1368_v9 = vadd.f32 %v1367_v17, %v1284_v4  ;;  %1855 = vmatpush.msrb.mxu2 %v4336_v0  ;;  %1794 = vmatpush.msrb.mxu0 %v4278_v3  ;;  %v4330_v17 = vld [vmem:[%s5112_s11 + $0x800] sm:$0xff]  ;;  %v4272_v32 = vld [vmem:[%s5112_s11 + $0x630] sm:$0xff] }
 0x1e3   : > { %1881 = vmatpush.msrb.mxu3 %v4374_v6  ;;  %v4302_v6 = vld [vmem:[%s5112_s11 + $0x720] sm:$0xff]  ;;  %v4300_v47 = vld [vmem:[%s5112_s11 + $0x710] sm:$0xff] }
 0x1e4   : > { %1856 = vmatpush.msrb.mxu2 %v4334_v60  ;;  %v4298_v3 = vld [vmem:[%s5112_s11 + $0x700] sm:$0xff] }
 0x1e5   : > { %v1341_v29 = vpop.f32.mrf.mxu3  ;;  %1882 = vmatpush.msrb.mxu3 %v4372_v61  ;;  %v4285_v61 = vld [vmem:[%s5112_s11 + $0x698] sm:$0xff] }
 0x1e6   : > { %v1342_v33 = vadd.f32 %v1341_v29, %v1312_v12  ;;  %v4316_v12 = vld [vmem:[%s5112_s11 + $0x790] sm:$0xff]  ;;  %1857 = vmatpush.msrb.mxu2 %v4332_v13  ;;  %v4321_v13 = vld [vmem:[%s5112_s11 + $0x7b8] sm:$0xff] }
 0x1e7   : > { %v1286_v36 = vpop.f32.mrf.mxu1  ;;  %1820 = vmatpush.msrb.mxu1 %v4316_v12  ;;  %v4276_v29 = vld [vmem:[%s5112_s11 + $0x650] sm:$0xff]  ;;  %1883 = vmatpush.msrb.mxu3 %v4370_v14  ;;  %v4323_v12 = vld [vmem:[%s5112_s11 + $0x7c8] sm:$0xff] }
 0x1e8   : > { %v1287_v22 = vadd.f32 %v1286_v36, %v1257_v21  ;;  %v1377_v55 = vadd.f32 %v1376_v44, %v1342_v33  ;;  %1795 = vmatpush.msrb.mxu0 %v4276_v29  ;;  %v1364_v36 = vadd.f32 %v1363_v19, %v1362_v49  ;;  %1858 = vmatpush.msrb.mxu2 %v4330_v17  ;;  %v4364_v33 = vld [vmem:[%s5112_s11 + $0x910] sm:$0xff]  ;;  %v4362_v44 = vld [vmem:[%s5112_s11 + $0x900] sm:$0xff]  ;;  %v4291_v49 = vld [vmem:[%s5112_s11 + $0x6c8] sm:$0xff] }
 0x1e9   : > { %1821 = vmatpush.msrb.mxu1 %v4314_v16  ;;  %1884 = vmatpush.msrb.mxu3 %v4368_v53  ;;  %v4456_v16 = vld [vmem:[%s5112_s11 + $0xbf0] sm:$0xff]  ;;  %v4418_v29 = vld [vmem:[%s5112_s11 + $0xac0] sm:$0xff]  ;;  %v4281_v53 = vld [vmem:[%s5112_s11 + $0x678] sm:$0xff] }
 0x1ea   : > { %v1369_v34 = vadd.f32 %v1368_v9, %v1287_v22  ;;  %v4274_v9 = vld [vmem:[%s5112_s11 + $0x640] sm:$0xff]  ;;  %1959 = vmatpush.msra.mxu2 %v4297_v23  ;;  %v5918_v39 = vmul.f32 0.001953125, %v1364_v36  ;;  %v4279_v36 = vld [vmem:[%s5112_s11 + $0x668] sm:$0xff] }
 0x1eb   : > { %v4366_v22 = vld [vmem:[%s5112_s11 + $0x920] sm:$0xff]  ;;  %1822 = vmatpush.msrb.mxu1 %v4312_v30  ;;  %1796 = vmatpush.msrb.mxu0 %v4274_v9  ;;  %v4416_v30 = vld [vmem:[%s5112_s11 + $0xab0] sm:$0xff] }
 0x1ec   : > { %v1370_v45 = vrot.slane %v1369_v34, 4  ;;  %1885 = vmatpush.msrb.mxu3 %v4366_v22  ;;  %v1388_v54 = vmul.f32 %v5918_v39, %v5918_v39  ;;  %v4452_v9 = vld [vmem:[%s5112_s11 + $0xbd0] sm:$0xff]  ;;  %v4414_v22 = vld [vmem:[%s5112_s11 + $0xaa0] sm:$0xff] }
 0x1ed   : > { %v1344_v50 = vpop.f32.mrf.mxu3  ;;  %1823 = vmatpush.msrb.mxu1 %v4310_v28  ;;  %1797 = vmatpush.msrb.mxu0 %v4272_v32  ;;  %v4450_v32 = vld [vmem:[%s5112_s11 + $0xbc0] sm:$0xff] }
 0x1ee   : > { %v1371_v7 = vadd.f32 %v1370_v45, %v1369_v34  ;;  %v1345_v58 = vadd.f32 %v1344_v50, %v1315_v52  ;;  %v4295_v34 = vld [vmem:[%s5112_s11 + $0x6e8] sm:$0xff]  ;;  %1886 = vmatpush.msrb.mxu3 %v4364_v33  ;;  %v4293_v45 = vld [vmem:[%s5112_s11 + $0x6d8] sm:$0xff]  ;;  %v4268_v52 = vld [vmem:[%s5112_s11 + $0x610] sm:$0xff] }
 0x1ef   : > { %1960 = vmatpush.msra.mxu2 %v4295_v34  ;;  %1824 = vmatpush.msrb.mxu1 %v4308_v35  ;;  %v4329_v50 = vld [vmem:[%s5112_s11 + $0x7f8] sm:$0xff]  ;;  %v4412_v33 = vld [vmem:[%s5112_s11 + $0xa90] sm:$0xff] }
 0x1f0   : > { %v1372_v18 = vrot.slane %v1371_v7, 2  ;;  %v1378_v20 = vadd.f32 %v1377_v55, %v1345_v58  ;;  %1798 = vmatpush.msrb.mxu0 %v4270_v38  ;;  %1887 = vmatpush.msrb.mxu3 %v4362_v44  ;;  %v4266_v58 = vld [vmem:[%s5112_s11 + $0x600] sm:$0xff]  ;;  %v4275_v38 = vld [vmem:[%s5112_s11 + $0x648] sm:$0xff] }
 0x1f1   : > { %1961 = vmatpush.msra.mxu2 %v4293_v45  ;;  %1825 = vmatpush.msrb.mxu1 %v4306_v41  ;;  %v4410_v44 = vld [vmem:[%s5112_s11 + $0xa80] sm:$0xff]  ;;  %v4273_v45 = vld [vmem:[%s5112_s11 + $0x638] sm:$0xff] }
 0x1f2   : > { %v1373_v4 = vadd.f32 %v1372_v18, %v1371_v7  ;;  %v1379_v11 = vrot.slane %v1378_v20, 4  ;;  %1799 = vmatpush.msrb.mxu0 %v4268_v52  ;;  %1988 = vmatpush.msra.mxu3 %v4329_v50  ;;  %v4304_v7 = vld [vmem:[%s5112_s11 + $0x730] sm:$0xff]  ;;  %v4287_v18 = vld [vmem:[%s5112_s11 + $0x6a8] sm:$0xff] }
 0x1f3   : > { %1962 = vmatpush.msra.mxu2 %v4291_v49  ;;  %1826 = vmatpush.msrb.mxu1 %v4304_v7  ;;  %v4446_v49 = vld [vmem:[%s5112_s11 + $0xba0] sm:$0xff]  ;;  %v4408_v50 = vld [vmem:[%s5112_s11 + $0xa70] sm:$0xff] }
 0x1f4   : > { %v1374_v5 = vrot.slane %v1373_v4, 1  ;;  %v1380_v21 = vadd.f32 %v1379_v11, %v1378_v20  ;;  %1800 = vmatpush.msrb.mxu0 %v4266_v58  ;;  %1989 = vmatpush.msra.mxu3 %v4327_v57  ;;  %v4325_v20 = vld [vmem:[%s5112_s11 + $0x7d8] sm:$0xff]  ;;  %v4283_v11 = vld [vmem:[%s5112_s11 + $0x688] sm:$0xff]  ;;  %v4406_v57 = vld [vmem:[%s5112_s11 + $0xa60] sm:$0xff] }
 0x1f5   : > { %1963 = vmatpush.msra.mxu2 %v4289_v62  ;;  %1827 = vmatpush.msrb.mxu1 %v4302_v6  ;;  %v4309_v58 = vld [vmem:[%s5112_s11 + $0x758] sm:$0xff]  ;;  %v4444_v62 = vld [vmem:[%s5112_s11 + $0xb90] sm:$0xff] }
 0x1f6   : > { %v1375_v46 = vadd.f32 %v1374_v5, %v1373_v4  ;;  %v1381_v2 = vrot.slane %v1380_v21, 2  ;;  %1901 = vmatpush.msra.mxu0 %v4424_v8  ;;  %1990 = vmatpush.msra.mxu3 %v4325_v20  ;;  %v4420_v4 = vld [vmem:[%s5112_s11 + $0xad0] sm:$0xff]  ;;  %v4319_v5 = vld [vmem:[%s5112_s11 + $0x7a8] sm:$0xff] }
 0x1f7   : > { %1964 = vmatpush.msra.mxu2 %v4287_v18  ;;  %1828 = vmatpush.msrb.mxu1 %v4300_v47  ;;  %v4269_v18 = vld [vmem:[%s5112_s11 + $0x618] sm:$0xff]  ;;  %v4307_v20 = vld [vmem:[%s5112_s11 + $0x748] sm:$0xff] }
 0x1f8   : > { %v1385_v26 = vmul.f32 0.001953125, %v1375_v46  ;;  %v1382_v37 = vadd.f32 %v1381_v2, %v1380_v21  ;;  %1902 = vmatpush.msra.mxu0 %v4422_v10  ;;  %1991 = vmatpush.msra.mxu3 %v4323_v12  ;;  %v4454_v21 = vld [vmem:[%s5112_s11 + $0xbe0] sm:$0xff]  ;;  %v4317_v2 = vld [vmem:[%s5112_s11 + $0x798] sm:$0xff]  ;;  %v4267_v12 = vld [vmem:[%s5112_s11 + $0x608] sm:$0xff] }
 0x1f9   : > { %1965 = vmatpush.msra.mxu2 %v4285_v61  ;;  %1829 = vmatpush.msrb.mxu1 %v4298_v3  ;;  %v4442_v10 = vld [vmem:[%s5112_s11 + $0xb80] sm:$0xff]  ;;  %v4404_v61 = vld [vmem:[%s5112_s11 + $0xa50] sm:$0xff] }
 0x1fa   : > { %v1389_v40 = vsub.f32 %v1385_v26, %v1387_v25  ;;  %v1383_v42 = vrot.slane %v1382_v37, 1  ;;  %1903 = vmatpush.msra.mxu0 %v4420_v4  ;;  %1992 = vmatpush.msra.mxu3 %v4321_v13  ;;  %v4277_v25 = vld [vmem:[%s5112_s11 + $0x658] sm:$0xff]  ;;  %v4315_v26 = vld [vmem:[%s5112_s11 + $0x788] sm:$0xff]  ;;  %v4440_v13 = vld [vmem:[%s5112_s11 + $0xb70] sm:$0xff] }
 0x1fb   : > { %1966 = vmatpush.msra.mxu2 %v4283_v11  ;;  %1930 = vmatpush.msra.mxu1 %v4456_v16 }
 0x1fc   : > { %v5923_v31 = vadd.f32 1e-05, %v1389_v40  ;;  %v1384_v48 = vadd.f32 %v1383_v42, %v1382_v37  ;;  %1904 = vmatpush.msra.mxu0 %v4418_v29  ;;  %1993 = vmatpush.msra.mxu3 %v4319_v5  ;;  %v4313_v40 = vld [vmem:[%s5112_s11 + $0x778] sm:$0xff]  ;;  %v4448_v42 = vld [vmem:[%s5112_s11 + $0xbb0] sm:$0xff] }
 0x1fd   : > { %1967 = vmatpush.msra.mxu2 %v4281_v53  ;;  %1931 = vmatpush.msra.mxu1 %v4454_v21  ;;  %v4425_v5 = vld [vmem:[%s5112_s11 + $0xaf8] sm:$0xff] }
 0x1fe   : > { %4730 = vrsqrt.f32 %v5923_v31  ;;  %v1386_v55 = vmul.f32 0.001953125, %v1384_v48  ;;  %1905 = vmatpush.msra.mxu0 %v4416_v30  ;;  %1994 = vmatpush.msra.mxu3 %v4317_v2  ;;  %vm1399_vm3 = vweird.f32 %v5923_v31  ;;  %v4311_v48 = vld [vmem:[%s5112_s11 + $0x768] sm:$0xff]  ;;  %v4438_v30 = vld [vmem:[%s5112_s11 + $0xb60] sm:$0xff] }
 0x1ff   : > { %1968 = vmatpush.msra.mxu2 %v4279_v36  ;;  %1932 = vmatpush.msra.mxu1 %v4452_v9  ;;  %v4400_v36 = vld [vmem:[%s5112_s11 + $0xa30] sm:$0xff]  ;;  %v4301_v9 = vld [vmem:[%s5112_s11 + $0x718] sm:$0xff] }
 0x200   : > { %v1390_v0 = vsub.f32 %v1386_v55, %v1388_v54  ;;  %1906 = vmatpush.msra.mxu0 %v4414_v22  ;;  %1995 = vmatpush.msra.mxu3 %v4315_v26  ;;  %v4271_v54 = vld [vmem:[%s5112_s11 + $0x628] sm:$0xff] }
 0x201   : > { %1969 = vmatpush.msra.mxu2 %v4277_v25  ;;  %1933 = vmatpush.msra.mxu1 %v4450_v32  ;;  %v4423_v22 = vld [vmem:[%s5112_s11 + $0xae8] sm:$0xff] }
 0x202   : > { %v5941_v60 = vadd.f32 1e-05, %v1390_v0  ;;  %1907 = vmatpush.msra.mxu0 %v4412_v33  ;;  %1996 = vmatpush.msra.mxu3 %v4313_v40  ;;  %v4299_v32 = vld [vmem:[%s5112_s11 + $0x708] sm:$0xff] }
 0x203   : > { %1970 = vmatpush.msra.mxu2 %v4275_v38  ;;  %1934 = vmatpush.msra.mxu1 %v4448_v42  ;;  %v4396_v38 = vld [vmem:[%s5112_s11 + $0xa10] sm:$0xff]  ;;  %v4419_v42 = vld [vmem:[%s5112_s11 + $0xac8] sm:$0xff] }
 0x204   : > { %v4731_v19 = vpop.eup %4730  ;;  %4732 = vrsqrt.f32 %v5941_v60  ;;  %1908 = vmatpush.msra.mxu0 %v4410_v44  ;;  %vm1409_vm6 = vweird.f32 %v5941_v60  ;;  %1997 = vmatpush.msra.mxu3 %v4311_v48  ;;  %v4457_v44 = vld [vmem:[%s5112_s11 + $0xbf8] sm:$0xff]  ;;  %v4455_v48 = vld [vmem:[%s5112_s11 + $0xbe8] sm:$0xff] }
 0x205   : > { %v1394_v14 = vmul.f32 %v4731_v19, %v5923_v31  ;;  %vm1400_vm2 = vweird.f32 %v4731_v19  ;;  %1971 = vmatpush.msra.mxu2 %v4273_v45  ;;  %1935 = vmatpush.msra.mxu1 %v4446_v49  ;;  %v4432_v45 = vld [vmem:[%s5112_s11 + $0xb30] sm:$0xff]  ;;  %v4361_v49 = vld [vmem:[%s5112_s11 + $0x8f8] sm:$0xff] }
 0x206   : > { %vm1401_vm4 = vmor %vm1399_vm3, %vm1400_vm2  ;;  %1909 = vmatpush.msra.mxu0 %v4408_v50  ;;  %1998 = vmatpush.msra.mxu3 %v4309_v58  ;;  %v4415_v50 = vld [vmem:[%s5112_s11 + $0xaa8] sm:$0xff] }
 0x207   : > { %v1395_v17 = vmul.f32 %v4731_v19, %v1394_v14  ;;  %1972 = vmatpush.msra.mxu2 %v4271_v54  ;;  %1936 = vmatpush.msra.mxu1 %v4444_v62  ;;  %v4402_v14 = vld [vmem:[%s5112_s11 + $0xa40] sm:$0xff]  ;;  %v4359_v58 = vld [vmem:[%s5112_s11 + $0x8e8] sm:$0xff] }
 0x208   : > { %1910 = vmatpush.msra.mxu0 %v4406_v57  ;;  %1999 = vmatpush.msra.mxu3 %v4307_v20  ;;  %v4413_v57 = vld [vmem:[%s5112_s11 + $0xa98] sm:$0xff] }
 0x209   : > { %v1396_v46 = vmul.f32 0.5, %v1395_v17  ;;  %1973 = vmatpush.msra.mxu2 %v4269_v18  ;;  %1937 = vmatpush.msra.mxu1 %v4442_v10  ;;  %v4449_v18 = vld [vmem:[%s5112_s11 + $0xbb8] sm:$0xff] }
 0x20a   : > { %v5961_v23 = vpop.eup %4732  ;;  %1911 = vmatpush.msra.mxu0 %v4404_v61  ;;  %v4393_v20 = vld [vmem:[%s5112_s11 + $0x9f8] sm:$0xff] }
 0x20b   : > { %v1397_v37 = vsub.f32 1.5, %v1396_v46  ;;  %v1404_v28 = vmul.f32 %v5961_v23, %v5941_v60  ;;  %vm1410_vm5 = vweird.f32 %v5961_v23  ;;  %v4305_v60 = vld [vmem:[%s5112_s11 + $0x738] sm:$0xff]  ;;  %1974 = vmatpush.msra.mxu2 %v4267_v12  ;;  %1938 = vmatpush.msra.mxu1 %v4440_v13  ;;  %v4447_v12 = vld [vmem:[%s5112_s11 + $0xba8] sm:$0xff] }
 0x20c   : > { %vm1411_vm7 = vmor %vm1409_vm6, %vm1410_vm5  ;;  %2000 = vmatpush.msra.mxu3 %v4305_v60  ;;  %1912 = vmatpush.msra.mxu0 %v4402_v14  ;;  %v4409_v10 = vld [vmem:[%s5112_s11 + $0xa78] sm:$0xff]  ;;  %v4351_v14 = vld [vmem:[%s5112_s11 + $0x8a8] sm:$0xff] }
 0x20d   : > { %v1405_v34 = vmul.f32 %v5961_v23, %v1404_v28  ;;  %v1398_v35 = vmul.f32 %v4731_v19, %v1397_v37  ;;  %1939 = vmatpush.msra.mxu1 %v4438_v30  ;;  %v4398_v28 = vld [vmem:[%s5112_s11 + $0xa20] sm:$0xff]  ;;  %v4353_v60 = vld [vmem:[%s5112_s11 + $0x8b8] sm:$0xff] }
 0x20e   : > { %1913 = vmatpush.msra.mxu0 %v4400_v36  ;;  %v4389_v13 = vld [vmem:[%s5112_s11 + $0x9d8] sm:$0xff]  ;;  %v4347_v36 = vld [vmem:[%s5112_s11 + $0x888] sm:$0xff] }
 0x20f   : > { %v1406_v41 = vmul.f32 0.5, %v1405_v34  ;;  %v1402_v31 = vsel %vm1401_vm4, %v4731_v19, %v1398_v35  ;;  %v4421_v34 = vld [vmem:[%s5112_s11 + $0xad8] sm:$0xff]  ;;  %v4434_v35 = vld [vmem:[%s5112_s11 + $0xb40] sm:$0xff] }
 0x210   : > { %v1421_v52 = vmul.f32 %v1402_v31, %v5904_v63  ;;  %v1413_v7 = vmul.f32 %v1402_v31, %v5689_v24  ;;  %v1415_v63 = vmul.f32 %v1402_v31, %v5739_v51  ;;  %v1417_v6 = vmul.f32 %v1402_v31, %v5770_v15  ;;  %1914 = vmatpush.msra.mxu0 %v4398_v28  ;;  %v4385_v30 = vld [vmem:[%s5112_s11 + $0x9b8] sm:$0xff] }
 0x211   : > { %v1407_v55 = vsub.f32 1.5, %v1406_v41  ;;  %v1419_v8 = vmul.f32 %v1402_v31, %v5790_v56  ;;  %v4394_v41 = vld [vmem:[%s5112_s11 + $0xa00] sm:$0xff]  ;;  %v4417_v31 = vld [vmem:[%s5112_s11 + $0xab8] sm:$0xff] }
 0x212   : > { %v1423_v0 = vsub.f32 0.001, %v1421_v52  ;;  %1915 = vmatpush.msra.mxu0 %v4396_v38  ;;  %v4430_v52 = vld [vmem:[%s5112_s11 + $0xb20] sm:$0xff]  ;;  %v4345_v28 = vld [vmem:[%s5112_s11 + $0x878] sm:$0xff] }
 0x213   : > { %v1408_v24 = vmul.f32 %v5961_v23, %v1407_v55  ;;  %v4453_v55 = vld [vmem:[%s5112_s11 + $0xbd8] sm:$0xff] }
 0x214   : > { %v5998_v51 = vadd.f32 %v1423_v0, %v1413_v7  ;;  %v6000_v15 = vadd.f32 %v1423_v0, %v1415_v63  ;;  %v6002_v56 = vadd.f32 %v1423_v0, %v1417_v6  ;;  %v6004_v47 = vadd.f32 %v1423_v0, %v1419_v8  ;;  %1916 = vmatpush.msra.mxu0 %v4394_v41  ;;  %v4428_v7 = vld [vmem:[%s5112_s11 + $0xb10] sm:$0xff]  ;;  %v4451_v0 = vld [vmem:[%s5112_s11 + $0xbc8] sm:$0xff]  ;;  %v4426_v63 = vld [vmem:[%s5112_s11 + $0xb00] sm:$0xff] }
 0x215   : > { %v1412_v3 = vsel %vm1411_vm7, %v5961_v23, %v1408_v24  ;;  %v4436_v23 = vld [vmem:[%s5112_s11 + $0xb50] sm:$0xff]  ;;  %v4357_v6 = vld [vmem:[%s5112_s11 + $0x8d8] sm:$0xff]  ;;  %v4411_v8 = vld [vmem:[%s5112_s11 + $0xa88] sm:$0xff] }
 0x216   : > { %v1441_v19 = vrot.slane %v5998_v51, 7  ;;  %1859 = vmatmul.f32.vlgmr.msrb.gmra.mxu2 %v5998_v51  ;;  %v1422_v4 = vmul.f32 %v1412_v3, %v5918_v39  ;;  %v1443_v11 = vrot.slane %v6000_v15, 7  ;;  %v1414_v16 = vmul.f32 %v1412_v3, %v5815_v27  ;;  %1940 = vmatpush.msra.mxu1 %v4436_v23  ;;  %v4355_v24 = vld [vmem:[%s5112_s11 + $0x8c8] sm:$0xff]  ;;  %v4397_v38 = vld [vmem:[%s5112_s11 + $0xa18] sm:$0xff] }
 0x217   : > { %v1416_v29 = vmul.f32 %v1412_v3, %v5826_v43  ;;  %v1447_v17 = vrot.slane %v6002_v56, 7  ;;  %v1449_v53 = vrot.slane %v6004_v47, 7  ;;  %v1418_v21 = vmul.f32 %v1412_v3, %v5832_v59  ;;  %v4303_v43 = vld [vmem:[%s5112_s11 + $0x728] sm:$0xff]  ;;  %2075 = vmatpush.msrb.mxu2 %v4425_v5 }
 0x218   : > { %1465 = vst [vmem:[#allocation2 + $0x30] sm:$0xfe] %v1441_v19  ;;  %v1424_v39 = vsub.f32 0.001, %v1422_v4  ;;  %v1420_v27 = vmul.f32 %v1412_v3, %v5838_v1  ;;  %2001 = vmatpush.msra.mxu3 %v4303_v43  ;;  %1941 = vmatpush.msra.mxu1 %v4434_v35  ;;  %v6090_v62 = vsel %vm343_vm0, %v1441_v19, %v1443_v11  ;;  %v4391_v3 = vld [vmem:[%s5112_s11 + $0x9e8] sm:$0xff]  ;;  %v4441_v43 = vld [vmem:[%s5112_s11 + $0xb78] sm:$0xff] }
 0x219   : > { %1469 = vst [vmem:[#allocation2 + $0x50] sm:$0x1] %v1443_v11  ;;  %2076 = vmatpush.msrb.mxu2 %v4423_v22  ;;  %v4407_v4 = vld [vmem:[%s5112_s11 + $0xa68] sm:$0xff]  ;;  %v4445_v11 = vld [vmem:[%s5112_s11 + $0xb98] sm:$0xff] }
 0x21a   : > { %v6031_v46 = vadd.f32 %v1424_v39, %v1414_v16  ;;  %v6033_v2 = vadd.f32 %v1424_v39, %v1416_v29  ;;  %1471 = vst [vmem:[#allocation2 + $0x8] sm:$0xfe] %v1447_v17  ;;  %v6037_v59 = vadd.f32 %v1424_v39, %v1418_v21  ;;  %v6039_v1 = vadd.f32 %v1424_v39, %v1420_v27  ;;  %v4405_v16 = vld [vmem:[%s5112_s11 + $0xa58] sm:$0xff]  ;;  %v4443_v29 = vld [vmem:[%s5112_s11 + $0xb88] sm:$0xff] }
 0x21b   : > { %1475 = vst [vmem:[#allocation2 + $0x10] sm:$0x1] %v1449_v53  ;;  %2002 = vmatpush.msra.mxu3 %v4301_v9  ;;  %2077 = vmatpush.msrb.mxu2 %v4421_v34  ;;  %v4387_v5 = vld [vmem:[%s5112_s11 + $0x9c8] sm:$0xff]  ;;  %v4349_v39 = vld [vmem:[%s5112_s11 + $0x898] sm:$0xff]  ;;  %v6140_v9 = vsel %vm343_vm0, %v1447_v17, %v1449_v53 }
 0x21c   : > { %v1442_v25 = vrot.slane %v6031_v46, 7  ;;  %1888 = vmatmul.f32.vlgmr.msrb.gmra.mxu3 %v6031_v46  ;;  %v1445_v26 = vrot.slane %v6033_v2, 7  ;;  %v1448_v37 = vrot.slane %v6037_v59, 7  ;;  %v1451_v33 = vrot.slane %v6039_v1, 7  ;;  %1942 = vmatpush.msra.mxu1 %v4432_v45  ;;  %v4403_v21 = vld [vmem:[%s5112_s11 + $0xa48] sm:$0xff]  ;;  %v4401_v22 = vld [vmem:[%s5112_s11 + $0xa38] sm:$0xff] }
 0x21d   : > { %2003 = vmatpush.msra.mxu3 %v4299_v32  ;;  %2078 = vmatpush.msrb.mxu2 %v4419_v42  ;;  %v4439_v23 = vld [vmem:[%s5112_s11 + $0xb68] sm:$0xff]  ;;  %v4437_v17 = vld [vmem:[%s5112_s11 + $0xb58] sm:$0xff]  ;;  %v1526_v42 = vrot.slane %v6090_v62, 2 }
 0x21e   : > { %1466 = vst [vmem:[#allocation2] sm:$0xfe] %v1442_v25  ;;  %1862 = vmatmul.f32.gmra.mxu2 %v6000_v15  ;;  %1943 = vmatpush.msra.mxu1 %v4430_v52  ;;  %v6108_v61 = vsel %vm343_vm0, %v1442_v25, %v1445_v26  ;;  %v4399_v32 = vld [vmem:[%s5112_s11 + $0xa28] sm:$0xff]  ;;  %v4381_v53 = vld [vmem:[%s5112_s11 + $0x998] sm:$0xff] }
 0x21f   : > { %v6059_v40 = vld [vmem:[#allocation2 + $0x30] sm:$0xff]  ;;  %1470 = vst [vmem:[#allocation2 + $0x20] sm:$0x1] %v1445_v26  ;;  %2104 = vmatpush.msrb.mxu3 %v4457_v44  ;;  %2079 = vmatpush.msrb.mxu2 %v4417_v31  ;;  %v4383_v26 = vld [vmem:[%s5112_s11 + $0x9a8] sm:$0xff]  ;;  %v4341_v31 = vld [vmem:[%s5112_s11 + $0x858] sm:$0xff] }
 0x220   : > { %1801 = vmatmul.f32.vlgmr.msrb.gmra.mxu0 %v6059_v40  ;;  %1472 = vst [vmem:[#allocation2 + $0x38] sm:$0xfe] %v1448_v37  ;;  %1944 = vmatpush.msra.mxu1 %v4428_v7  ;;  %v1501_v25 = vld [vmem:[#allocation2 + $0x30] sm:$0xfc]  ;;  %v4343_v35 = vld [vmem:[%s5112_s11 + $0x868] sm:$0xff] }
 0x221   : > { %1476 = vst [vmem:[#allocation2 + $0x40] sm:$0x1] %v1451_v33  ;;  %2105 = vmatpush.msrb.mxu3 %v4455_v48  ;;  %2017 = vmatpush.msrb.mxu0 %v4361_v49  ;;  %v6115_v19 = vld [vmem:[#allocation2 + $0x8] sm:$0xff]  ;;  %v1525_v34 = vrot.slane %v1501_v25, 2  ;;  %v1505_v52 = vld [vmem:[#allocation2 + $0x50] sm:$0x3] }
 0x222   : > { %2080 = vmatpush.msrb.mxu2 %v4415_v50  ;;  %1945 = vmatpush.msra.mxu1 %v4426_v63  ;;  %v4435_v44 = vld [vmem:[%s5112_s11 + $0xb48] sm:$0xff]  ;;  %v4377_v49 = vld [vmem:[%s5112_s11 + $0x978] sm:$0xff] }
 0x223   : > { %2106 = vmatpush.msrb.mxu3 %v4453_v55  ;;  %2018 = vmatpush.msrb.mxu0 %v4359_v58  ;;  %v4379_v41 = vld [vmem:[%s5112_s11 + $0x988] sm:$0xff]  ;;  %v6167_v48 = vsel %vm428_vm1, %v1525_v34, %v1526_v42  ;;  %v1529_v58 = vrot.slane %v6108_v61, 2  ;;  %v6250_v34 = vld [vmem:[#allocation9 + $0x98] sm:$0xff] }
 0x224   : > { %1891 = vmatmul.f32.gmra.mxu3 %v6033_v2  ;;  %2081 = vmatpush.msrb.mxu2 %v4413_v57  ;;  %v4339_v50 = vld [vmem:[%s5112_s11 + $0x848] sm:$0xff]  ;;  %v4337_v57 = vld [vmem:[%s5112_s11 + $0x838] sm:$0xff] }
 0x225   : > { %v6078_v54 = vld [vmem:[#allocation2] sm:$0xff]  ;;  %2107 = vmatpush.msrb.mxu3 %v4451_v0  ;;  %2019 = vmatpush.msrb.mxu0 %v4357_v6  ;;  %v4431_v55 = vld [vmem:[%s5112_s11 + $0xb28] sm:$0xff]  ;;  %v4429_v0 = vld [vmem:[%s5112_s11 + $0xb18] sm:$0xff] }
 0x226   : > { %1830 = vmatmul.f32.vlgmr.msrb.gmra.mxu1 %v6078_v54  ;;  %1865 = vmatmul.f32.gmra.mxu2 %v6002_v56  ;;  %v1502_v45 = vld [vmem:[#allocation2] sm:$0xfc]  ;;  %v4375_v7 = vld [vmem:[%s5112_s11 + $0x968] sm:$0xff]  ;;  %v4373_v6 = vld [vmem:[%s5112_s11 + $0x958] sm:$0xff] }
 0x227   : > { %2082 = vmatpush.msrb.mxu2 %v4411_v8  ;;  %2108 = vmatpush.msrb.mxu3 %v4449_v18  ;;  %v6128_v27 = vld [vmem:[#allocation2 + $0x38] sm:$0xff]  ;;  %v1506_v8 = vld [vmem:[#allocation2 + $0x20] sm:$0x3]  ;;  %v4335_v18 = vld [vmem:[%s5112_s11 + $0x828] sm:$0xff] }
 0x228   : > { %1804 = vmatmul.f32.gmra.mxu0 %v6090_v62  ;;  %2046 = vmatpush.msrb.mxu1 %v4393_v20  ;;  %v4427_v20 = vld [vmem:[%s5112_s11 + $0xb08] sm:$0xff] }
 0x229   : > { %2020 = vmatpush.msrb.mxu0 %v4355_v24  ;;  %2083 = vmatpush.msrb.mxu2 %v4409_v10  ;;  %v4371_v10 = vld [vmem:[%s5112_s11 + $0x948] sm:$0xff] }
 0x22a   : > { %2109 = vmatpush.msrb.mxu3 %v4447_v12  ;;  %2047 = vmatpush.msrb.mxu1 %v4391_v3  ;;  %v4333_v12 = vld [vmem:[%s5112_s11 + $0x818] sm:$0xff]  ;;  %v1533_v3 = vrot.slane %v1506_v8, 2  ;;  %v6312_v8 = vld [vmem:[#allocation9 + $0x18] sm:$0xff] }
 0x22b   : > { %2021 = vmatpush.msrb.mxu0 %v4353_v60  ;;  %2084 = vmatpush.msrb.mxu2 %v4407_v4  ;;  %v4369_v60 = vld [vmem:[%s5112_s11 + $0x938] sm:$0xff] }
 0x22c   : > { %1894 = vmatmul.f32.gmra.mxu3 %v6037_v59  ;;  %2048 = vmatpush.msrb.mxu1 %v4389_v13  ;;  %v1534_v13 = vsel %vm428_vm1, %v1529_v58, %v1533_v3  ;;  %v6332_v3 = vld [vmem:[#allocation9 + $0x1e8] sm:$0xff] }
 0x22d   : > { %2110 = vmatpush.msrb.mxu3 %v4445_v11  ;;  %2022 = vmatpush.msrb.mxu0 %v4351_v14  ;;  %v4367_v11 = vld [vmem:[%s5112_s11 + $0x928] sm:$0xff]  ;;  %v1536_v14 = vrot.slane %v6140_v9, 2 }
 0x22e   : > { %1833 = vmatmul.f32.gmra.mxu1 %v6108_v61  ;;  %1868 = vmatmul.f32.gmra.mxu2 %v6004_v47 }
 0x22f   : > { %2085 = vmatpush.msrb.mxu2 %v4405_v16  ;;  %2111 = vmatpush.msrb.mxu3 %v4443_v29  ;;  %v1508_v16 = vld [vmem:[#allocation2 + $0x38] sm:$0xfc] }
 0x230   : > { %1807 = vmatmul.f32.gmra.mxu0 %v6115_v19  ;;  %2049 = vmatpush.msrb.mxu1 %v4387_v5  ;;  %v4365_v29 = vld [vmem:[%s5112_s11 + $0x918] sm:$0xff] }
 0x231   : > { %2023 = vmatpush.msrb.mxu0 %v4349_v39  ;;  %2086 = vmatpush.msrb.mxu2 %v4403_v21  ;;  %v1511_v39 = vld [vmem:[#allocation2 + $0x10] sm:$0x3]  ;;  %v4363_v21 = vld [vmem:[%s5112_s11 + $0x908] sm:$0xff] }
 0x232   : > { %2112 = vmatpush.msrb.mxu3 %v4441_v43  ;;  %2050 = vmatpush.msrb.mxu1 %v4385_v30  ;;  %v1538_v43 = vrot.slane %v1508_v16, 2  ;;  %v1541_v30 = vrot.slane %v1511_v39, 2  ;;  %v6355_v16 = vld [vmem:[#allocation9 + $0x1d0] sm:$0xff] }
 0x233   : > { %2024 = vmatpush.msrb.mxu0 %v4347_v36  ;;  %2087 = vmatpush.msrb.mxu2 %v4401_v22 }
 0x234   : > { %1897 = vmatmul.f32.gmra.mxu3 %v6039_v1  ;;  %2051 = vmatpush.msrb.mxu1 %v4383_v26  ;;  %v1542_v22 = vsel %vm428_vm1, %v1536_v14, %v1541_v30  ;;  %v6214_v26 = vld [vmem:[#allocation9 + $0xf8] sm:$0xff]  ;;  %v6376_v30 = vld [vmem:[#allocation9 + $0x1b0] sm:$0xff] }
 0x235   : > { %2113 = vmatpush.msrb.mxu3 %v4439_v23  ;;  %2025 = vmatpush.msrb.mxu0 %v4345_v28  ;;  %v6236_v28 = vld [vmem:[#allocation9 + $0xb8] sm:$0xff] }
 0x236   : > { %1836 = vmatmul.f32.gmra.mxu1 %v6128_v27  ;;  %1975 = vmatmul.f32.vlgmr.msra.gmra.mxu2 %v6059_v40  ;;  %v6158_v40 = vsel %vm343_vm0, %v1448_v37, %v1451_v33  ;;  %v4395_v37 = vld [vmem:[%s5112_s11 + $0xa08] sm:$0xff]  ;;  %v4433_v33 = vld [vmem:[%s5112_s11 + $0xb38] sm:$0xff] }
 0x237   : > { %2088 = vmatpush.msrb.mxu2 %v4399_v32  ;;  %2114 = vmatpush.msrb.mxu3 %v4437_v17  ;;  %v6242_v32 = vld [vmem:[#allocation9 + $0xa0] sm:$0xff]  ;;  %v6244_v17 = vld [vmem:[#allocation9 + $0xa8] sm:$0xff] }
 0x238   : > { %1810 = vmatmul.f32.gmra.mxu0 %v6140_v9  ;;  %2052 = vmatpush.msrb.mxu1 %v4381_v53  ;;  %v6246_v53 = vld [vmem:[#allocation9 + $0x90] sm:$0xff] }
 0x239   : > { %2026 = vmatpush.msrb.mxu0 %v4343_v35  ;;  %2089 = vmatpush.msrb.mxu2 %v4397_v38  ;;  %v6252_v35 = vld [vmem:[#allocation9 + $0x80] sm:$0xff]  ;;  %v6254_v38 = vld [vmem:[#allocation9 + $0x88] sm:$0xff] }
 0x23a   : > { %2115 = vmatpush.msrb.mxu3 %v4435_v44  ;;  %2053 = vmatpush.msrb.mxu1 %v4379_v41  ;;  %v6262_v44 = vld [vmem:[#allocation9 + $0x78] sm:$0xff]  ;;  %v6270_v41 = vld [vmem:[#allocation9 + $0x60] sm:$0xff] }
 0x23b   : > { %2027 = vmatpush.msrb.mxu0 %v4341_v31  ;;  %2090 = vmatpush.msrb.mxu2 %v4395_v37  ;;  %v6272_v31 = vld [vmem:[#allocation9 + $0x68] sm:$0xff] }
 0x23c   : > { %2004 = vmatmul.f32.vlgmr.msra.gmra.mxu3 %v6078_v54  ;;  %v1528_v54 = vrot.slane %v1502_v45, 2  ;;  %2054 = vmatpush.msrb.mxu1 %v4377_v49  ;;  %v6284_v49 = vld [vmem:[#allocation9 + $0x48] sm:$0xff] }
 0x23d   : > { %2116 = vmatpush.msrb.mxu3 %v4433_v33  ;;  %2028 = vmatpush.msrb.mxu0 %v4339_v50  ;;  %v6280_v33 = vld [vmem:[#allocation9 + $0x58] sm:$0xff] }
 0x23e   : > { %1839 = vmatmul.f32.gmra.mxu1 %v6158_v40  ;;  %1978 = vmatmul.f32.gmra.mxu2 %v6090_v62  ;;  %v1531_v62 = vrot.slane %v1505_v52, 2  ;;  %v1530_v63 = vsel %vm428_vm1, %v1528_v54, %v1529_v58  ;;  %v6282_v52 = vld [vmem:[#allocation9 + $0x40] sm:$0xff]  ;;  %v6290_v54 = vld [vmem:[#allocation9 + $0x30] sm:$0xff] }
 0x23f   : > { %2117 = vmatpush.msrb.mxu3 %v4431_v55  ;;  %2055 = vmatpush.msrb.mxu1 %v4375_v7  ;;  %v6292_v55 = vld [vmem:[#allocation9 + $0x38] sm:$0xff] }
 0x240   : > { %1917 = vmatmul.f32.vlgmr.msra.gmra.mxu0 %v6167_v48  ;;  %v1532_v24 = vsel %vm428_vm1, %v1526_v42, %v1531_v62  ;;  %2263 = vmatpush.msra.mxu2 %v6214_v26  ;;  %v6260_v42 = vld [vmem:[#allocation9 + $0x70] sm:$0xff] }
 0x241   : > { %2029 = vmatpush.msrb.mxu0 %v4337_v57  ;;  %2118 = vmatpush.msrb.mxu3 %v4429_v0  ;;  %v6302_v57 = vld [vmem:[#allocation9 + $0x20] sm:$0xff]  ;;  %v6304_v0 = vld [vmem:[#allocation9 + $0x28] sm:$0xff] }
 0x242   : > { %2056 = vmatpush.msrb.mxu1 %v4373_v6 }
 0x243   : > { %2030 = vmatpush.msrb.mxu0 %v4335_v18  ;;  %2119 = vmatpush.msrb.mxu3 %v4427_v20  ;;  %v6314_v18 = vld [vmem:[#allocation9] sm:$0xff]  ;;  %v6316_v20 = vld [vmem:[#allocation9 + $0x8] sm:$0xff] }
 0x244   : > { %2007 = vmatmul.f32.gmra.mxu3 %v6108_v61  ;;  %v1507_v61 = vld [vmem:[#allocation2 + $0x8] sm:$0xfc]  ;;  %2057 = vmatpush.msrb.mxu1 %v4371_v10 }
 0x245   : > { %v1535_v4 = vrot.slane %v1507_v61, 2  ;;  %2031 = vmatpush.msrb.mxu0 %v4333_v12  ;;  %v6328_v61 = vld [vmem:[#allocation9 + $0x1f8] sm:$0xff]  ;;  %v6330_v12 = vld [vmem:[#allocation9 + $0x1f0] sm:$0xff] }
 0x246   : > { %1946 = vmatmul.f32.vlgmr.msra.gmra.mxu1 %v1530_v63  ;;  %1981 = vmatmul.f32.gmra.mxu2 %v6115_v19  ;;  %v4331_v19 = vld [vmem:[%s5112_s11 + $0x808] sm:$0xff] }
 0x247   : > { %2058 = vmatpush.msrb.mxu1 %v4369_v60  ;;  %2032 = vmatpush.msrb.mxu0 %v4331_v19  ;;  %v1537_v5 = vsel %vm428_vm1, %v1535_v4, %v1536_v14  ;;  %v6334_v60 = vld [vmem:[#allocation8 + $0x1] ss:$4 sm:$0x3]  ;;  %v6342_v4 = vld [vmem:[#allocation9 + $0x1e0] sm:$0xff] }
 0x248   : > { %1920 = vmatmul.f32.gmra.mxu0 %v1532_v24  ;;  %2292 = vmatpush.msra.mxu3 %v6328_v61  ;;  %v6351_v14 = vperm.slane %v6334_v60, 0 }
 0x249   : > { %2059 = vmatpush.msrb.mxu1 %v4367_v11  ;;  %v6344_v11 = vld [vmem:[#allocation9 + $0x1d8] sm:$0xff] }
 0x24a   : > { %2293 = vmatpush.msra.mxu3 %v6332_v3 }
 0x24b   : > { %2060 = vmatpush.msrb.mxu1 %v4365_v29  ;;  %v6357_v29 = vld [vmem:[#allocation9 + $0x1c8] sm:$0xff] }
 0x24c   : > { %2010 = vmatmul.f32.gmra.mxu3 %v6128_v27  ;;  %v1539_v27 = vrot.slane %v6158_v40, 2 }
 0x24d   : > { %2061 = vmatpush.msrb.mxu1 %v4363_v21  ;;  %2294 = vmatpush.msra.mxu3 %v6344_v11 }
 0x24e   : > { %1949 = vmatmul.f32.gmra.mxu1 %v1534_v13  ;;  %1984 = vmatmul.f32.gmra.mxu2 %v6140_v9  ;;  %v1540_v36 = vsel %vm428_vm1, %v1538_v43, %v1539_v27  ;;  %v1512_v9 = vld [vmem:[#allocation2 + $0x40] sm:$0x3]  ;;  %v6372_v43 = vld [vmem:[#allocation9 + $0x1c0] sm:$0xff] }
 0x24f   : > { %v1543_v23 = vrot.slane %v1512_v9, 2  ;;  %2234 = vmatpush.msra.mxu1 %v6330_v12  ;;  %2295 = vmatpush.msra.mxu3 %v6357_v29  ;;  %v6382_v9 = vld [vmem:[#allocation9 + $0x1a8] sm:$0xff] }
 0x250   : > { %1923 = vmatmul.f32.gmra.mxu0 %v1537_v5 }
 0x251   : > { %v1544_v25 = vsel %vm428_vm1, %v1539_v27, %v1543_v23  ;;  %2235 = vmatpush.msra.mxu1 %v6342_v4  ;;  %v6374_v27 = vld [vmem:[#allocation9 + $0x1b8] sm:$0xff]  ;;  %v6386_v23 = vld [vmem:[#allocation9 + $0x1a0] sm:$0xff] }
 0x252   : > { %2296 = vmatpush.msra.mxu3 %v6374_v27 }
 0x253   : > { %2236 = vmatpush.msra.mxu1 %v6355_v16 }
 0x254   : > { %2013 = vmatmul.f32.gmra.mxu3 %v6158_v40 }
 0x255   : > { %2237 = vmatpush.msra.mxu1 %v6372_v43  ;;  %2297 = vmatpush.msra.mxu3 %v6382_v9 }
 0x256   : > { %1952 = vmatmul.f32.gmra.mxu1 %v1540_v36  ;;  %2091 = vmatmul.f32.vlgmr.msrb.gmra.mxu2 %v6167_v48  ;;  %v6274_v48 = vld [vmem:[#allocation9 + $0x50] sm:$0xff] }
 0x257   : > { %2238 = vmatpush.msra.mxu1 %v6376_v30 }
 0x258   : > { %1926 = vmatmul.f32.gmra.mxu0 %v1542_v22 }
 0x259   : > { %2239 = vmatpush.msra.mxu1 %v6386_v23 }
 0x25c   : > { %2120 = vmatmul.f32.vlgmr.msrb.gmra.mxu3 %v1530_v63  ;;  %v6306_v63 = vld [vmem:[#allocation9 + $0x10] sm:$0xff] }
 0x25e   : > { %1955 = vmatmul.f32.gmra.mxu1 %v1544_v25  ;;  %2094 = vmatmul.f32.gmra.mxu2 %v1532_v24 }
 0x260   : > { %2033 = vmatmul.f32.vlgmr.msrb.gmra.mxu0 %v5998_v51  ;;  %v6212_v51 = vld [vmem:[#allocation9 + $0xf0] sm:$0xff] }
 0x261   : > { %2205 = vmatpush.msra.mxu0 %v6212_v51 }
 0x264   : > { %2123 = vmatmul.f32.gmra.mxu3 %v1534_v13 }
 0x266   : > { %2062 = vmatmul.f32.vlgmr.msrb.gmra.mxu1 %v6031_v46  ;;  %2097 = vmatmul.f32.gmra.mxu2 %v1537_v5  ;;  %v6220_v46 = vld [vmem:[#allocation9 + $0xe8] sm:$0xff] }
 0x267   : > { %2264 = vmatpush.msra.mxu2 %v6220_v46 }
 0x268   : > { %2036 = vmatmul.f32.gmra.mxu0 %v6000_v15  ;;  %v6218_v15 = vld [vmem:[#allocation9 + $0xe0] sm:$0xff] }
 0x269   : > { %2206 = vmatpush.msra.mxu0 %v6218_v15 }
 0x26c   : > { %2126 = vmatmul.f32.gmra.mxu3 %v1540_v36 }
 0x26e   : > { %2065 = vmatmul.f32.gmra.mxu1 %v6033_v2  ;;  %2100 = vmatmul.f32.gmra.mxu2 %v1542_v22  ;;  %v6228_v2 = vld [vmem:[#allocation9 + $0xc0] sm:$0xff] }
 0x270   : > { %2039 = vmatmul.f32.gmra.mxu0 %v6002_v56  ;;  %v6222_v56 = vld [vmem:[#allocation9 + $0xd0] sm:$0xff] }
 0x271   : > { %2207 = vmatpush.msra.mxu0 %v6222_v56 }
 0x273   : > { %2208 = vmatpush.msra.mxu0 %v6228_v2 }
 0x274   : > { %2129 = vmatmul.f32.gmra.mxu3 %v1544_v25  ;;  %v6388_v25 = vld [vmem:[#allocation9 + $0x198] sm:$0xff] }
 0x275   : > { %2298 = vmatpush.msra.mxu3 %v6388_v25 }
 0x276   : > { %2068 = vmatmul.f32.gmra.mxu1 %v6037_v59  ;;  %v6230_v59 = vld [vmem:[#allocation9 + $0xc8] sm:$0xff] }
 0x278   : > { %2042 = vmatmul.f32.gmra.mxu0 %v6004_v47  ;;  %v6226_v47 = vld [vmem:[#allocation9 + $0xd8] sm:$0xff] }
 0x279   : > { %2265 = vmatpush.msra.mxu2 %v6226_v47 }
 0x27b   : > { %2266 = vmatpush.msra.mxu2 %v6230_v59 }
 0x27d   : > { %2267 = vmatpush.msra.mxu2 %v6236_v28 }
 0x27e   : > { %2071 = vmatmul.f32.gmra.mxu1 %v6039_v1  ;;  %v6234_v1 = vld [vmem:[#allocation9 + $0xb0] sm:$0xff] }
 0x27f   : > { %2209 = vmatpush.msra.mxu0 %v6234_v1  ;;  %2268 = vmatpush.msra.mxu2 %v6244_v17 }
 0x281   : > { %2210 = vmatpush.msra.mxu0 %v6242_v32  ;;  %2269 = vmatpush.msra.mxu2 %v6250_v34 }
 0x283   : > { %2211 = vmatpush.msra.mxu0 %v6246_v53  ;;  %2270 = vmatpush.msra.mxu2 %v6254_v38 }
 0x285   : > { %2212 = vmatpush.msra.mxu0 %v6252_v35  ;;  %2271 = vmatpush.msra.mxu2 %v6262_v44 }
 0x287   : > { %2213 = vmatpush.msra.mxu0 %v6260_v42  ;;  %2272 = vmatpush.msra.mxu2 %v6272_v31 }
 0x289   : > { %2214 = vmatpush.msra.mxu0 %v6270_v41  ;;  %2273 = vmatpush.msra.mxu2 %v6280_v33 }
 0x28b   : > { %2215 = vmatpush.msra.mxu0 %v6274_v48  ;;  %2274 = vmatpush.msra.mxu2 %v6284_v49 }
 0x28d   : > { %2216 = vmatpush.msra.mxu0 %v6282_v52  ;;  %2275 = vmatpush.msra.mxu2 %v6292_v55 }
 0x28f   : > { %2217 = vmatpush.msra.mxu0 %v6290_v54  ;;  %2276 = vmatpush.msra.mxu2 %v6304_v0 }
 0x291   : > { %2218 = vmatpush.msra.mxu0 %v6302_v57  ;;  %2277 = vmatpush.msra.mxu2 %v6312_v8 }
 0x293   : > { %2219 = vmatpush.msra.mxu0 %v6306_v63  ;;  %2278 = vmatpush.msra.mxu2 %v6316_v20 }
 0x295   : > { %2220 = vmatpush.msra.mxu0 %v6314_v18  ;;  %2387 = vmatpush.msrb.mxu2 %v6214_v26  ;;  %v6396_v26 = vld [vmem:[#allocation9 + $0x190] sm:$0xff] }
 0x296   : > { %2240 = vmatpush.msra.mxu1 %v6396_v26 }
 0x297   : > { %2329 = vmatpush.msrb.mxu0 %v6212_v51  ;;  %2388 = vmatpush.msrb.mxu2 %v6220_v46 }
 0x299   : > { %v6256_v40 = vpop.f32.mrf.mxu2  ;;  %2330 = vmatpush.msrb.mxu0 %v6218_v15  ;;  %2389 = vmatpush.msrb.mxu2 %v6226_v47  ;;  %v6398_v15 = vld [vmem:[#allocation9 + $0x188] sm:$0xff] }
 0x29a   : > { %2299 = vmatpush.msra.mxu3 %v6398_v15 }
 0x29b   : > { %2331 = vmatpush.msrb.mxu0 %v6222_v56  ;;  %2390 = vmatpush.msrb.mxu2 %v6230_v59  ;;  %v6413_v59 = vld [vmem:[#allocation9 + $0x180] sm:$0xff] }
 0x29c   : > { %2241 = vmatpush.msra.mxu1 %v6413_v59 }
 0x29d   : > { %v6266_v45 = vpop.f32.mrf.mxu0  ;;  %2332 = vmatpush.msrb.mxu0 %v6228_v2  ;;  %2391 = vmatpush.msrb.mxu2 %v6236_v28  ;;  %v6417_v28 = vld [vmem:[#allocation9 + $0x170] sm:$0xff] }
 0x29e   : > { %v1803_v21 = vadd.f32 %v6266_v45, %v6351_v14  ;;  %2242 = vmatpush.msra.mxu1 %v6417_v28  ;;  %v6441_v45 = vld [vmem:[#allocation9 + $0x148] sm:$0xff] }
 0x29f   : > { %v6276_v37 = vpop.f32.mrf.mxu3  ;;  %2333 = vmatpush.msrb.mxu0 %v6234_v1  ;;  %2392 = vmatpush.msrb.mxu2 %v6244_v17  ;;  %v6415_v1 = vld [vmem:[#allocation9 + $0x178] sm:$0xff]  ;;  %v6423_v17 = vld [vmem:[#allocation9 + $0x168] sm:$0xff] }
 0x2a0   : > { %2300 = vmatpush.msra.mxu3 %v6415_v1 }
 0x2a1   : > { %v6286_v50 = vpop.f32.mrf.mxu2  ;;  %2334 = vmatpush.msrb.mxu0 %v6242_v32  ;;  %2393 = vmatpush.msrb.mxu2 %v6250_v34 }
 0x2a2   : > { %2301 = vmatpush.msra.mxu3 %v6423_v17 }
 0x2a3   : > { %v1831_v7 = vpop.f32.mrf.mxu1  ;;  %2335 = vmatpush.msrb.mxu0 %v6246_v53  ;;  %2394 = vmatpush.msrb.mxu2 %v6254_v38  ;;  %v6431_v38 = vld [vmem:[#allocation9 + $0x158] sm:$0xff] }
 0x2a4   : > { %v1832_v22 = vadd.f32 %v1831_v7, %v1803_v21  ;;  %2302 = vmatpush.msra.mxu3 %v6431_v38  ;;  %v6477_v21 = vld [vmem:[#allocation9 + $0x120] sm:$0xff] }
 0x2a5   : > { %v6296_v58 = vpop.f32.mrf.mxu0  ;;  %2336 = vmatpush.msrb.mxu0 %v6252_v35  ;;  %2395 = vmatpush.msrb.mxu2 %v6262_v44  ;;  %v6429_v35 = vld [vmem:[#allocation9 + $0x160] sm:$0xff]  ;;  %v6439_v44 = vld [vmem:[#allocation9 + $0x150] sm:$0xff] }
 0x2a6   : > { %v1861_v56 = vadd.f32 %v6256_v40, %v1832_v22  ;;  %v1806_v2 = vadd.f32 %v6296_v58, %v6351_v14  ;;  %2243 = vmatpush.msra.mxu1 %v6429_v35  ;;  %2303 = vmatpush.msra.mxu3 %v6441_v45  ;;  %v6462_v58 = vld [vmem:[#allocation9 + $0x140] sm:$0xff] }
 0x2a7   : > { %v6300_v62 = vpop.f32.mrf.mxu3  ;;  %2337 = vmatpush.msrb.mxu0 %v6260_v42  ;;  %2396 = vmatpush.msrb.mxu2 %v6272_v31 }
 0x2a8   : > { %v1890_v34 = vadd.f32 %v6276_v37, %v1861_v56  ;;  %2244 = vmatpush.msra.mxu1 %v6439_v44  ;;  %v6484_v56 = vld [vmem:[#allocation9 + $0x110] sm:$0xff] }
 0x2a9   : > { %v6308_v6 = vpop.f32.mrf.mxu2  ;;  %2338 = vmatpush.msrb.mxu0 %v6270_v41  ;;  %2397 = vmatpush.msrb.mxu2 %v6280_v33 }
 0x2aa   : > { %2245 = vmatpush.msra.mxu1 %v6462_v58 }
 0x2ab   : > { %v6318_v24 = vpop.f32.mrf.mxu1  ;;  %2339 = vmatpush.msrb.mxu0 %v6274_v48  ;;  %2398 = vmatpush.msrb.mxu2 %v6284_v49 }
 0x2ac   : > { %v1835_v53 = vadd.f32 %v6318_v24, %v1806_v2 }
 0x2ad   : > { %v6322_v10 = vpop.f32.mrf.mxu0  ;;  %2340 = vmatpush.msrb.mxu0 %v6282_v52  ;;  %2399 = vmatpush.msrb.mxu2 %v6292_v55  ;;  %v6469_v55 = vld [vmem:[#allocation9 + $0x130] sm:$0xff] }
 0x2ae   : > { %v1864_v31 = vadd.f32 %v6286_v50, %v1835_v53  ;;  %v1809_v48 = vadd.f32 %v6322_v10, %v6351_v14  ;;  %v6471_v10 = vld [vmem:[#allocation9 + $0x128] sm:$0xff]  ;;  %2246 = vmatpush.msra.mxu1 %v6469_v55 }
 0x2af   : > { %v6336_v19 = vpop.f32.mrf.mxu3  ;;  %2341 = vmatpush.msrb.mxu0 %v6290_v54  ;;  %2400 = vmatpush.msrb.mxu2 %v6304_v0  ;;  %v6467_v54 = vld [vmem:[#allocation9 + $0x138] sm:$0xff] }
 0x2b0   : > { %v1893_v49 = vadd.f32 %v6300_v62, %v1864_v31  ;;  %2304 = vmatpush.msra.mxu3 %v6467_v54  ;;  %v6482_v0 = vld [vmem:[#allocation9 + $0x118] sm:$0xff]  ;;  %2247 = vmatpush.msra.mxu1 %v6477_v21 }
 0x2b1   : > { %v6346_v13 = vpop.f32.mrf.mxu2  ;;  %2342 = vmatpush.msrb.mxu0 %v6302_v57  ;;  %2401 = vmatpush.msrb.mxu2 %v6312_v8 }
 0x2b2   : > { %2305 = vmatpush.msra.mxu3 %v6471_v10  ;;  %2248 = vmatpush.msra.mxu1 %v6484_v56 }
 0x2b3   : > { %v6359_v5 = vpop.f32.mrf.mxu1  ;;  %2343 = vmatpush.msrb.mxu0 %v6306_v63  ;;  %2402 = vmatpush.msrb.mxu2 %v6316_v20  ;;  %v6494_v63 = vld [vmem:[#allocation9 + $0x108] sm:$0xff] }
 0x2b4   : > { %v1838_v52 = vadd.f32 %v6359_v5, %v1809_v48  ;;  %2306 = vmatpush.msra.mxu3 %v6482_v0 }
 0x2b5   : > { %v6365_v39 = vpop.f32.mrf.mxu0  ;;  %2344 = vmatpush.msrb.mxu0 %v6314_v18 }
 0x2b6   : > { %v1867_v57 = vadd.f32 %v6308_v6, %v1838_v52  ;;  %v1812_v2 = vadd.f32 %v6365_v39, %v6351_v14  ;;  %v6504_v14 = vld [vmem:[#allocation9 + $0x100] sm:$0xff]  ;;  %2307 = vmatpush.msra.mxu3 %v6494_v63 }
 0x2b7   : > { %v6378_v36 = vpop.f32.mrf.mxu3  ;;  %2249 = vmatpush.msra.mxu1 %v6504_v14 }
 0x2b8   : > { %2416 = vmatpush.msrb.mxu3 %v6328_v61 }
 0x2b9   : > { %v6390_v51 = vpop.f32.mrf.mxu2  ;;  %2358 = vmatpush.msrb.mxu1 %v6330_v12 }
 0x2ba   : > { %2417 = vmatpush.msrb.mxu3 %v6332_v3  ;;  %v6527_v3 = vperm.slane %v6334_v60, 1 }
 0x2bb   : > { %v6400_v46 = vpop.f32.mrf.mxu1  ;;  %2359 = vmatpush.msrb.mxu1 %v6342_v4 }
 0x2bc   : > { %v1841_v8 = vadd.f32 %v6400_v46, %v1812_v2  ;;  %2418 = vmatpush.msrb.mxu3 %v6344_v11 }
 0x2bd   : > { %v1918_v47 = vpop.f32.mrf.mxu0  ;;  %2360 = vmatpush.msrb.mxu1 %v6355_v16 }
 0x2be   : > { %v1919_v42 = vadd.f32 %v1918_v47, %v1890_v34  ;;  %v1896_v34 = vadd.f32 %v6336_v19, %v1867_v57  ;;  %v1870_v39 = vadd.f32 %v6346_v13, %v1841_v8  ;;  %2419 = vmatpush.msrb.mxu3 %v6357_v29  ;;  %v1977_v29 = vadd.f32 %v6390_v51, %v6527_v3 }
 0x2bf   : > { %v6419_v32 = vpop.f32.mrf.mxu3  ;;  %2361 = vmatpush.msrb.mxu1 %v6372_v43 }
 0x2c0   : > { %v1899_v12 = vadd.f32 %v6378_v36, %v1870_v39  ;;  %2420 = vmatpush.msrb.mxu3 %v6374_v27  ;;  %v2006_v60 = vadd.f32 %v6419_v32, %v1977_v29 }
 0x2c1   : > { %v6433_v40 = vpop.f32.mrf.mxu2  ;;  %2362 = vmatpush.msrb.mxu1 %v6376_v30 }
 0x2c2   : > { %2421 = vmatpush.msrb.mxu3 %v6382_v9  ;;  %v1980_v51 = vadd.f32 %v6433_v40, %v6527_v3 }
 0x2c3   : > { %v1947_v41 = vpop.f32.mrf.mxu1  ;;  %2363 = vmatpush.msrb.mxu1 %v6386_v23 }
 0x2c4   : > { %v1948_v37 = vadd.f32 %v1947_v41, %v1919_v42  ;;  %2422 = vmatpush.msrb.mxu3 %v6388_v25 }
 0x2c5   : > { %v1921_v7 = vpop.f32.mrf.mxu0  ;;  %2364 = vmatpush.msrb.mxu1 %v6396_v26 }
 0x2c6   : > { %v6452_v33 = vmax.f32 %v1948_v37, 0.0  ;;  %v1922_v24 = vadd.f32 %v1921_v7, %v1893_v49  ;;  %2423 = vmatpush.msrb.mxu3 %v6398_v15 }
 0x2c7   : > { %v6456_v50 = vpop.f32.mrf.mxu3  ;;  %2365 = vmatpush.msrb.mxu1 %v6413_v59 }
 0x2c8   : > { %2221 = vmatmul.f32.vlgmr.msra.gmra.mxu0 %v6452_v33  ;;  %2279 = vmatmul.f32.vlgmr.msra.gmra.mxu2 %v6452_v33  ;;  %v2321_v26 = vmul.f32 %v6452_v33, %v6452_v33  ;;  %v2009_v59 = vadd.f32 %v6456_v50, %v1980_v51 }
 0x2c9   : > { %v6473_v62 = vpop.f32.mrf.mxu2  ;;  %2424 = vmatpush.msrb.mxu3 %v6415_v1  ;;  %2366 = vmatpush.msrb.mxu1 %v6417_v28 }
 0x2cb   : > { %v1950_v5 = vpop.f32.mrf.mxu1  ;;  %2425 = vmatpush.msrb.mxu3 %v6423_v17  ;;  %2367 = vmatpush.msrb.mxu1 %v6429_v35 }
 0x2cc   : > { %v1951_v22 = vadd.f32 %v1950_v5, %v1922_v24 }
 0x2cd   : > { %v1924_v47 = vpop.f32.mrf.mxu0  ;;  %2426 = vmatpush.msrb.mxu3 %v6431_v38  ;;  %2368 = vmatpush.msrb.mxu1 %v6439_v44 }
 0x2ce   : > { %v6490_v53 = vmax.f32 %v1951_v22, 0.0  ;;  %v1925_v18 = vadd.f32 %v1924_v47, %v1896_v34 }
 0x2cf   : > { %v6496_v6 = vpop.f32.mrf.mxu3  ;;  %2427 = vmatpush.msrb.mxu3 %v6441_v45  ;;  %2369 = vmatpush.msrb.mxu1 %v6462_v58  ;;  %v1983_v45 = vadd.f32 %v6473_v62, %v6527_v3 }
 0x2d0   : > { %2224 = vmatmul.f32.gmra.mxu0 %v6490_v53  ;;  %2282 = vmatmul.f32.gmra.mxu2 %v6490_v53  ;;  %v2323_v37 = vmul.f32 %v6490_v53, %v6490_v53 }
 0x2d1   : > { %v6513_v19 = vpop.f32.mrf.mxu2  ;;  %2428 = vmatpush.msrb.mxu3 %v6467_v54  ;;  %2370 = vmatpush.msrb.mxu1 %v6469_v55  ;;  %v2012_v7 = vadd.f32 %v6496_v6, %v1983_v45 }
 0x2d2   : > { %v1986_v55 = vadd.f32 %v6513_v19, %v6527_v3 }
 0x2d3   : > { %v1953_v20 = vpop.f32.mrf.mxu1  ;;  %2429 = vmatpush.msrb.mxu3 %v6471_v10  ;;  %2371 = vmatpush.msrb.mxu1 %v6477_v21 }
 0x2d4   : > { %v1954_v46 = vadd.f32 %v1953_v20, %v1925_v18 }
 0x2d5   : > { %v1927_v42 = vpop.f32.mrf.mxu0  ;;  %2430 = vmatpush.msrb.mxu3 %v6482_v0  ;;  %2372 = vmatpush.msrb.mxu1 %v6484_v56 }
 0x2d6   : > { %v6515_v41 = vmax.f32 %v1954_v46, 0.0  ;;  %v1928_v4 = vadd.f32 %v1927_v42, %v1899_v12 }
 0x2d7   : > { %v6519_v61 = vpop.f32.mrf.mxu3  ;;  %2431 = vmatpush.msrb.mxu3 %v6494_v63  ;;  %2373 = vmatpush.msrb.mxu1 %v6504_v14 }
 0x2d8   : > { %2227 = vmatmul.f32.gmra.mxu0 %v6515_v41  ;;  %2285 = vmatmul.f32.gmra.mxu2 %v6515_v41  ;;  %v2325_v62 = vmul.f32 %v6515_v41, %v6515_v41  ;;  %v2015_v21 = vadd.f32 %v6519_v61, %v1986_v55 }
 0x2d9   : > { %v2092_v43 = vpop.f32.mrf.mxu2 }
 0x2db   : > { %v1956_v13 = vpop.f32.mrf.mxu1 }
 0x2dc   : > { %v1957_v11 = vadd.f32 %v1956_v13, %v1928_v4 }
 0x2dd   : > { %v2034_v16 = vpop.f32.mrf.mxu0 }
 0x2de   : > { %v6535_v36 = vmax.f32 %v1957_v11, 0.0  ;;  %v2035_v30 = vadd.f32 %v2034_v16, %v2006_v60 }
 0x2df   : > { %v2121_v27 = vpop.f32.mrf.mxu3 }
 0x2e0   : > { %2230 = vmatmul.f32.gmra.mxu0 %v6535_v36  ;;  %2288 = vmatmul.f32.gmra.mxu2 %v6535_v36  ;;  %v2327_v6 = vmul.f32 %v6535_v36, %v6535_v36 }
 0x2e1   : > { %v2095_v28 = vpop.f32.mrf.mxu2 }
 0x2e3   : > { %v2063_v9 = vpop.f32.mrf.mxu1 }
 0x2e4   : > { %v2064_v23 = vadd.f32 %v2063_v9, %v2035_v30 }
 0x2e5   : > { %v2037_v25 = vpop.f32.mrf.mxu0 }
 0x2e6   : > { %v2093_v15 = vadd.f32 %v2092_v43, %v2064_v23  ;;  %v2038_v17 = vadd.f32 %v2037_v25, %v2009_v59 }
 0x2e7   : > { %v2124_v35 = vpop.f32.mrf.mxu3 }
 0x2e8   : > { %v2122_v1 = vadd.f32 %v2121_v27, %v2093_v15  ;;  %2345 = vmatmul.f32.vlgmr.msrb.gmra.mxu0 %v2321_v26  ;;  %2403 = vmatmul.f32.vlgmr.msrb.gmra.mxu2 %v2321_v26 }
 0x2e9   : > { %v2098_v49 = vpop.f32.mrf.mxu2 }
 0x2ea   : > { %v6557_v32 = vmax.f32 %v2122_v1, 0.0 }
 0x2eb   : > { %v2066_v40 = vpop.f32.mrf.mxu1 }
 0x2ec   : > { %v2067_v38 = vadd.f32 %v2066_v40, %v2038_v17  ;;  %2250 = vmatmul.f32.vlgmr.msra.gmra.mxu1 %v6557_v32  ;;  %2308 = vmatmul.f32.vlgmr.msra.gmra.mxu3 %v6557_v32  ;;  %v2322_v18 = vmul.f32 %v6557_v32, %v6557_v32 }
 0x2ed   : > { %v2040_v44 = vpop.f32.mrf.mxu0 }
 0x2ee   : > { %v2096_v31 = vadd.f32 %v2095_v28, %v2067_v38  ;;  %v2041_v52 = vadd.f32 %v2040_v44, %v2012_v7 }
 0x2ef   : > { %v2127_v54 = vpop.f32.mrf.mxu3 }
 0x2f0   : > { %v2125_v48 = vadd.f32 %v2124_v35, %v2096_v31  ;;  %2348 = vmatmul.f32.gmra.mxu0 %v2323_v37  ;;  %2406 = vmatmul.f32.gmra.mxu2 %v2323_v37 }
 0x2f1   : > { %v2101_v2 = vpop.f32.mrf.mxu2 }
 0x2f2   : > { %v6574_v50 = vmax.f32 %v2125_v48, 0.0 }
 0x2f3   : > { %v2069_v58 = vpop.f32.mrf.mxu1 }
 0x2f4   : > { %v2070_v24 = vadd.f32 %v2069_v58, %v2041_v52  ;;  %2253 = vmatmul.f32.gmra.mxu1 %v6574_v50  ;;  %2311 = vmatmul.f32.gmra.mxu3 %v6574_v50  ;;  %v2324_v20 = vmul.f32 %v6574_v50, %v6574_v50 }
 0x2f5   : > { %v2043_v5 = vpop.f32.mrf.mxu0 }
 0x2f6   : > { %v2099_v10 = vadd.f32 %v2098_v49, %v2070_v24  ;;  %v2044_v0 = vadd.f32 %v2043_v5, %v2015_v21  ;;  %v4550_v5 = vld [vmem:[%s5112_s11 + $0xee0] sm:$0xff] }
 0x2f7   : > { %v2130_v8 = vpop.f32.mrf.mxu3 }
 0x2f8   : > { %v2128_v57 = vadd.f32 %v2127_v54, %v2099_v10  ;;  %2351 = vmatmul.f32.gmra.mxu0 %v2325_v62  ;;  %2409 = vmatmul.f32.gmra.mxu2 %v2325_v62  ;;  %v4552_v54 = vld [vmem:[%s5112_s11 + $0xef0] sm:$0xff] }
 0x2f9   : > { %2941 = vmatpush.msra.mxu2 %v4552_v54  ;;  %v4572_v54 = vld [vmem:[%s5112_s11 + $0xf90] sm:$0xff] }
 0x2fa   : > { %v6583_v22 = vmax.f32 %v2128_v57, 0.0 }
 0x2fb   : > { %v2072_v56 = vpop.f32.mrf.mxu1  ;;  %2942 = vmatpush.msra.mxu2 %v4550_v5  ;;  %v4516_v5 = vld [vmem:[%s5112_s11 + $0xdd0] sm:$0xff] }
 0x2fc   : > { %v2073_v47 = vadd.f32 %v2072_v56, %v2044_v0  ;;  %2256 = vmatmul.f32.gmra.mxu1 %v6583_v22  ;;  %2314 = vmatmul.f32.gmra.mxu3 %v6583_v22  ;;  %v2326_v39 = vmul.f32 %v6583_v22, %v6583_v22  ;;  %v4548_v0 = vld [vmem:[%s5112_s11 + $0xed0] sm:$0xff] }
 0x2fd   : > { %2943 = vmatpush.msra.mxu2 %v4548_v0  ;;  %v4570_v0 = vld [vmem:[%s5112_s11 + $0xf80] sm:$0xff] }
 0x2fe   : > { %v2102_v63 = vadd.f32 %v2101_v2, %v2073_v47  ;;  %v4546_v2 = vld [vmem:[%s5112_s11 + $0xec0] sm:$0xff] }
 0x2ff   : > { %2944 = vmatpush.msra.mxu2 %v4546_v2 }
 0x300   : > { %v2131_v34 = vadd.f32 %v2130_v8, %v2102_v63  ;;  %2354 = vmatmul.f32.gmra.mxu0 %v2327_v6  ;;  %2412 = vmatmul.f32.gmra.mxu2 %v2327_v6  ;;  %v4584_v63 = vld [vmem:[%s5112_s11 + $0xff0] sm:$0xff] }
 0x301   : > { %2970 = vmatpush.msra.mxu3 %v4584_v63  ;;  %v4514_v63 = vld [vmem:[%s5112_s11 + $0xdc0] sm:$0xff] }
 0x302   : > { %v6589_v14 = vmax.f32 %v2131_v34, 0.0 }
 0x304   : > { %2259 = vmatmul.f32.gmra.mxu1 %v6589_v14  ;;  %2317 = vmatmul.f32.gmra.mxu3 %v6589_v14  ;;  %v2328_v46 = vmul.f32 %v6589_v14, %v6589_v14 }
 0x30c   : > { %2374 = vmatmul.f32.vlgmr.msrb.gmra.mxu1 %v2322_v18  ;;  %2432 = vmatmul.f32.vlgmr.msrb.gmra.mxu3 %v2322_v18 }
 0x314   : > { %2377 = vmatmul.f32.gmra.mxu1 %v2324_v20  ;;  %2435 = vmatmul.f32.gmra.mxu3 %v2324_v20  ;;  %v4544_v20 = vld [vmem:[%s5112_s11 + $0xeb0] sm:$0xff] }
 0x315   : > { %2945 = vmatpush.msra.mxu2 %v4544_v20  ;;  %v4474_v20 = vld [vmem:[%s5112_s11 + $0xc80] sm:$0xff] }
 0x31c   : > { %2380 = vmatmul.f32.gmra.mxu1 %v2326_v39  ;;  %2438 = vmatmul.f32.gmra.mxu3 %v2326_v39  ;;  %v4582_v39 = vld [vmem:[%s5112_s11 + $0xfe0] sm:$0xff] }
 0x31d   : > { %2971 = vmatpush.msra.mxu3 %v4582_v39 }
 0x324   : > { %2383 = vmatmul.f32.gmra.mxu1 %v2328_v46  ;;  %2441 = vmatmul.f32.gmra.mxu3 %v2328_v46 }
 0x345   : > { %v2222_v19 = vpop.f32.mrf.mxu0 }
 0x34b   : > { %v2280_v42 = vpop.f32.mrf.mxu2 }
 0x34d   : > { %v2225_v61 = vpop.f32.mrf.mxu0 }
 0x353   : > { %v2283_v3 = vpop.f32.mrf.mxu2 }
 0x355   : > { %v2228_v4 = vpop.f32.mrf.mxu0 }
 0x35b   : > { %v2286_v16 = vpop.f32.mrf.mxu2 }
 0x35d   : > { %v2231_v43 = vpop.f32.mrf.mxu0 }
 0x363   : > { %v2289_v27 = vpop.f32.mrf.mxu2 }
 0x365   : > { %v2346_v23 = vpop.f32.mrf.mxu0 }
 0x369   : > { %v2251_v12 = vpop.f32.mrf.mxu1 }
 0x36a   : > { %v2252_v59 = vadd.f32 %v2251_v12, %v2222_v19  ;;  %v4542_v12 = vld [vmem:[%s5112_s11 + $0xea0] sm:$0xff] }
 0x36b   : > { %v6601_v51 = vpop.f32.mrf.mxu2  ;;  %2946 = vmatpush.msra.mxu2 %v4542_v12  ;;  %v4510_v12 = vld [vmem:[%s5112_s11 + $0xda0] sm:$0xff] }
 0x36d   : > { %v2349_v28 = vpop.f32.mrf.mxu0 }
 0x36f   : > { %v2309_v13 = vpop.f32.mrf.mxu3 }
 0x370   : > { %v2310_v45 = vadd.f32 %v2309_v13, %v2280_v42 }
 0x371   : > { %v2254_v11 = vpop.f32.mrf.mxu1 }
 0x372   : > { %v2255_v15 = vadd.f32 %v2254_v11, %v2225_v61  ;;  %v4488_v61 = vld [vmem:[%s5112_s11 + $0xcf0] sm:$0xff] }
 0x373   : > { %v2407_v48 = vpop.f32.mrf.mxu2  ;;  %2883 = vmatpush.msra.mxu0 %v4488_v61  ;;  %v4566_v61 = vld [vmem:[%s5112_s11 + $0xf60] sm:$0xff] }
 0x374   : > { %v2445_v17 = vadd.f32 %v2255_v15, %v2252_v59  ;;  %v4484_v15 = vld [vmem:[%s5112_s11 + $0xcd0] sm:$0xff]  ;;  %v4538_v59 = vld [vmem:[%s5112_s11 + $0xe80] sm:$0xff] }
 0x375   : > { %v2352_v55 = vpop.f32.mrf.mxu0 }
 0x377   : > { %v2312_v29 = vpop.f32.mrf.mxu3 }
 0x378   : > { %v2313_v40 = vadd.f32 %v2312_v29, %v2283_v3  ;;  %v4580_v3 = vld [vmem:[%s5112_s11 + $0xfd0] sm:$0xff] }
 0x379   : > { %v2257_v60 = vpop.f32.mrf.mxu1  ;;  %2972 = vmatpush.msra.mxu3 %v4580_v3  ;;  %v4472_v3 = vld [vmem:[%s5112_s11 + $0xc70] sm:$0xff] }
 0x37a   : > { %v2258_v1 = vadd.f32 %v2257_v60, %v2228_v4  ;;  %v2454_v52 = vadd.f32 %v2313_v40, %v2310_v45  ;;  %v4486_v60 = vld [vmem:[%s5112_s11 + $0xce0] sm:$0xff]  ;;  %v4520_v40 = vld [vmem:[%s5112_s11 + $0xdf0] sm:$0xff] }
 0x37b   : > { %v2410_v6 = vpop.f32.mrf.mxu2  ;;  %2884 = vmatpush.msra.mxu0 %v4486_v60  ;;  %v4536_v45 = vld [vmem:[%s5112_s11 + $0xe70] sm:$0xff]  ;;  %2912 = vmatpush.msra.mxu1 %v4520_v40  ;;  %v4470_v60 = vld [vmem:[%s5112_s11 + $0xc60] sm:$0xff] }
 0x37c   : > { %v2446_v44 = vadd.f32 %v2445_v17, %v2258_v1  ;;  %v4576_v1 = vld [vmem:[%s5112_s11 + $0xfb0] sm:$0xff] }
 0x37d   : > { %v2355_v4 = vpop.f32.mrf.mxu0  ;;  %2885 = vmatpush.msra.mxu0 %v4484_v15  ;;  %v4468_v15 = vld [vmem:[%s5112_s11 + $0xc50] sm:$0xff] }
 0x37e   : > { %v4504_v40 = vld [vmem:[%s5112_s11 + $0xd70] sm:$0xff] }
 0x37f   : > { %v2315_v30 = vpop.f32.mrf.mxu3 }
 0x380   : > { %v2316_v31 = vadd.f32 %v2315_v30, %v2286_v16  ;;  %v4578_v30 = vld [vmem:[%s5112_s11 + $0xfc0] sm:$0xff] }
 0x381   : > { %v2260_v9 = vpop.f32.mrf.mxu1  ;;  %2973 = vmatpush.msra.mxu3 %v4578_v30  ;;  %v4562_v30 = vld [vmem:[%s5112_s11 + $0xf40] sm:$0xff] }
 0x382   : > { %v2261_v35 = vadd.f32 %v2260_v9, %v2231_v43  ;;  %v2455_v58 = vadd.f32 %v2454_v52, %v2316_v31 }
 0x383   : > { %2974 = vmatpush.msra.mxu3 %v4576_v1  ;;  %v4560_v1 = vld [vmem:[%s5112_s11 + $0xf30] sm:$0xff] }
 0x384   : > { %v2447_v7 = vadd.f32 %v2446_v44, %v2261_v35  ;;  %v4482_v44 = vld [vmem:[%s5112_s11 + $0xcc0] sm:$0xff] }
 0x385   : > { %2886 = vmatpush.msra.mxu0 %v4482_v44  ;;  %v4466_v44 = vld [vmem:[%s5112_s11 + $0xc40] sm:$0xff] }
 0x386   : > { %v2448_v24 = vrot.slane %v2447_v7, 4 }
 0x387   : > { %v2318_v25 = vpop.f32.mrf.mxu3 }
 0x388   : > { %v2319_v49 = vadd.f32 %v2318_v25, %v2289_v27  ;;  %v2449_v57 = vadd.f32 %v2448_v24, %v2447_v7  ;;  %v4540_v27 = vld [vmem:[%s5112_s11 + $0xe90] sm:$0xff]  ;;  %v4534_v24 = vld [vmem:[%s5112_s11 + $0xe60] sm:$0xff] }
 0x389   : > { %v2375_v26 = vpop.f32.mrf.mxu1  ;;  %2947 = vmatpush.msra.mxu2 %v4540_v27  ;;  %v4524_v27 = vld [vmem:[%s5112_s11 + $0xe10] sm:$0xff] }
 0x38a   : > { %v2456_v10 = vadd.f32 %v2455_v58, %v2319_v49  ;;  %v2450_v8 = vrot.slane %v2449_v57, 2  ;;  %v2376_v34 = vadd.f32 %v2375_v26, %v2346_v23  ;;  %v4518_v49 = vld [vmem:[%s5112_s11 + $0xde0] sm:$0xff]  ;;  %v4480_v58 = vld [vmem:[%s5112_s11 + $0xcb0] sm:$0xff] }
 0x38b   : > { %2948 = vmatpush.msra.mxu2 %v4538_v59  ;;  %2913 = vmatpush.msra.mxu1 %v4518_v49  ;;  %v4522_v59 = vld [vmem:[%s5112_s11 + $0xe00] sm:$0xff] }
 0x38c   : > { %v2457_v56 = vrot.slane %v2456_v10, 4  ;;  %v2451_v11 = vadd.f32 %v2450_v8, %v2449_v57  ;;  %2887 = vmatpush.msra.mxu0 %v4480_v58  ;;  %v4532_v57 = vld [vmem:[%s5112_s11 + $0xe50] sm:$0xff]  ;;  %v4530_v8 = vld [vmem:[%s5112_s11 + $0xe40] sm:$0xff] }
 0x38d   : > { %2949 = vmatpush.msra.mxu2 %v4536_v45  ;;  %2914 = vmatpush.msra.mxu1 %v4516_v5  ;;  %v4558_v45 = vld [vmem:[%s5112_s11 + $0xf20] sm:$0xff] }
 0x38e   : > { %v2458_v46 = vadd.f32 %v2457_v56, %v2456_v10  ;;  %v4498_v5 = vld [vmem:[%s5112_s11 + $0xd40] sm:$0xff] }
 0x38f   : > { %v2433_v38 = vpop.f32.mrf.mxu3  ;;  %2950 = vmatpush.msra.mxu2 %v4534_v24  ;;  %2915 = vmatpush.msra.mxu1 %v4514_v63  ;;  %v4500_v24 = vld [vmem:[%s5112_s11 + $0xd50] sm:$0xff]  ;;  %v4481_v63 = vld [vmem:[%s5112_s11 + $0xcb8] sm:$0xff] }
 0x390   : > { %v2459_v9 = vrot.slane %v2458_v46, 2  ;;  %v2434_v23 = vadd.f32 %v2433_v38, %v6601_v51  ;;  %v2413_v51 = vpop.f32.mrf.mxu2 }
 0x391   : > { %v2378_v37 = vpop.f32.mrf.mxu1  ;;  %2951 = vmatpush.msra.mxu2 %v4532_v57  ;;  %v4483_v57 = vld [vmem:[%s5112_s11 + $0xcc8] sm:$0xff] }
 0x392   : > { %v2379_v47 = vadd.f32 %v2378_v37, %v2349_v28  ;;  %v2452_v28 = vrot.slane %v2451_v11, 1  ;;  %v2460_v38 = vadd.f32 %v2459_v9, %v2458_v46  ;;  %v4574_v37 = vld [vmem:[%s5112_s11 + $0xfa0] sm:$0xff] }
 0x393   : > { %2975 = vmatpush.msra.mxu3 %v4574_v37  ;;  %2952 = vmatpush.msra.mxu2 %v4530_v8  ;;  %v4502_v37 = vld [vmem:[%s5112_s11 + $0xd60] sm:$0xff] }
 0x394   : > { %v2465_v42 = vadd.f32 %v2379_v47, %v2376_v34  ;;  %v2461_v56 = vrot.slane %v2460_v38, 1  ;;  %v4568_v34 = vld [vmem:[%s5112_s11 + $0xf70] sm:$0xff] }
 0x395   : > { %2976 = vmatpush.msra.mxu3 %v4572_v54  ;;  %v4462_v54 = vld [vmem:[%s5112_s11 + $0xc20] sm:$0xff] }
 0x397   : > { %v2436_v62 = vpop.f32.mrf.mxu3  ;;  %2977 = vmatpush.msra.mxu3 %v4570_v0  ;;  %v4521_v0 = vld [vmem:[%s5112_s11 + $0xdf8] sm:$0xff] }
 0x398   : > { %v2437_v16 = vadd.f32 %v2436_v62, %v2407_v48 }
 0x399   : > { %v2381_v21 = vpop.f32.mrf.mxu1  ;;  %2978 = vmatpush.msra.mxu3 %v4568_v34  ;;  %v4494_v34 = vld [vmem:[%s5112_s11 + $0xd20] sm:$0xff] }
 0x39a   : > { %v2382_v18 = vadd.f32 %v2381_v21, %v2352_v55  ;;  %v2474_v17 = vadd.f32 %v2437_v16, %v2434_v23  ;;  %v2453_v55 = vadd.f32 %v2452_v28, %v2451_v11  ;;  %v4478_v21 = vld [vmem:[%s5112_s11 + $0xca0] sm:$0xff]  ;;  %v2462_v11 = vadd.f32 %v2461_v56, %v2460_v38 }
 0x39b   : > { %2888 = vmatpush.msra.mxu0 %v4478_v21  ;;  %2979 = vmatpush.msra.mxu3 %v4566_v61  ;;  %v4460_v21 = vld [vmem:[%s5112_s11 + $0xc10] sm:$0xff]  ;;  %v4614_v61 = vld [vmem:[%s5112_s11 + $0x10e0] sm:$0xff] }
 0x39c   : > { %v2466_v29 = vadd.f32 %v2465_v42, %v2382_v18  ;;  %v4512_v18 = vld [vmem:[%s5112_s11 + $0xdb0] sm:$0xff]  ;;  %v6638_v39 = vmul.f32 0.001953125, %v2453_v55  ;;  %v6656_v28 = vmul.f32 0.001953125, %v2462_v11  ;;  %v4554_v55 = vld [vmem:[%s5112_s11 + $0xf00] sm:$0xff] }
 0x39d   : > { %v4528_v42 = vld [vmem:[%s5112_s11 + $0xe30] sm:$0xff]  ;;  %2916 = vmatpush.msra.mxu1 %v4512_v18 }
 0x39e   : > { %2953 = vmatpush.msra.mxu2 %v4528_v42  ;;  %v2485_v9 = vmul.f32 %v6638_v39, %v6638_v39  ;;  %v2486_v49 = vmul.f32 %v6656_v28, %v6656_v28  ;;  %v4616_v18 = vld [vmem:[%s5112_s11 + $0x10f0] sm:$0xff] }
 0x39f   : > { %v2439_v19 = vpop.f32.mrf.mxu3  ;;  %2917 = vmatpush.msra.mxu1 %v4510_v12  ;;  %v4492_v42 = vld [vmem:[%s5112_s11 + $0xd10] sm:$0xff] }
 0x3a0   : > { %v2440_v25 = vadd.f32 %v2439_v19, %v2410_v6  ;;  %v4476_v6 = vld [vmem:[%s5112_s11 + $0xc90] sm:$0xff] }
 0x3a1   : > { %v2384_v13 = vpop.f32.mrf.mxu1  ;;  %2889 = vmatpush.msra.mxu0 %v4476_v6  ;;  %v4519_v6 = vld [vmem:[%s5112_s11 + $0xde8] sm:$0xff]  ;;  %v4612_v11 = vld [vmem:[%s5112_s11 + $0x10d0] sm:$0xff] }
 0x3a2   : > { %v2385_v43 = vadd.f32 %v2384_v13, %v2355_v4  ;;  %v2475_v7 = vadd.f32 %v2474_v17, %v2440_v25  ;;  %v4526_v4 = vld [vmem:[%s5112_s11 + $0xe20] sm:$0xff]  ;;  %v4564_v13 = vld [vmem:[%s5112_s11 + $0xf50] sm:$0xff] }
 0x3a3   : > { %2890 = vmatpush.msra.mxu0 %v4474_v20  ;;  %2954 = vmatpush.msra.mxu2 %v4526_v4  ;;  %v4515_v4 = vld [vmem:[%s5112_s11 + $0xdc8] sm:$0xff] }
 0x3a4   : > { %v2467_v26 = vadd.f32 %v2466_v29, %v2385_v43  ;;  %v4508_v43 = vld [vmem:[%s5112_s11 + $0xd90] sm:$0xff]  ;;  %2980 = vmatpush.msra.mxu3 %v4564_v13  ;;  %v4490_v13 = vld [vmem:[%s5112_s11 + $0xd00] sm:$0xff] }
 0x3a5   : > { %2891 = vmatpush.msra.mxu0 %v4472_v3  ;;  %2918 = vmatpush.msra.mxu1 %v4508_v43  ;;  %v4477_v3 = vld [vmem:[%s5112_s11 + $0xc98] sm:$0xff] }
 0x3a6   : > { %v2468_v35 = vrot.slane %v2467_v26, 4  ;;  %2955 = vmatpush.msra.mxu2 %v4524_v27  ;;  %2981 = vmatpush.msra.mxu3 %v4562_v30  ;;  %v4513_v43 = vld [vmem:[%s5112_s11 + $0xdb8] sm:$0xff]  ;;  %v4648_v27 = vld [vmem:[%s5112_s11 + $0x11f0] sm:$0xff]  ;;  %v4610_v30 = vld [vmem:[%s5112_s11 + $0x10c0] sm:$0xff] }
 0x3a7   : > { %v2442_v31 = vpop.f32.mrf.mxu3  ;;  %2892 = vmatpush.msra.mxu0 %v4470_v60 }
 0x3a8   : > { %v2469_v48 = vadd.f32 %v2468_v35, %v2467_v26  ;;  %v2443_v52 = vadd.f32 %v2442_v31, %v2413_v51  ;;  %v4506_v26 = vld [vmem:[%s5112_s11 + $0xd80] sm:$0xff]  ;;  %v4489_v51 = vld [vmem:[%s5112_s11 + $0xcf8] sm:$0xff]  ;;  %2956 = vmatpush.msra.mxu2 %v4522_v59  ;;  %2982 = vmatpush.msra.mxu3 %v4560_v1  ;;  %v4608_v59 = vld [vmem:[%s5112_s11 + $0x10b0] sm:$0xff] }
 0x3a9   : > { %2919 = vmatpush.msra.mxu1 %v4506_v26  ;;  %2893 = vmatpush.msra.mxu0 %v4468_v15  ;;  %v4511_v26 = vld [vmem:[%s5112_s11 + $0xda8] sm:$0xff]  ;;  %v4646_v15 = vld [vmem:[%s5112_s11 + $0x11e0] sm:$0xff] }
 0x3aa   : > { %v2470_v10 = vrot.slane %v2469_v48, 2  ;;  %v2476_v62 = vadd.f32 %v2475_v7, %v2443_v52  ;;  %v4464_v7 = vld [vmem:[%s5112_s11 + $0xc30] sm:$0xff]  ;;  %v4487_v52 = vld [vmem:[%s5112_s11 + $0xce8] sm:$0xff]  ;;  %2983 = vmatpush.msra.mxu3 %v4558_v45  ;;  %3057 = vmatpush.msrb.mxu2 %v4489_v51 }
 0x3ab   : > { %2920 = vmatpush.msra.mxu1 %v4504_v40  ;;  %2894 = vmatpush.msra.mxu0 %v4466_v44  ;;  %v4509_v40 = vld [vmem:[%s5112_s11 + $0xd98] sm:$0xff]  ;;  %v4644_v44 = vld [vmem:[%s5112_s11 + $0x11d0] sm:$0xff] }
 0x3ac   : > { %v2471_v47 = vadd.f32 %v2470_v10, %v2469_v48  ;;  %v2477_v2 = vrot.slane %v2476_v62, 4  ;;  %v4556_v48 = vld [vmem:[%s5112_s11 + $0xf10] sm:$0xff]  ;;  %v4485_v10 = vld [vmem:[%s5112_s11 + $0xcd8] sm:$0xff]  ;;  %3058 = vmatpush.msrb.mxu2 %v4487_v52 }
 0x3ad   : > { %2921 = vmatpush.msra.mxu1 %v4502_v37  ;;  %2895 = vmatpush.msra.mxu0 %v4464_v7  ;;  %v4507_v7 = vld [vmem:[%s5112_s11 + $0xd88] sm:$0xff] }
 0x3ae   : > { %v2472_v46 = vrot.slane %v2471_v47, 1  ;;  %v2478_v19 = vadd.f32 %v2477_v2, %v2476_v62  ;;  %2984 = vmatpush.msra.mxu3 %v4556_v48  ;;  %3059 = vmatpush.msrb.mxu2 %v4485_v10  ;;  %v4458_v2 = vld [vmem:[%s5112_s11 + $0xc00] sm:$0xff]  ;;  %v4505_v10 = vld [vmem:[%s5112_s11 + $0xd78] sm:$0xff] }
 0x3af   : > { %2922 = vmatpush.msra.mxu1 %v4500_v24  ;;  %2896 = vmatpush.msra.mxu0 %v4462_v54  ;;  %v4642_v48 = vld [vmem:[%s5112_s11 + $0x11c0] sm:$0xff] }
 0x3b0   : > { %v2473_v16 = vadd.f32 %v2472_v46, %v2471_v47  ;;  %v2479_v29 = vrot.slane %v2478_v19, 2  ;;  %2985 = vmatpush.msra.mxu3 %v4554_v55  ;;  %v4496_v47 = vld [vmem:[%s5112_s11 + $0xd30] sm:$0xff]  ;;  %3060 = vmatpush.msrb.mxu2 %v4483_v57  ;;  %v4479_v46 = vld [vmem:[%s5112_s11 + $0xca8] sm:$0xff] }
 0x3b1   : > { %2923 = vmatpush.msra.mxu1 %v4498_v5  ;;  %2897 = vmatpush.msra.mxu0 %v4460_v21  ;;  %v4602_v21 = vld [vmem:[%s5112_s11 + $0x1080] sm:$0xff] }
 0x3b2   : > { %v2483_v23 = vmul.f32 0.001953125, %v2473_v16  ;;  %v2480_v25 = vadd.f32 %v2479_v29, %v2478_v19  ;;  %3086 = vmatpush.msrb.mxu3 %v4521_v0  ;;  %v4517_v19 = vld [vmem:[%s5112_s11 + $0xdd8] sm:$0xff]  ;;  %3061 = vmatpush.msrb.mxu2 %v4481_v63  ;;  %v4475_v29 = vld [vmem:[%s5112_s11 + $0xc88] sm:$0xff]  ;;  %v4600_v63 = vld [vmem:[%s5112_s11 + $0x1070] sm:$0xff] }
 0x3b3   : > { %2924 = vmatpush.msra.mxu1 %v4496_v47  ;;  %2898 = vmatpush.msra.mxu0 %v4458_v2  ;;  %v4465_v0 = vld [vmem:[%s5112_s11 + $0xc38] sm:$0xff]  ;;  %v4638_v2 = vld [vmem:[%s5112_s11 + $0x11a0] sm:$0xff] }
 0x3b4   : > { %v2487_v17 = vsub.f32 %v2483_v23, %v2485_v9  ;;  %v2481_v35 = vrot.slane %v2480_v25, 1  ;;  %3087 = vmatpush.msrb.mxu3 %v4519_v6  ;;  %3062 = vmatpush.msrb.mxu2 %v4479_v46 }
 0x3b5   : > { %2925 = vmatpush.msra.mxu1 %v4494_v34  ;;  %2999 = vmatpush.msrb.mxu0 %v4616_v18  ;;  %v4463_v18 = vld [vmem:[%s5112_s11 + $0xc28] sm:$0xff] }
 0x3b6   : > { %v6662_v38 = vadd.f32 1e-05, %v2487_v17  ;;  %v2482_v31 = vadd.f32 %v2481_v35, %v2480_v25  ;;  %3088 = vmatpush.msrb.mxu3 %v4517_v19  ;;  %3063 = vmatpush.msrb.mxu2 %v4477_v3  ;;  %v4473_v25 = vld [vmem:[%s5112_s11 + $0xc78] sm:$0xff]  ;;  %v4471_v35 = vld [vmem:[%s5112_s11 + $0xc68] sm:$0xff] }
 0x3b7   : > { %2926 = vmatpush.msra.mxu1 %v4492_v42  ;;  %3000 = vmatpush.msrb.mxu0 %v4614_v61 }
 0x3b8   : > { %4734 = vrsqrt.f32 %v6662_v38  ;;  %v2484_v58 = vmul.f32 0.001953125, %v2482_v31  ;;  %3089 = vmatpush.msrb.mxu3 %v4515_v4  ;;  %3064 = vmatpush.msrb.mxu2 %v4475_v29  ;;  %vm2497_vm9 = vweird.f32 %v6662_v38  ;;  %v4469_v31 = vld [vmem:[%s5112_s11 + $0xc58] sm:$0xff]  ;;  %v4634_v29 = vld [vmem:[%s5112_s11 + $0x1180] sm:$0xff] }
 0x3b9   : > { %2927 = vmatpush.msra.mxu1 %v4490_v13  ;;  %3001 = vmatpush.msrb.mxu0 %v4612_v11 }
 0x3ba   : > { %v2488_v62 = vsub.f32 %v2484_v58, %v2486_v49  ;;  %3090 = vmatpush.msrb.mxu3 %v4513_v43  ;;  %3065 = vmatpush.msrb.mxu2 %v4473_v25  ;;  %v4604_v49 = vld [vmem:[%s5112_s11 + $0x1090] sm:$0xff]  ;;  %v4467_v58 = vld [vmem:[%s5112_s11 + $0xc48] sm:$0xff] }
 0x3bb   : > { %3028 = vmatpush.msrb.mxu1 %v4648_v27  ;;  %3002 = vmatpush.msrb.mxu0 %v4610_v30  ;;  %v4596_v27 = vld [vmem:[%s5112_s11 + $0x1050] sm:$0xff]  ;;  %v4459_v30 = vld [vmem:[%s5112_s11 + $0xc08] sm:$0xff] }
 0x3bc   : > { %v6679_v56 = vadd.f32 1e-05, %v2488_v62  ;;  %3091 = vmatpush.msrb.mxu3 %v4511_v26  ;;  %3066 = vmatpush.msrb.mxu2 %v4471_v35  ;;  %v4640_v62 = vld [vmem:[%s5112_s11 + $0x11b0] sm:$0xff] }
 0x3bd   : > { %3029 = vmatpush.msrb.mxu1 %v4646_v15  ;;  %3003 = vmatpush.msrb.mxu0 %v4608_v59  ;;  %v4632_v15 = vld [vmem:[%s5112_s11 + $0x1170] sm:$0xff]  ;;  %v4594_v59 = vld [vmem:[%s5112_s11 + $0x1040] sm:$0xff] }
 0x3be   : > { %v4735_v8 = vpop.eup %4734  ;;  %4736 = vrsqrt.f32 %v6679_v56  ;;  %3092 = vmatpush.msrb.mxu3 %v4509_v40  ;;  %3067 = vmatpush.msrb.mxu2 %v4469_v31  ;;  %vm2507_vm12 = vweird.f32 %v6679_v56  ;;  %v4617_v40 = vld [vmem:[%s5112_s11 + $0x10f8] sm:$0xff] }
 0x3bf   : > { %v2492_v20 = vmul.f32 %v4735_v8, %v6662_v38  ;;  %vm2498_vm8 = vweird.f32 %v4735_v8  ;;  %v4606_v38 = vld [vmem:[%s5112_s11 + $0x10a0] sm:$0xff]  ;;  %3030 = vmatpush.msrb.mxu1 %v4644_v44  ;;  %v4493_v31 = vld [vmem:[%s5112_s11 + $0xd18] sm:$0xff] }
 0x3c0   : > { %vm2499_vm10 = vmor %vm2497_vm9, %vm2498_vm8  ;;  %3004 = vmatpush.msrb.mxu0 %v4606_v38  ;;  %3093 = vmatpush.msrb.mxu3 %v4507_v7  ;;  %v4630_v44 = vld [vmem:[%s5112_s11 + $0x1160] sm:$0xff]  ;;  %v4592_v38 = vld [vmem:[%s5112_s11 + $0x1030] sm:$0xff] }
 0x3c1   : > { %v2493_v12 = vmul.f32 %v4735_v8, %v2492_v20  ;;  %3031 = vmatpush.msrb.mxu1 %v4642_v48  ;;  %3068 = vmatpush.msrb.mxu2 %v4467_v58  ;;  %v4501_v20 = vld [vmem:[%s5112_s11 + $0xd58] sm:$0xff]  ;;  %v4628_v7 = vld [vmem:[%s5112_s11 + $0x1150] sm:$0xff]  ;;  %v4590_v48 = vld [vmem:[%s5112_s11 + $0x1020] sm:$0xff] }
 0x3c2   : > { %3005 = vmatpush.msrb.mxu0 %v4604_v49  ;;  %3094 = vmatpush.msrb.mxu3 %v4505_v10  ;;  %v4613_v49 = vld [vmem:[%s5112_s11 + $0x10d8] sm:$0xff]  ;;  %v4626_v58 = vld [vmem:[%s5112_s11 + $0x1140] sm:$0xff]  ;;  %v4624_v10 = vld [vmem:[%s5112_s11 + $0x1130] sm:$0xff] }
 0x3c3   : > { %v2494_v16 = vmul.f32 0.5, %v2493_v12  ;;  %3032 = vmatpush.msrb.mxu1 %v4640_v62  ;;  %3069 = vmatpush.msrb.mxu2 %v4465_v0  ;;  %v4636_v12 = vld [vmem:[%s5112_s11 + $0x1190] sm:$0xff]  ;;  %v4586_v62 = vld [vmem:[%s5112_s11 + $0x1000] sm:$0xff]  ;;  %v4553_v0 = vld [vmem:[%s5112_s11 + $0xef8] sm:$0xff] }
 0x3c4   : > { %v6699_v60 = vpop.eup %4736  ;;  %3006 = vmatpush.msrb.mxu0 %v4602_v21  ;;  %v4622_v21 = vld [vmem:[%s5112_s11 + $0x1120] sm:$0xff] }
 0x3c5   : > { %v2495_v9 = vsub.f32 1.5, %v2494_v16  ;;  %v2502_v23 = vmul.f32 %v6699_v60, %v6679_v56  ;;  %vm2508_vm11 = vweird.f32 %v6699_v60  ;;  %v4503_v56 = vld [vmem:[%s5112_s11 + $0xd68] sm:$0xff]  ;;  %3033 = vmatpush.msrb.mxu1 %v4638_v2  ;;  %3070 = vmatpush.msrb.mxu2 %v4463_v18  ;;  %v4620_v2 = vld [vmem:[%s5112_s11 + $0x1110] sm:$0xff] }
 0x3c6   : > { %vm2509_vm13 = vmor %vm2507_vm12, %vm2508_vm11  ;;  %3095 = vmatpush.msrb.mxu3 %v4503_v56  ;;  %3007 = vmatpush.msrb.mxu0 %v4600_v63  ;;  %v4607_v56 = vld [vmem:[%s5112_s11 + $0x10a8] sm:$0xff] }
 0x3c7   : > { %v2496_v1 = vmul.f32 %v4735_v8, %v2495_v9  ;;  %v2503_v17 = vmul.f32 %v6699_v60, %v2502_v23  ;;  %3034 = vmatpush.msrb.mxu1 %v4636_v12  ;;  %v4551_v63 = vld [vmem:[%s5112_s11 + $0xee8] sm:$0xff]  ;;  %v4601_v12 = vld [vmem:[%s5112_s11 + $0x1078] sm:$0xff] }
 0x3c8   : > { %3096 = vmatpush.msrb.mxu3 %v4501_v20  ;;  %v4549_v20 = vld [vmem:[%s5112_s11 + $0xed8] sm:$0xff] }
 0x3c9   : > { %v2504_v45 = vmul.f32 0.5, %v2503_v17  ;;  %v2500_v51 = vsel %vm2499_vm10, %v4735_v8, %v2496_v1  ;;  %3035 = vmatpush.msrb.mxu1 %v4634_v29  ;;  %v4495_v17 = vld [vmem:[%s5112_s11 + $0xd28] sm:$0xff]  ;;  %v4581_v29 = vld [vmem:[%s5112_s11 + $0xfd8] sm:$0xff] }
 0x3ca   : > { %v2519_v37 = vmul.f32 %v2500_v51, %v6638_v39  ;;  %v2511_v24 = vmul.f32 %v2500_v51, %v6452_v33  ;;  %v2513_v55 = vmul.f32 %v2500_v51, %v6490_v53  ;;  %v2515_v39 = vmul.f32 %v2500_v51, %v6515_v41 }
 0x3cb   : > { %v2505_v52 = vsub.f32 1.5, %v2504_v45  ;;  %v2517_v33 = vmul.f32 %v2500_v51, %v6535_v36  ;;  %3036 = vmatpush.msrb.mxu1 %v4632_v15  ;;  %v4595_v15 = vld [vmem:[%s5112_s11 + $0x1048] sm:$0xff] }
 0x3cc   : > { %v2521_v54 = vsub.f32 0.001, %v2519_v37  ;;  %v4615_v37 = vld [vmem:[%s5112_s11 + $0x10e8] sm:$0xff] }
 0x3cd   : > { %v2506_v5 = vmul.f32 %v6699_v60, %v2505_v52  ;;  %3037 = vmatpush.msrb.mxu1 %v4630_v44  ;;  %v4491_v52 = vld [vmem:[%s5112_s11 + $0xd08] sm:$0xff] }
 0x3ce   : > { %v6734_v53 = vadd.f32 %v2521_v54, %v2511_v24  ;;  %v6736_v41 = vadd.f32 %v2521_v54, %v2513_v55  ;;  %v6738_v57 = vadd.f32 %v2521_v54, %v2515_v39  ;;  %v6743_v36 = vadd.f32 %v2521_v54, %v2517_v33  ;;  %v4588_v24 = vld [vmem:[%s5112_s11 + $0x1010] sm:$0xff]  ;;  %v4611_v55 = vld [vmem:[%s5112_s11 + $0x10c8] sm:$0xff]  ;;  %v4649_v39 = vld [vmem:[%s5112_s11 + $0x11f8] sm:$0xff] }
 0x3cf   : > { %v2510_v47 = vsel %vm2509_vm13, %v6699_v60, %v2506_v5  ;;  %3038 = vmatpush.msrb.mxu1 %v4628_v7  ;;  %v4609_v5 = vld [vmem:[%s5112_s11 + $0x10b8] sm:$0xff]  ;;  %v4647_v33 = vld [vmem:[%s5112_s11 + $0x11e8] sm:$0xff] }
 0x3d0   : > { %v2539_v6 = vrot.slane %v6734_v53, 7  ;;  %2957 = vmatmul.f32.vlgmr.msra.gmra.mxu2 %v6734_v53  ;;  %v2520_v8 = vmul.f32 %v2510_v47, %v6656_v28  ;;  %v2541_v34 = vrot.slane %v6736_v41, 7  ;;  %v2512_v46 = vmul.f32 %v2510_v47, %v6557_v32  ;;  %v4598_v28 = vld [vmem:[%s5112_s11 + $0x1060] sm:$0xff]  ;;  %v4461_v32 = vld [vmem:[%s5112_s11 + $0xc18] sm:$0xff] }
 0x3d1   : > { %v2514_v19 = vmul.f32 %v2510_v47, %v6574_v50  ;;  %v2545_v42 = vrot.slane %v6738_v57, 7  ;;  %v2547_v61 = vrot.slane %v6743_v36, 7  ;;  %v2516_v13 = vmul.f32 %v2510_v47, %v6583_v22  ;;  %v4499_v50 = vld [vmem:[%s5112_s11 + $0xd48] sm:$0xff]  ;;  %3008 = vmatpush.msrb.mxu0 %v4598_v28  ;;  %3071 = vmatpush.msrb.mxu2 %v4461_v32 }
 0x3d2   : > { %2563 = vst [vmem:[#allocation2 + $0x30] sm:$0xfe] %v2539_v6  ;;  %v2522_v3 = vsub.f32 0.001, %v2520_v8  ;;  %v6760_v4 = vsel %vm343_vm0, %v2539_v6, %v2541_v34  ;;  %v2518_v16 = vmul.f32 %v2510_v47, %v6589_v14  ;;  %3097 = vmatpush.msrb.mxu3 %v4499_v50  ;;  %v4497_v14 = vld [vmem:[%s5112_s11 + $0xd38] sm:$0xff]  ;;  %3039 = vmatpush.msrb.mxu1 %v4626_v58  ;;  %v4643_v8 = vld [vmem:[%s5112_s11 + $0x11c8] sm:$0xff] }
 0x3d3   : > { %v6766_v11 = vsel %vm343_vm0, %v2545_v42, %v2547_v61  ;;  %2567 = vst [vmem:[#allocation2 + $0x50] sm:$0x1] %v2541_v34  ;;  %3009 = vmatpush.msrb.mxu0 %v4596_v27  ;;  %3072 = vmatpush.msrb.mxu2 %v4459_v30  ;;  %v4645_v47 = vld [vmem:[%s5112_s11 + $0x11d8] sm:$0xff]  ;;  %v4618_v34 = vld [vmem:[%s5112_s11 + $0x1100] sm:$0xff]  ;;  %v4639_v28 = vld [vmem:[%s5112_s11 + $0x11a8] sm:$0xff]  ;;  %v2624_v44 = vrot.slane %v6760_v4, 2 }
 0x3d4   : > { %v6770_v43 = vadd.f32 %v2522_v3, %v2512_v46  ;;  %v6772_v60 = vadd.f32 %v2522_v3, %v2514_v19  ;;  %v6774_v22 = vadd.f32 %v2522_v3, %v2516_v13  ;;  %2569 = vst [vmem:[#allocation2 + $0x8] sm:$0xfe] %v2545_v42  ;;  %v6778_v9 = vadd.f32 %v2522_v3, %v2518_v16  ;;  %v4605_v6 = vld [vmem:[%s5112_s11 + $0x1098] sm:$0xff]  ;;  %v4603_v46 = vld [vmem:[%s5112_s11 + $0x1088] sm:$0xff] }
 0x3d5   : > { %2573 = vst [vmem:[#allocation2 + $0x10] sm:$0x1] %v2547_v61  ;;  %3098 = vmatpush.msrb.mxu3 %v4497_v14  ;;  %3010 = vmatpush.msrb.mxu0 %v4594_v59  ;;  %v4641_v19 = vld [vmem:[%s5112_s11 + $0x11b8] sm:$0xff]  ;;  %v4547_v61 = vld [vmem:[%s5112_s11 + $0xec8] sm:$0xff] }
 0x3d6   : > { %v2540_v23 = vrot.slane %v6770_v43, 7  ;;  %2986 = vmatmul.f32.vlgmr.msra.gmra.mxu3 %v6770_v43  ;;  %v2543_v25 = vrot.slane %v6772_v60, 7  ;;  %v2546_v26 = vrot.slane %v6774_v22, 7  ;;  %v2549_v1 = vrot.slane %v6778_v9, 7  ;;  %3173 = vmatpush.msra.mxu2 %v4617_v40  ;;  %v4585_v42 = vld [vmem:[%s5112_s11 + $0xff8] sm:$0xff]  ;;  %v4583_v3 = vld [vmem:[%s5112_s11 + $0xfe8] sm:$0xff] }
 0x3d7   : > { %3099 = vmatpush.msrb.mxu3 %v4495_v17  ;;  %3011 = vmatpush.msrb.mxu0 %v4592_v38  ;;  %v4545_v13 = vld [vmem:[%s5112_s11 + $0xeb8] sm:$0xff]  ;;  %v4599_v50 = vld [vmem:[%s5112_s11 + $0x1068] sm:$0xff] }
 0x3d8   : > { %2564 = vst [vmem:[#allocation2] sm:$0xfe] %v2540_v23  ;;  %2960 = vmatmul.f32.gmra.mxu2 %v6736_v41  ;;  %v6791_v35 = vsel %vm343_vm0, %v2540_v23, %v2543_v25  ;;  %v6798_v51 = vsel %vm343_vm0, %v2546_v26, %v2549_v1  ;;  %3040 = vmatpush.msrb.mxu1 %v4624_v10  ;;  %v4637_v16 = vld [vmem:[%s5112_s11 + $0x1198] sm:$0xff]  ;;  %v4543_v27 = vld [vmem:[%s5112_s11 + $0xea8] sm:$0xff] }
 0x3d9   : > { %v6795_v45 = vld [vmem:[#allocation2 + $0x30] sm:$0xff]  ;;  %2568 = vst [vmem:[#allocation2 + $0x20] sm:$0x1] %v2543_v25  ;;  %3100 = vmatpush.msrb.mxu3 %v4493_v31  ;;  %3174 = vmatpush.msra.mxu2 %v4615_v37  ;;  %v4597_v30 = vld [vmem:[%s5112_s11 + $0x1058] sm:$0xff]  ;;  %v4635_v23 = vld [vmem:[%s5112_s11 + $0x1188] sm:$0xff]  ;;  %v2627_v10 = vrot.slane %v6791_v35, 2 }
 0x3da   : > { %2899 = vmatmul.f32.vlgmr.msra.gmra.mxu0 %v6795_v45  ;;  %2570 = vst [vmem:[#allocation2 + $0x38] sm:$0xfe] %v2546_v26  ;;  %3041 = vmatpush.msrb.mxu1 %v4622_v21  ;;  %v2599_v14 = vld [vmem:[#allocation2 + $0x30] sm:$0xfc]  ;;  %v4579_v25 = vld [vmem:[%s5112_s11 + $0xfc8] sm:$0xff]  ;;  %v4541_v26 = vld [vmem:[%s5112_s11 + $0xe98] sm:$0xff] }
 0x3db   : > { %2574 = vst [vmem:[#allocation2 + $0x40] sm:$0x1] %v2549_v1  ;;  %3012 = vmatpush.msrb.mxu0 %v4590_v48  ;;  %3101 = vmatpush.msrb.mxu3 %v4491_v52  ;;  %v6834_v18 = vld [vmem:[#allocation2 + $0x8] sm:$0xff]  ;;  %v4633_v59 = vld [vmem:[%s5112_s11 + $0x1178] sm:$0xff]  ;;  %v2623_v1 = vrot.slane %v2599_v14, 2 }
 0x3dc   : > { %3175 = vmatpush.msra.mxu2 %v4613_v49  ;;  %3042 = vmatpush.msrb.mxu1 %v4620_v2  ;;  %v4577_v17 = vld [vmem:[%s5112_s11 + $0xfb8] sm:$0xff]  ;;  %v4539_v40 = vld [vmem:[%s5112_s11 + $0xe88] sm:$0xff]  ;;  %v2603_v49 = vld [vmem:[#allocation2 + $0x50] sm:$0x3] }
 0x3dd   : > { %3013 = vmatpush.msrb.mxu0 %v4588_v24  ;;  %3202 = vmatpush.msra.mxu3 %v4649_v39  ;;  %v4631_v31 = vld [vmem:[%s5112_s11 + $0x1168] sm:$0xff]  ;;  %v6872_v7 = vsel %vm428_vm1, %v2623_v1, %v2624_v44  ;;  %v4537_v48 = vld [vmem:[%s5112_s11 + $0xe78] sm:$0xff] }
 0x3de   : > { %2989 = vmatmul.f32.gmra.mxu3 %v6772_v60  ;;  %3176 = vmatpush.msra.mxu2 %v4611_v55  ;;  %v4575_v37 = vld [vmem:[%s5112_s11 + $0xfa8] sm:$0xff]  ;;  %v4629_v58 = vld [vmem:[%s5112_s11 + $0x1158] sm:$0xff] }
 0x3df   : > { %v6811_v54 = vld [vmem:[#allocation2] sm:$0xff]  ;;  %3014 = vmatpush.msrb.mxu0 %v4586_v62  ;;  %3203 = vmatpush.msra.mxu3 %v4647_v33  ;;  %v4591_v52 = vld [vmem:[%s5112_s11 + $0x1028] sm:$0xff]  ;;  %v4589_v55 = vld [vmem:[%s5112_s11 + $0x1018] sm:$0xff]  ;;  %v2629_v62 = vrot.slane %v2603_v49, 2 }
 0x3e0   : > { %2928 = vmatmul.f32.vlgmr.msra.gmra.mxu1 %v6811_v54  ;;  %2963 = vmatmul.f32.gmra.mxu2 %v6738_v57  ;;  %v2600_v38 = vld [vmem:[#allocation2] sm:$0xfc]  ;;  %v4627_v39 = vld [vmem:[%s5112_s11 + $0x1148] sm:$0xff]  ;;  %v4533_v33 = vld [vmem:[%s5112_s11 + $0xe58] sm:$0xff] }
 0x3e1   : > { %3177 = vmatpush.msra.mxu2 %v4609_v5  ;;  %3115 = vmatpush.msra.mxu0 %v4553_v0  ;;  %v6847_v32 = vld [vmem:[#allocation2 + $0x38] sm:$0xff]  ;;  %v2626_v24 = vrot.slane %v2600_v38, 2  ;;  %v4571_v5 = vld [vmem:[%s5112_s11 + $0xf88] sm:$0xff]  ;;  %v6895_v2 = vsel %vm428_vm1, %v2624_v44, %v2629_v62  ;;  %v7002_v62 = vld [vmem:[#allocation9 + $0x58] sm:$0xff] }
 0x3e2   : > { %2902 = vmatmul.f32.gmra.mxu0 %v6760_v4  ;;  %3204 = vmatpush.msra.mxu3 %v4645_v47  ;;  %v4587_v0 = vld [vmem:[%s5112_s11 + $0x1008] sm:$0xff]  ;;  %v4625_v47 = vld [vmem:[%s5112_s11 + $0x1138] sm:$0xff] }
 0x3e3   : > { %3178 = vmatpush.msra.mxu2 %v4607_v56  ;;  %3116 = vmatpush.msra.mxu0 %v4551_v63  ;;  %v6887_v21 = vsel %vm428_vm1, %v2626_v24, %v2627_v10  ;;  %v2604_v56 = vld [vmem:[#allocation2 + $0x20] sm:$0x3]  ;;  %v4531_v63 = vld [vmem:[%s5112_s11 + $0xe48] sm:$0xff] }
 0x3e4   : > { %3205 = vmatpush.msra.mxu3 %v4643_v8  ;;  %3043 = vmatpush.msrb.mxu1 %v4618_v34  ;;  %v4623_v8 = vld [vmem:[%s5112_s11 + $0x1128] sm:$0xff] }
 0x3e5   : > { %3179 = vmatpush.msra.mxu2 %v4605_v6  ;;  %3117 = vmatpush.msra.mxu0 %v4549_v20  ;;  %v2605_v6 = vld [vmem:[#allocation2 + $0x8] sm:$0xfc]  ;;  %v4529_v20 = vld [vmem:[%s5112_s11 + $0xe38] sm:$0xff] }
 0x3e6   : > { %2992 = vmatmul.f32.gmra.mxu3 %v6774_v22  ;;  %3144 = vmatpush.msra.mxu1 %v4585_v42  ;;  %v4567_v34 = vld [vmem:[%s5112_s11 + $0xf68] sm:$0xff]  ;;  %v2633_v42 = vrot.slane %v2605_v6, 2  ;;  %v7026_v6 = vld [vmem:[#allocation9 + $0x28] sm:$0xff] }
 0x3e7   : > { %3180 = vmatpush.msra.mxu2 %v4603_v46  ;;  %3206 = vmatpush.msra.mxu3 %v4641_v19  ;;  %v4621_v46 = vld [vmem:[%s5112_s11 + $0x1118] sm:$0xff]  ;;  %v4555_v1 = vld [vmem:[%s5112_s11 + $0xf08] sm:$0xff] }
 0x3e8   : > { %2931 = vmatmul.f32.gmra.mxu1 %v6791_v35  ;;  %2966 = vmatmul.f32.gmra.mxu2 %v6743_v36  ;;  %v4565_v19 = vld [vmem:[%s5112_s11 + $0xf58] sm:$0xff]  ;;  %v6964_v38 = vld [vmem:[#allocation9 + $0xa0] sm:$0xff] }
 0x3e9   : > { %3118 = vmatpush.msra.mxu0 %v4547_v61  ;;  %3181 = vmatpush.msra.mxu2 %v4601_v12  ;;  %v4527_v61 = vld [vmem:[%s5112_s11 + $0xe28] sm:$0xff] }
 0x3ea   : > { %2905 = vmatmul.f32.gmra.mxu0 %v6834_v18  ;;  %3207 = vmatpush.msra.mxu3 %v4639_v28  ;;  %v4619_v12 = vld [vmem:[%s5112_s11 + $0x1108] sm:$0xff] }
 0x3eb   : > { %3145 = vmatpush.msra.mxu1 %v4583_v3  ;;  %3119 = vmatpush.msra.mxu0 %v4545_v13  ;;  %v2634_v3 = vrot.slane %v6766_v11, 2  ;;  %v4563_v13 = vld [vmem:[%s5112_s11 + $0xf48] sm:$0xff] }
 0x3ec   : > { %3182 = vmatpush.msra.mxu2 %v4599_v50  ;;  %3208 = vmatpush.msra.mxu3 %v4637_v16  ;;  %v2606_v50 = vld [vmem:[#allocation2 + $0x38] sm:$0xfc] }
 0x3ed   : > { %3146 = vmatpush.msra.mxu1 %v4581_v29  ;;  %3120 = vmatpush.msra.mxu0 %v4543_v27  ;;  %v4525_v16 = vld [vmem:[%s5112_s11 + $0xe18] sm:$0xff]  ;;  %v2609_v27 = vld [vmem:[#allocation2 + $0x10] sm:$0x3]  ;;  %v2636_v14 = vrot.slane %v2606_v50, 2  ;;  %v7064_v50 = vld [vmem:[#allocation9 + $0x1e0] sm:$0xff] }
 0x3ee   : > { %2995 = vmatmul.f32.gmra.mxu3 %v6778_v9  ;;  %3183 = vmatpush.msra.mxu2 %v4597_v30  ;;  %v4561_v29 = vld [vmem:[%s5112_s11 + $0xf38] sm:$0xff]  ;;  %v4523_v30 = vld [vmem:[%s5112_s11 + $0xe08] sm:$0xff] }
 0x3ef   : > { %3209 = vmatpush.msra.mxu3 %v4635_v23  ;;  %3147 = vmatpush.msra.mxu1 %v4579_v25  ;;  %v4559_v23 = vld [vmem:[%s5112_s11 + $0xf28] sm:$0xff]  ;;  %v2637_v25 = vrot.slane %v6798_v51, 2 }
 0x3f0   : > { %2934 = vmatmul.f32.gmra.mxu1 %v6847_v32  ;;  %3073 = vmatmul.f32.vlgmr.msrb.gmra.mxu2 %v6795_v45  ;;  %v4593_v45 = vld [vmem:[%s5112_s11 + $0x1038] sm:$0xff] }
 0x3f1   : > { %3121 = vmatpush.msra.mxu0 %v4541_v26  ;;  %3184 = vmatpush.msra.mxu2 %v4595_v15  ;;  %v4557_v26 = vld [vmem:[%s5112_s11 + $0xf18] sm:$0xff]  ;;  %v2638_v15 = vsel %vm428_vm1, %v2636_v14, %v2637_v25 }
 0x3f2   : > { %2908 = vmatmul.f32.gmra.mxu0 %v6766_v11  ;;  %3210 = vmatpush.msra.mxu3 %v4633_v59  ;;  %v2610_v59 = vld [vmem:[#allocation2 + $0x40] sm:$0x3] }
 0x3f3   : > { %3148 = vmatpush.msra.mxu1 %v4577_v17  ;;  %3122 = vmatpush.msra.mxu0 %v4539_v40  ;;  %v2641_v40 = vrot.slane %v2610_v59, 2 }
 0x3f4   : > { %3185 = vmatpush.msra.mxu2 %v4593_v45  ;;  %3211 = vmatpush.msra.mxu3 %v4631_v31  ;;  %v6958_v45 = vld [vmem:[#allocation9 + $0xb8] sm:$0xff]  ;;  %v6966_v31 = vld [vmem:[#allocation9 + $0xa8] sm:$0xff] }
 0x3f5   : > { %3149 = vmatpush.msra.mxu1 %v4575_v37  ;;  %3123 = vmatpush.msra.mxu0 %v4537_v48  ;;  %v2642_v44 = vsel %vm428_vm1, %v2637_v25, %v2641_v40  ;;  %v6968_v37 = vld [vmem:[#allocation9 + $0x90] sm:$0xff]  ;;  %v6974_v48 = vld [vmem:[#allocation9 + $0x80] sm:$0xff] }
 0x3f6   : > { %3102 = vmatmul.f32.vlgmr.msrb.gmra.mxu3 %v6811_v54  ;;  %v4535_v54 = vld [vmem:[%s5112_s11 + $0xe68] sm:$0xff]  ;;  %3186 = vmatpush.msra.mxu2 %v4591_v52  ;;  %v6976_v52 = vld [vmem:[#allocation9 + $0x88] sm:$0xff] }
 0x3f7   : > { %3212 = vmatpush.msra.mxu3 %v4629_v58  ;;  %3124 = vmatpush.msra.mxu0 %v4535_v54  ;;  %v6982_v58 = vld [vmem:[#allocation9 + $0x70] sm:$0xff]  ;;  %v6992_v54 = vld [vmem:[#allocation9 + $0x60] sm:$0xff] }
 0x3f8   : > { %2937 = vmatmul.f32.gmra.mxu1 %v6798_v51  ;;  %3076 = vmatmul.f32.gmra.mxu2 %v6760_v4  ;;  %v4573_v4 = vld [vmem:[%s5112_s11 + $0xf98] sm:$0xff]  ;;  %v7108_v40 = vld [vmem:[#allocation9 + $0x1a0] sm:$0xff] }
 0x3f9   : > { %3150 = vmatpush.msra.mxu1 %v4573_v4  ;;  %3187 = vmatpush.msra.mxu2 %v4589_v55  ;;  %v6984_v4 = vld [vmem:[#allocation9 + $0x78] sm:$0xff]  ;;  %v6994_v55 = vld [vmem:[#allocation9 + $0x68] sm:$0xff] }
 0x3fa   : > { %3015 = vmatmul.f32.vlgmr.msrb.gmra.mxu0 %v6872_v7  ;;  %3213 = vmatpush.msra.mxu3 %v4627_v39  ;;  %v6996_v39 = vld [vmem:[#allocation9 + $0x50] sm:$0xff] }
 0x3fb   : > { %3151 = vmatpush.msra.mxu1 %v4571_v5  ;;  %3125 = vmatpush.msra.mxu0 %v4533_v33  ;;  %v7004_v5 = vld [vmem:[#allocation9 + $0x40] sm:$0xff]  ;;  %v7006_v33 = vld [vmem:[#allocation9 + $0x48] sm:$0xff] }
 0x3fc   : > { %3188 = vmatpush.msra.mxu2 %v4587_v0  ;;  %3214 = vmatpush.msra.mxu3 %v4625_v47  ;;  %v7012_v0 = vld [vmem:[#allocation9 + $0x30] sm:$0xff] }
 0x3fd   : > { %3126 = vmatpush.msra.mxu0 %v4531_v63  ;;  %v7024_v63 = vld [vmem:[#allocation9 + $0x20] sm:$0xff] }
 0x3fe   : > { %3105 = vmatmul.f32.gmra.mxu3 %v6791_v35  ;;  %v4569_v35 = vld [vmem:[%s5112_s11 + $0xf78] sm:$0xff] }
 0x3ff   : > { %3152 = vmatpush.msra.mxu1 %v4569_v35  ;;  %3215 = vmatpush.msra.mxu3 %v4623_v8  ;;  %v7028_v8 = vld [vmem:[#allocation9 + $0x10] sm:$0xff] }
 0x400   : > { %3044 = vmatmul.f32.vlgmr.msrb.gmra.mxu1 %v6887_v21  ;;  %3079 = vmatmul.f32.gmra.mxu2 %v6834_v18  ;;  %v2631_v18 = vrot.slane %v2604_v56, 2  ;;  %v7014_v56 = vld [vmem:[#allocation9 + $0x38] sm:$0xff] }
 0x401   : > { %3153 = vmatpush.msra.mxu1 %v4567_v34  ;;  %3127 = vmatpush.msra.mxu0 %v4529_v20  ;;  %v7036_v20 = vld [vmem:[#allocation9] sm:$0xff] }
 0x402   : > { %3018 = vmatmul.f32.gmra.mxu0 %v6895_v2  ;;  %v2632_v28 = vsel %vm428_vm1, %v2627_v10, %v2631_v18  ;;  %3216 = vmatpush.msra.mxu3 %v4621_v46  ;;  %v7034_v18 = vld [vmem:[#allocation9 + $0x18] sm:$0xff]  ;;  %v7038_v46 = vld [vmem:[#allocation9 + $0x8] sm:$0xff] }
 0x403   : > { %3154 = vmatpush.msra.mxu1 %v4565_v19  ;;  %3128 = vmatpush.msra.mxu0 %v4527_v61  ;;  %v7050_v61 = vld [vmem:[#allocation9 + $0x1f8] sm:$0xff] }
 0x404   : > { %3217 = vmatpush.msra.mxu3 %v4619_v12  ;;  %v7052_v12 = vld [vmem:[#allocation9 + $0x1f0] sm:$0xff] }
 0x405   : > { %3155 = vmatpush.msra.mxu1 %v4563_v13  ;;  %3129 = vmatpush.msra.mxu0 %v4525_v16  ;;  %v7066_v16 = vld [vmem:[#allocation9 + $0x1d8] sm:$0xff] }
 0x406   : > { %3108 = vmatmul.f32.gmra.mxu3 %v6847_v32  ;;  %v2635_v32 = vsel %vm428_vm1, %v2633_v42, %v2634_v3 }
 0x407   : > { %3156 = vmatpush.msra.mxu1 %v4561_v29  ;;  %3130 = vmatpush.msra.mxu0 %v4523_v30  ;;  %v7079_v30 = vld [vmem:[#allocation9 + $0x1c8] sm:$0xff] }
 0x408   : > { %3047 = vmatmul.f32.gmra.mxu1 %v2632_v28  ;;  %3082 = vmatmul.f32.gmra.mxu2 %v6766_v11  ;;  %v2639_v11 = vrot.slane %v2609_v27, 2  ;;  %v7077_v27 = vld [vmem:[#allocation9 + $0x1d0] sm:$0xff] }
 0x409   : > { %3157 = vmatpush.msra.mxu1 %v4559_v23  ;;  %3390 = vmatpush.msrb.mxu3 %v7050_v61 }
 0x40a   : > { %3021 = vmatmul.f32.gmra.mxu0 %v2635_v32  ;;  %v2640_v17 = vsel %vm428_vm1, %v2634_v3, %v2639_v11  ;;  %v7056_v3 = vld [vmem:[#allocation8 + $0x2] ss:$4 sm:$0x3]  ;;  %v7094_v11 = vld [vmem:[#allocation9 + $0x1c0] sm:$0xff] }
 0x40b   : > { %3158 = vmatpush.msra.mxu1 %v4557_v26  ;;  %v7073_v29 = vperm.slane %v7056_v3, 0  ;;  %v7096_v26 = vld [vmem:[#allocation9 + $0x1b8] sm:$0xff] }
 0x40d   : > { %3159 = vmatpush.msra.mxu1 %v4555_v1  ;;  %v7104_v1 = vld [vmem:[#allocation9 + $0x1a8] sm:$0xff] }
 0x40e   : > { %3111 = vmatmul.f32.gmra.mxu3 %v6798_v51  ;;  %v6936_v51 = vld [vmem:[#allocation9 + $0xf8] sm:$0xff] }
 0x40f   : > { %3361 = vmatpush.msrb.mxu2 %v6936_v51  ;;  %3332 = vmatpush.msrb.mxu1 %v7052_v12 }
 0x410   : > { %3050 = vmatmul.f32.gmra.mxu1 %v2638_v15  ;;  %3189 = vmatmul.f32.vlgmr.msra.gmra.mxu2 %v6872_v7  ;;  %v6972_v7 = vld [vmem:[#allocation9 + $0x98] sm:$0xff] }
 0x411   : > { %3333 = vmatpush.msrb.mxu1 %v7064_v50 }
 0x412   : > { %3024 = vmatmul.f32.gmra.mxu0 %v2640_v17 }
 0x413   : > { %3334 = vmatpush.msrb.mxu1 %v7077_v27 }
 0x415   : > { %3335 = vmatpush.msrb.mxu1 %v7094_v11 }
 0x416   : > { %3218 = vmatmul.f32.vlgmr.msra.gmra.mxu3 %v6887_v21 }
 0x418   : > { %3053 = vmatmul.f32.gmra.mxu1 %v2642_v44  ;;  %3192 = vmatmul.f32.gmra.mxu2 %v6895_v2 }
 0x41a   : > { %3131 = vmatmul.f32.vlgmr.msra.gmra.mxu0 %v6734_v53  ;;  %v6934_v53 = vld [vmem:[#allocation9 + $0xf0] sm:$0xff] }
 0x41b   : > { %3303 = vmatpush.msrb.mxu0 %v6934_v53 }
 0x41e   : > { %3221 = vmatmul.f32.gmra.mxu3 %v2632_v28  ;;  %v7054_v28 = vld [vmem:[#allocation9 + $0x1e8] sm:$0xff] }
 0x41f   : > { %3391 = vmatpush.msrb.mxu3 %v7054_v28 }
 0x420   : > { %3160 = vmatmul.f32.vlgmr.msra.gmra.mxu1 %v6770_v43  ;;  %3195 = vmatmul.f32.gmra.mxu2 %v2635_v32  ;;  %v6942_v43 = vld [vmem:[#allocation9 + $0xe8] sm:$0xff] }
 0x421   : > { %3362 = vmatpush.msrb.mxu2 %v6942_v43  ;;  %3392 = vmatpush.msrb.mxu3 %v7066_v16 }
 0x422   : > { %3134 = vmatmul.f32.gmra.mxu0 %v6736_v41  ;;  %v6940_v41 = vld [vmem:[#allocation9 + $0xe0] sm:$0xff] }
 0x423   : > { %3304 = vmatpush.msrb.mxu0 %v6940_v41  ;;  %3393 = vmatpush.msrb.mxu3 %v7079_v30 }
 0x425   : > { %3394 = vmatpush.msrb.mxu3 %v7096_v26 }
 0x426   : > { %3224 = vmatmul.f32.gmra.mxu3 %v2638_v15  ;;  %v7098_v15 = vld [vmem:[#allocation9 + $0x1b0] sm:$0xff] }
 0x427   : > { %3336 = vmatpush.msrb.mxu1 %v7098_v15  ;;  %3395 = vmatpush.msrb.mxu3 %v7104_v1 }
 0x428   : > { %3163 = vmatmul.f32.gmra.mxu1 %v6772_v60  ;;  %3198 = vmatmul.f32.gmra.mxu2 %v2640_v17  ;;  %v6950_v60 = vld [vmem:[#allocation9 + $0xc0] sm:$0xff] }
 0x429   : > { %3337 = vmatpush.msrb.mxu1 %v7108_v40 }
 0x42a   : > { %3137 = vmatmul.f32.gmra.mxu0 %v6738_v57  ;;  %v6944_v57 = vld [vmem:[#allocation9 + $0xd0] sm:$0xff] }
 0x42b   : > { %3305 = vmatpush.msrb.mxu0 %v6944_v57 }
 0x42d   : > { %3306 = vmatpush.msrb.mxu0 %v6950_v60 }
 0x42e   : > { %3227 = vmatmul.f32.gmra.mxu3 %v2642_v44  ;;  %v7110_v44 = vld [vmem:[#allocation9 + $0x198] sm:$0xff] }
 0x42f   : > { %3396 = vmatpush.msrb.mxu3 %v7110_v44 }
 0x430   : > { %3166 = vmatmul.f32.gmra.mxu1 %v6774_v22  ;;  %v6952_v22 = vld [vmem:[#allocation9 + $0xc8] sm:$0xff] }
 0x432   : > { %3140 = vmatmul.f32.gmra.mxu0 %v6743_v36  ;;  %v6948_v36 = vld [vmem:[#allocation9 + $0xd8] sm:$0xff] }
 0x433   : > { %3363 = vmatpush.msrb.mxu2 %v6948_v36 }
 0x435   : > { %3364 = vmatpush.msrb.mxu2 %v6952_v22 }
 0x437   : > { %3365 = vmatpush.msrb.mxu2 %v6958_v45 }
 0x438   : > { %3169 = vmatmul.f32.gmra.mxu1 %v6778_v9  ;;  %v6956_v9 = vld [vmem:[#allocation9 + $0xb0] sm:$0xff] }
 0x439   : > { %3307 = vmatpush.msrb.mxu0 %v6956_v9  ;;  %3366 = vmatpush.msrb.mxu2 %v6966_v31 }
 0x43b   : > { %3308 = vmatpush.msrb.mxu0 %v6964_v38  ;;  %3367 = vmatpush.msrb.mxu2 %v6972_v7 }
 0x43d   : > { %3309 = vmatpush.msrb.mxu0 %v6968_v37  ;;  %3368 = vmatpush.msrb.mxu2 %v6976_v52 }
 0x43f   : > { %3310 = vmatpush.msrb.mxu0 %v6974_v48  ;;  %3369 = vmatpush.msrb.mxu2 %v6984_v4 }
 0x441   : > { %3311 = vmatpush.msrb.mxu0 %v6982_v58  ;;  %3370 = vmatpush.msrb.mxu2 %v6994_v55 }
 0x443   : > { %3312 = vmatpush.msrb.mxu0 %v6992_v54  ;;  %3371 = vmatpush.msrb.mxu2 %v7002_v62 }
 0x445   : > { %3313 = vmatpush.msrb.mxu0 %v6996_v39  ;;  %3372 = vmatpush.msrb.mxu2 %v7006_v33 }
 0x447   : > { %3314 = vmatpush.msrb.mxu0 %v7004_v5  ;;  %3373 = vmatpush.msrb.mxu2 %v7014_v56 }
 0x449   : > { %3315 = vmatpush.msrb.mxu0 %v7012_v0  ;;  %3374 = vmatpush.msrb.mxu2 %v7026_v6 }
 0x44b   : > { %3316 = vmatpush.msrb.mxu0 %v7024_v63  ;;  %3375 = vmatpush.msrb.mxu2 %v7034_v18 }
 0x44d   : > { %3317 = vmatpush.msrb.mxu0 %v7028_v8  ;;  %3376 = vmatpush.msrb.mxu2 %v7038_v46 }
 0x44f   : > { %3318 = vmatpush.msrb.mxu0 %v7036_v20  ;;  %3485 = vmatpush.msra.mxu2 %v6936_v51  ;;  %v7118_v51 = vld [vmem:[#allocation9 + $0x190] sm:$0xff] }
 0x450   : > { %3338 = vmatpush.msrb.mxu1 %v7118_v51 }
 0x451   : > { %3427 = vmatpush.msra.mxu0 %v6934_v53  ;;  %3486 = vmatpush.msra.mxu2 %v6942_v43 }
 0x453   : > { %v6978_v49 = vpop.f32.mrf.mxu2  ;;  %3428 = vmatpush.msra.mxu0 %v6940_v41  ;;  %3487 = vmatpush.msra.mxu2 %v6948_v36  ;;  %v7120_v41 = vld [vmem:[#allocation9 + $0x188] sm:$0xff] }
 0x454   : > { %3397 = vmatpush.msrb.mxu3 %v7120_v41 }
 0x455   : > { %3429 = vmatpush.msra.mxu0 %v6944_v57  ;;  %3488 = vmatpush.msra.mxu2 %v6952_v22  ;;  %v7135_v22 = vld [vmem:[#allocation9 + $0x180] sm:$0xff] }
 0x456   : > { %3339 = vmatpush.msrb.mxu1 %v7135_v22 }
 0x457   : > { %v6988_v24 = vpop.f32.mrf.mxu0  ;;  %3430 = vmatpush.msra.mxu0 %v6950_v60  ;;  %3489 = vmatpush.msra.mxu2 %v6958_v45  ;;  %v7139_v45 = vld [vmem:[#allocation9 + $0x170] sm:$0xff] }
 0x458   : > { %v2901_v25 = vadd.f32 %v6988_v24, %v7073_v29  ;;  %3340 = vmatpush.msrb.mxu1 %v7139_v45  ;;  %v7163_v24 = vld [vmem:[#allocation9 + $0x148] sm:$0xff] }
 0x459   : > { %v6998_v10 = vpop.f32.mrf.mxu3  ;;  %3431 = vmatpush.msra.mxu0 %v6956_v9  ;;  %3490 = vmatpush.msra.mxu2 %v6966_v31  ;;  %v7137_v9 = vld [vmem:[#allocation9 + $0x178] sm:$0xff]  ;;  %v7145_v31 = vld [vmem:[#allocation9 + $0x168] sm:$0xff] }
 0x45a   : > { %3398 = vmatpush.msrb.mxu3 %v7137_v9 }
 0x45b   : > { %v7008_v21 = vpop.f32.mrf.mxu2  ;;  %3432 = vmatpush.msra.mxu0 %v6964_v38  ;;  %3491 = vmatpush.msra.mxu2 %v6972_v7 }
 0x45c   : > { %3399 = vmatpush.msrb.mxu3 %v7145_v31 }
 0x45d   : > { %v2929_v47 = vpop.f32.mrf.mxu1  ;;  %3433 = vmatpush.msra.mxu0 %v6968_v37  ;;  %3492 = vmatpush.msra.mxu2 %v6976_v52  ;;  %v7153_v52 = vld [vmem:[#allocation9 + $0x158] sm:$0xff] }
 0x45e   : > { %v2930_v17 = vadd.f32 %v2929_v47, %v2901_v25  ;;  %3400 = vmatpush.msrb.mxu3 %v7153_v52 }
 0x45f   : > { %v7018_v35 = vpop.f32.mrf.mxu0  ;;  %3434 = vmatpush.msra.mxu0 %v6974_v48  ;;  %3493 = vmatpush.msra.mxu2 %v6984_v4  ;;  %v7151_v48 = vld [vmem:[#allocation9 + $0x160] sm:$0xff]  ;;  %v7161_v4 = vld [vmem:[#allocation9 + $0x150] sm:$0xff] }
 0x460   : > { %v2959_v57 = vadd.f32 %v6978_v49, %v2930_v17  ;;  %v2904_v60 = vadd.f32 %v7018_v35, %v7073_v29  ;;  %3341 = vmatpush.msrb.mxu1 %v7151_v48  ;;  %3401 = vmatpush.msrb.mxu3 %v7163_v24  ;;  %v7203_v17 = vld [vmem:[#allocation9 + $0x118] sm:$0xff] }
 0x461   : > { %v7022_v2 = vpop.f32.mrf.mxu3  ;;  %3435 = vmatpush.msra.mxu0 %v6982_v58  ;;  %3494 = vmatpush.msra.mxu2 %v6994_v55  ;;  %7645 = vst [vmem:[#allocation19_spill] sm:$0xff] %v7203_v17 }
 0x462   : > { %v2988_v7 = vadd.f32 %v6998_v10, %v2959_v57  ;;  %3342 = vmatpush.msrb.mxu1 %v7161_v4 }
 0x463   : > { %v7030_v34 = vpop.f32.mrf.mxu2  ;;  %3436 = vmatpush.msra.mxu0 %v6992_v54  ;;  %3495 = vmatpush.msra.mxu2 %v7002_v62 }
 0x465   : > { %v7040_v19 = vpop.f32.mrf.mxu1  ;;  %3437 = vmatpush.msra.mxu0 %v6996_v39  ;;  %3496 = vmatpush.msra.mxu2 %v7006_v33 }
 0x466   : > { %v2933_v37 = vadd.f32 %v7040_v19, %v2904_v60  ;;  %v7186_v19 = vld [vmem:[#allocation9 + $0x140] sm:$0xff] }
 0x467   : > { %v7044_v42 = vpop.f32.mrf.mxu0  ;;  %3438 = vmatpush.msra.mxu0 %v7004_v5  ;;  %3497 = vmatpush.msra.mxu2 %v7014_v56  ;;  %7640 = vst [vmem:[#allocation14_spill] sm:$0xff] %v7186_v19  ;;  %v7190_v56 = vld [vmem:[#allocation9 + $0x130] sm:$0xff] }
 0x468   : > { %v2962_v55 = vadd.f32 %v7008_v21, %v2933_v37  ;;  %v2907_v39 = vadd.f32 %v7044_v42, %v7073_v29  ;;  %7642 = vst [vmem:[#allocation16_spill] sm:$0xff] %v7190_v56  ;;  %3343 = vmatpush.msrb.mxu1 %v7186_v19 }
 0x469   : > { %v7058_v13 = vpop.f32.mrf.mxu3  ;;  %3439 = vmatpush.msra.mxu0 %v7012_v0  ;;  %3498 = vmatpush.msra.mxu2 %v7026_v6  ;;  %v7188_v0 = vld [vmem:[#allocation9 + $0x138] sm:$0xff]  ;;  %v7201_v6 = vld [vmem:[#allocation9 + $0x120] sm:$0xff] }
 0x46a   : > { %v2991_v33 = vadd.f32 %v7022_v2, %v2962_v55  ;;  %7641 = vst [vmem:[#allocation15_spill] sm:$0xff] %v7188_v0  ;;  %3402 = vmatpush.msrb.mxu3 %v7188_v0  ;;  %v7196_v2 = vld [vmem:[#allocation9 + $0x128] sm:$0xff]  ;;  %3344 = vmatpush.msrb.mxu1 %v7190_v56 }
 0x46b   : > { %v7068_v32 = vpop.f32.mrf.mxu2  ;;  %3440 = vmatpush.msra.mxu0 %v7024_v63  ;;  %7643 = vst [vmem:[#allocation17_spill] sm:$0xff] %v7196_v2  ;;  %3499 = vmatpush.msra.mxu2 %v7034_v18 }
 0x46c   : > { %7644 = vst [vmem:[#allocation18_spill] sm:$0xff] %v7201_v6  ;;  %3403 = vmatpush.msrb.mxu3 %v7196_v2  ;;  %3345 = vmatpush.msrb.mxu1 %v7201_v6 }
 0x46d   : > { %v7081_v14 = vpop.f32.mrf.mxu1  ;;  %3441 = vmatpush.msra.mxu0 %v7028_v8  ;;  %3500 = vmatpush.msra.mxu2 %v7038_v46  ;;  %v7213_v8 = vld [vmem:[#allocation9 + $0x110] sm:$0xff]  ;;  %v7227_v46 = vld [vmem:[#allocation9 + $0x100] sm:$0xff] }
 0x46e   : > { %v2936_v5 = vadd.f32 %v7081_v14, %v2907_v39  ;;  %7646 = vst [vmem:[#allocation20_spill] sm:$0xff] %v7213_v8  ;;  %3404 = vmatpush.msrb.mxu3 %v7203_v17  ;;  %3346 = vmatpush.msrb.mxu1 %v7213_v8 }
 0x46f   : > { %v7087_v23 = vpop.f32.mrf.mxu0  ;;  %3442 = vmatpush.msra.mxu0 %v7036_v20  ;;  %7648 = vst [vmem:[#allocation22_spill] sm:$0xff] %v7227_v46 }
 0x470   : > { %v2965_v63 = vadd.f32 %v7030_v34, %v2936_v5  ;;  %v7215_v34 = vld [vmem:[#allocation9 + $0x108] sm:$0xff]  ;;  %3347 = vmatpush.msrb.mxu1 %v7227_v46 }
 0x471   : > { %v7100_v59 = vpop.f32.mrf.mxu3  ;;  %7647 = vst [vmem:[#allocation21_spill] sm:$0xff] %v7215_v34  ;;  %3405 = vmatpush.msrb.mxu3 %v7215_v34 }
 0x472   : > { %3456 = vmatpush.msra.mxu1 %v7052_v12 }
 0x473   : > { %v7112_v53 = vpop.f32.mrf.mxu2  ;;  %3514 = vmatpush.msra.mxu3 %v7050_v61 }
 0x474   : > { %3457 = vmatpush.msra.mxu1 %v7064_v50 }
 0x475   : > { %v7122_v43 = vpop.f32.mrf.mxu1  ;;  %3515 = vmatpush.msra.mxu3 %v7054_v28 }
 0x476   : > { %3458 = vmatpush.msra.mxu1 %v7077_v27 }
 0x477   : > { %v3016_v36 = vpop.f32.mrf.mxu0  ;;  %3516 = vmatpush.msra.mxu3 %v7066_v16 }
 0x478   : > { %v3017_v58 = vadd.f32 %v3016_v36, %v2988_v7  ;;  %v2910_v36 = vadd.f32 %v7087_v23, %v7073_v29  ;;  %v2994_v29 = vadd.f32 %v7058_v13, %v2965_v63  ;;  %3459 = vmatpush.msra.mxu1 %v7094_v11 }
 0x479   : > { %v7141_v38 = vpop.f32.mrf.mxu3  ;;  %3517 = vmatpush.msra.mxu3 %v7079_v30 }
 0x47a   : > { %v2939_v37 = vadd.f32 %v7122_v43, %v2910_v36  ;;  %3460 = vmatpush.msra.mxu1 %v7098_v15 }
 0x47b   : > { %v7155_v49 = vpop.f32.mrf.mxu2  ;;  %3518 = vmatpush.msra.mxu3 %v7096_v26 }
 0x47c   : > { %v2968_v43 = vadd.f32 %v7068_v32, %v2939_v37  ;;  %v7248_v32 = vperm.slane %v7056_v3, 1  ;;  %3461 = vmatpush.msra.mxu1 %v7108_v40 }
 0x47d   : > { %v3045_v54 = vpop.f32.mrf.mxu1  ;;  %3519 = vmatpush.msra.mxu3 %v7104_v1 }
 0x47e   : > { %v3046_v10 = vadd.f32 %v3045_v54, %v3017_v58  ;;  %3462 = vmatpush.msra.mxu1 %v7118_v51 }
 0x47f   : > { %v3019_v47 = vpop.f32.mrf.mxu0  ;;  %3520 = vmatpush.msra.mxu3 %v7110_v44 }
 0x480   : > { %v7174_v62 = vmax.f32 %v3046_v10, 0.0  ;;  %v3020_v35 = vadd.f32 %v3019_v47, %v2991_v33  ;;  %v2997_v10 = vadd.f32 %v7100_v59, %v2968_v43  ;;  %v3075_v59 = vadd.f32 %v7112_v53, %v7248_v32  ;;  %3463 = vmatpush.msra.mxu1 %v7135_v22 }
 0x481   : > { %v7178_v21 = vpop.f32.mrf.mxu3  ;;  %3521 = vmatpush.msra.mxu3 %v7120_v41 }
 0x482   : > { %3319 = vmatmul.f32.vlgmr.msrb.gmra.mxu0 %v7174_v62  ;;  %3377 = vmatmul.f32.vlgmr.msrb.gmra.mxu2 %v7174_v62  ;;  %v3104_v3 = vadd.f32 %v7141_v38, %v3075_v59  ;;  %v3078_v38 = vadd.f32 %v7155_v49, %v7248_v32  ;;  %v3419_v37 = vmul.f32 %v7174_v62, %v7174_v62 }
 0x483   : > { %v7192_v42 = vpop.f32.mrf.mxu2  ;;  %3522 = vmatpush.msra.mxu3 %v7137_v9  ;;  %3464 = vmatpush.msra.mxu1 %v7139_v45 }
 0x485   : > { %v3048_v14 = vpop.f32.mrf.mxu1  ;;  %3523 = vmatpush.msra.mxu3 %v7145_v31  ;;  %3465 = vmatpush.msra.mxu1 %v7151_v48 }
 0x486   : > { %v3049_v25 = vadd.f32 %v3048_v14, %v3020_v35 }
 0x487   : > { %v3022_v57 = vpop.f32.mrf.mxu0  ;;  %3524 = vmatpush.msra.mxu3 %v7153_v52  ;;  %3466 = vmatpush.msra.mxu1 %v7161_v4 }
 0x488   : > { %v7209_v60 = vmax.f32 %v3049_v25, 0.0  ;;  %v3023_v20 = vadd.f32 %v3022_v57, %v2994_v29 }
 0x489   : > { %v7217_v18 = vpop.f32.mrf.mxu3  ;;  %3525 = vmatpush.msra.mxu3 %v7163_v24  ;;  %3467 = vmatpush.msra.mxu1 %v7186_v19 }
 0x48a   : > { %3322 = vmatmul.f32.gmra.mxu0 %v7209_v60  ;;  %3380 = vmatmul.f32.gmra.mxu2 %v7209_v60 }
 0x48b   : > { %v7234_v13 = vpop.f32.mrf.mxu2  ;;  %3526 = vmatpush.msra.mxu3 %v7188_v0  ;;  %3468 = vmatpush.msra.mxu1 %v7190_v56 }
 0x48d   : > { %v3051_v23 = vpop.f32.mrf.mxu1  ;;  %3527 = vmatpush.msra.mxu3 %v7196_v2  ;;  %3469 = vmatpush.msra.mxu1 %v7201_v6 }
 0x48e   : > { %v3052_v7 = vadd.f32 %v3051_v23, %v3023_v20  ;;  %v3107_v20 = vadd.f32 %v7178_v21, %v3078_v38 }
 0x48f   : > { %v3025_v58 = vpop.f32.mrf.mxu0  ;;  %3528 = vmatpush.msra.mxu3 %v7203_v17  ;;  %3470 = vmatpush.msra.mxu1 %v7213_v8 }
 0x490   : > { %v7236_v54 = vmax.f32 %v3052_v7, 0.0  ;;  %v3026_v47 = vadd.f32 %v3025_v58, %v2997_v10 }
 0x491   : > { %v7240_v55 = vpop.f32.mrf.mxu3  ;;  %3529 = vmatpush.msra.mxu3 %v7215_v34  ;;  %3471 = vmatpush.msra.mxu1 %v7227_v46 }
 0x492   : > { %7649 = vst [vmem:[#allocation23_spill] sm:$0xff] %v7236_v54  ;;  %3325 = vmatmul.f32.gmra.mxu0 %v7236_v54  ;;  %3383 = vmatmul.f32.gmra.mxu2 %v7236_v54  ;;  %v3423_v38 = vmul.f32 %v7236_v54, %v7236_v54 }
 0x493   : > { %v3190_v14 = vpop.f32.mrf.mxu2 }
 0x495   : > { %v3054_v39 = vpop.f32.mrf.mxu1 }
 0x496   : > { %v3055_v5 = vadd.f32 %v3054_v39, %v3026_v47  ;;  %v3081_v39 = vadd.f32 %v7192_v42, %v7248_v32 }
 0x497   : > { %v3132_v33 = vpop.f32.mrf.mxu0 }
 0x498   : > { %v7256_v35 = vmax.f32 %v3055_v5, 0.0  ;;  %v3133_v25 = vadd.f32 %v3132_v33, %v3104_v3  ;;  %v3421_v33 = vmul.f32 %v7209_v60, %v7209_v60  ;;  %v3110_v59 = vadd.f32 %v7217_v18, %v3081_v39 }
 0x499   : > { %v3219_v63 = vpop.f32.mrf.mxu3 }
 0x49a   : > { %7650 = vst [vmem:[#allocation24_spill] sm:$0xff] %v7256_v35  ;;  %3328 = vmatmul.f32.gmra.mxu0 %v7256_v35  ;;  %3386 = vmatmul.f32.gmra.mxu2 %v7256_v35 }
 0x49b   : > { %v3193_v43 = vpop.f32.mrf.mxu2 }
 0x49d   : > { %v3161_v53 = vpop.f32.mrf.mxu1 }
 0x49e   : > { %v3162_v57 = vadd.f32 %v3161_v53, %v3133_v25 }
 0x49f   : > { %v3135_v36 = vpop.f32.mrf.mxu0 }
 0x4a0   : > { %v3191_v29 = vadd.f32 %v3190_v14, %v3162_v57  ;;  %v3136_v49 = vadd.f32 %v3135_v36, %v3107_v20  ;;  %v3084_v57 = vadd.f32 %v7234_v13, %v7248_v32 }
 0x4a1   : > { %v3222_v58 = vpop.f32.mrf.mxu3 }
 0x4a2   : > { %v3220_v23 = vadd.f32 %v3219_v63, %v3191_v29  ;;  %3443 = vmatmul.f32.vlgmr.msra.gmra.mxu0 %v3419_v37  ;;  %3501 = vmatmul.f32.vlgmr.msra.gmra.mxu2 %v3419_v37  ;;  %v3113_v29 = vadd.f32 %v7240_v55, %v3084_v57 }
 0x4a3   : > { %v3196_v63 = vpop.f32.mrf.mxu2 }
 0x4a4   : > { %v7278_v7 = vmax.f32 %v3220_v23, 0.0 }
 0x4a5   : > { %v3164_v10 = vpop.f32.mrf.mxu1 }
 0x4a6   : > { %v3165_v47 = vadd.f32 %v3164_v10, %v3136_v49  ;;  %3348 = vmatmul.f32.vlgmr.msrb.gmra.mxu1 %v7278_v7  ;;  %3406 = vmatmul.f32.vlgmr.msrb.gmra.mxu3 %v7278_v7  ;;  %v3425_v10 = vmul.f32 %v7256_v35, %v7256_v35  ;;  %v3420_v39 = vmul.f32 %v7278_v7, %v7278_v7 }
 0x4a7   : > { %v3138_v21 = vpop.f32.mrf.mxu0 }
 0x4a8   : > { %v3194_v5 = vadd.f32 %v3193_v43, %v3165_v47  ;;  %v3139_v42 = vadd.f32 %v3138_v21, %v3110_v59 }
 0x4a9   : > { %v3225_v18 = vpop.f32.mrf.mxu3 }
 0x4aa   : > { %v3223_v14 = vadd.f32 %v3222_v58, %v3194_v5  ;;  %3446 = vmatmul.f32.gmra.mxu0 %v3421_v33  ;;  %3504 = vmatmul.f32.gmra.mxu2 %v3421_v33 }
 0x4ab   : > { %v3199_v13 = vpop.f32.mrf.mxu2 }
 0x4ac   : > { %v7295_v3 = vmax.f32 %v3223_v14, 0.0 }
 0x4ad   : > { %v3167_v25 = vpop.f32.mrf.mxu1 }
 0x4ae   : > { %v3168_v53 = vadd.f32 %v3167_v25, %v3139_v42  ;;  %3351 = vmatmul.f32.gmra.mxu1 %v7295_v3  ;;  %3409 = vmatmul.f32.gmra.mxu3 %v7295_v3  ;;  %v3422_v5 = vmul.f32 %v7295_v3, %v7295_v3 }
 0x4af   : > { %v3141_v37 = vpop.f32.mrf.mxu0 }
 0x4b0   : > { %v3197_v36 = vadd.f32 %v3196_v63, %v3168_v53  ;;  %v3142_v43 = vadd.f32 %v3141_v37, %v3113_v29 }
 0x4b1   : > { %v3228_v47 = vpop.f32.mrf.mxu3 }
 0x4b2   : > { %v3226_v20 = vadd.f32 %v3225_v18, %v3197_v36  ;;  %3449 = vmatmul.f32.gmra.mxu0 %v3423_v38  ;;  %3507 = vmatmul.f32.gmra.mxu2 %v3423_v38 }
 0x4b4   : > { %v7305_v23 = vmax.f32 %v3226_v20, 0.0 }
 0x4b5   : > { %v3170_v49 = vpop.f32.mrf.mxu1 }
 0x4b6   : > { %7651 = vst [vmem:[#allocation25_spill] sm:$0xff] %v7305_v23  ;;  %v3171_v58 = vadd.f32 %v3170_v49, %v3142_v43  ;;  %3354 = vmatmul.f32.gmra.mxu1 %v7305_v23  ;;  %3412 = vmatmul.f32.gmra.mxu3 %v7305_v23  ;;  %v3424_v33 = vmul.f32 %v7305_v23, %v7305_v23 }
 0x4b8   : > { %v3200_v32 = vadd.f32 %v3199_v13, %v3171_v58 }
 0x4ba   : > { %v3229_v21 = vadd.f32 %v3228_v47, %v3200_v32  ;;  %3452 = vmatmul.f32.gmra.mxu0 %v3425_v10  ;;  %3510 = vmatmul.f32.gmra.mxu2 %v3425_v10 }
 0x4bc   : > { %v7311_v55 = vmax.f32 %v3229_v21, 0.0 }
 0x4be   : > { %7652 = vst [vmem:[#allocation26_spill] sm:$0xff] %v7311_v55  ;;  %3357 = vmatmul.f32.gmra.mxu1 %v7311_v55  ;;  %3415 = vmatmul.f32.gmra.mxu3 %v7311_v55  ;;  %v3426_v59 = vmul.f32 %v7311_v55, %v7311_v55 }
 0x4c6   : > { %3472 = vmatmul.f32.vlgmr.msra.gmra.mxu1 %v3420_v39  ;;  %3530 = vmatmul.f32.vlgmr.msra.gmra.mxu3 %v3420_v39 }
 0x4ce   : > { %3475 = vmatmul.f32.gmra.mxu1 %v3422_v5  ;;  %3533 = vmatmul.f32.gmra.mxu3 %v3422_v5 }
 0x4d6   : > { %3478 = vmatmul.f32.gmra.mxu1 %v3424_v33  ;;  %3536 = vmatmul.f32.gmra.mxu3 %v3424_v33 }
 0x4de   : > { %3481 = vmatmul.f32.gmra.mxu1 %v3426_v59  ;;  %3539 = vmatmul.f32.gmra.mxu3 %v3426_v59 }
 0x4ff   : > { %v3320_v14 = vpop.f32.mrf.mxu0 }
 0x505   : > { %v3378_v42 = vpop.f32.mrf.mxu2 }
 0x507   : > { %v3323_v63 = vpop.f32.mrf.mxu0 }
 0x50d   : > { %v3381_v53 = vpop.f32.mrf.mxu2 }
 0x50f   : > { %v3326_v18 = vpop.f32.mrf.mxu0 }
 0x515   : > { %v3384_v38 = vpop.f32.mrf.mxu2 }
 0x517   : > { %v3329_v29 = vpop.f32.mrf.mxu0 }
 0x51d   : > { %v3387_v43 = vpop.f32.mrf.mxu2 }
 0x51f   : > { %v3444_v13 = vpop.f32.mrf.mxu0 }
 0x523   : > { %v3349_v25 = vpop.f32.mrf.mxu1 }
 0x524   : > { %v3350_v39 = vadd.f32 %v3349_v25, %v3320_v14  ;;  %v3659_v25 = vld [vmem:[#allocation6 + $0xf0] sm:$0xff] }
 0x525   : > { %v7323_v10 = vpop.f32.mrf.mxu2  ;;  %3693 = vmatpush.msrb.mxu0 %v3659_v25  ;;  %v3687_v25 = vld [vmem:[#allocation6 + $0x1d0] sm:$0xff] }
 0x527   : > { %v3447_v33 = vpop.f32.mrf.mxu0 }
 0x529   : > { %v3407_v57 = vpop.f32.mrf.mxu3 }
 0x52a   : > { %v3408_v8 = vadd.f32 %v3407_v57, %v3378_v42  ;;  %v3653_v57 = vld [vmem:[#allocation6 + $0xc0] sm:$0xff] }
 0x52b   : > { %v3352_v36 = vpop.f32.mrf.mxu1 }
 0x52c   : > { %v3353_v47 = vadd.f32 %v3352_v36, %v3323_v63 }
 0x52d   : > { %v3505_v2 = vpop.f32.mrf.mxu2 }
 0x52e   : > { %v3543_v59 = vadd.f32 %v3353_v47, %v3350_v39 }
 0x52f   : > { %v3450_v63 = vpop.f32.mrf.mxu0 }
 0x531   : > { %v3410_v37 = vpop.f32.mrf.mxu3 }
 0x532   : > { %v3411_v46 = vadd.f32 %v3410_v37, %v3381_v53  ;;  %v3657_v53 = vld [vmem:[#allocation6 + $0xe0] sm:$0xff]  ;;  %v3658_v37 = vld [vmem:[#allocation6 + $0xe8] sm:$0xff] }
 0x533   : > { %v3355_v20 = vpop.f32.mrf.mxu1  ;;  %3694 = vmatpush.msrb.mxu0 %v3657_v53 }
 0x534   : > { %v3356_v5 = vadd.f32 %v3355_v20, %v3326_v18  ;;  %v3552_v56 = vadd.f32 %v3411_v46, %v3408_v8  ;;  %v3660_v18 = vld [vmem:[#allocation6 + $0xf8] sm:$0xff] }
 0x535   : > { %3751 = vmatpush.msrb.mxu2 %v3660_v18  ;;  %v3656_v8 = vld [vmem:[#allocation6 + $0xd8] sm:$0xff]  ;;  %v3508_v46 = vpop.f32.mrf.mxu2 }
 0x536   : > { %v3544_v35 = vadd.f32 %v3543_v59, %v3356_v5 }
 0x537   : > { %3752 = vmatpush.msrb.mxu2 %v3658_v37  ;;  %v3453_v47 = vpop.f32.mrf.mxu0 }
 0x539   : > { %v3413_v49 = vpop.f32.mrf.mxu3  ;;  %3753 = vmatpush.msrb.mxu2 %v3656_v8 }
 0x53a   : > { %v3414_v23 = vadd.f32 %v3413_v49, %v3384_v38 }
 0x53b   : > { %v3358_v58 = vpop.f32.mrf.mxu1 }
 0x53c   : > { %v3359_v55 = vadd.f32 %v3358_v58, %v3329_v29  ;;  %v3553_v0 = vadd.f32 %v3552_v56, %v3414_v23  ;;  %v3692_v23 = vld [vmem:[#allocation6 + $0x1f8] sm:$0xff]  ;;  %v3651_v58 = vld [vmem:[#allocation6 + $0xb0] sm:$0xff] }
 0x53d   : > { %3780 = vmatpush.msrb.mxu3 %v3692_v23  ;;  %v3683_v23 = vld [vmem:[#allocation6 + $0x1b0] sm:$0xff] }
 0x53e   : > { %v3545_v17 = vadd.f32 %v3544_v35, %v3359_v55  ;;  %v3655_v55 = vld [vmem:[#allocation6 + $0xd0] sm:$0xff] }
 0x53f   : > { %3695 = vmatpush.msrb.mxu0 %v3655_v55 }
 0x540   : > { %v3546_v19 = vrot.slane %v3545_v17, 4 }
 0x541   : > { %v3416_v32 = vpop.f32.mrf.mxu3  ;;  %3696 = vmatpush.msrb.mxu0 %v3653_v57  ;;  %v3511_v57 = vpop.f32.mrf.mxu2 }
 0x542   : > { %v3417_v54 = vadd.f32 %v3416_v32, %v3387_v43  ;;  %v3547_v20 = vadd.f32 %v3546_v19, %v3545_v17  ;;  %v3691_v19 = vld [vmem:[#allocation6 + $0x1f0] sm:$0xff]  ;;  %v3654_v43 = vld [vmem:[#allocation6 + $0xc8] sm:$0xff]  ;;  %v3689_v32 = vld [vmem:[#allocation6 + $0x1e0] sm:$0xff] }
 0x543   : > { %v3473_v21 = vpop.f32.mrf.mxu1  ;;  %3722 = vmatpush.msrb.mxu1 %v3691_v19  ;;  %3754 = vmatpush.msrb.mxu2 %v3654_v43 }
 0x544   : > { %v3554_v36 = vadd.f32 %v3553_v0, %v3417_v54  ;;  %v3548_v56 = vrot.slane %v3547_v20, 2  ;;  %v3474_v0 = vadd.f32 %v3473_v21, %v3444_v13  ;;  %3697 = vmatpush.msrb.mxu0 %v3651_v58  ;;  %v3652_v13 = vld [vmem:[#allocation6 + $0xb8] sm:$0xff]  ;;  %v3681_v58 = vld [vmem:[#allocation6 + $0x1a0] sm:$0xff] }
 0x545   : > { %3723 = vmatpush.msrb.mxu1 %v3689_v32  ;;  %3755 = vmatpush.msrb.mxu2 %v3652_v13  ;;  %v3644_v32 = vld [vmem:[#allocation6 + $0x78] sm:$0xff] }
 0x546   : > { %v3555_v42 = vrot.slane %v3554_v36, 4  ;;  %v3549_v39 = vadd.f32 %v3548_v56, %v3547_v20 }
 0x547   : > { %3724 = vmatpush.msrb.mxu1 %v3687_v25 }
 0x548   : > { %v3556_v17 = vadd.f32 %v3555_v42, %v3554_v36  ;;  %v3649_v36 = vld [vmem:[#allocation6 + $0xa0] sm:$0xff]  ;;  %v3686_v42 = vld [vmem:[#allocation6 + $0x1c8] sm:$0xff]  ;;  %v3550_v55 = vrot.slane %v3549_v39, 1 }
 0x549   : > { %v7325_v34 = vpop.f32.mrf.mxu3  ;;  %3698 = vmatpush.msrb.mxu0 %v3649_v36 }
 0x54a   : > { %v3557_v18 = vrot.slane %v3556_v17, 2  ;;  %v3532_v53 = vadd.f32 %v7325_v34, %v7323_v10 }
 0x54b   : > { %v3476_v6 = vpop.f32.mrf.mxu1 }
 0x54c   : > { %v3477_v35 = vadd.f32 %v3476_v6, %v3447_v33  ;;  %v3690_v6 = vld [vmem:[#allocation6 + $0x1e8] sm:$0xff]  ;;  %v3558_v34 = vadd.f32 %v3557_v18, %v3556_v17  ;;  %v3680_v17 = vld [vmem:[#allocation6 + $0x198] sm:$0xff] }
 0x54d   : > { %3781 = vmatpush.msrb.mxu3 %v3690_v6  ;;  %v3643_v6 = vld [vmem:[#allocation6 + $0x70] sm:$0xff]  ;;  %v3678_v18 = vld [vmem:[#allocation6 + $0x188] sm:$0xff] }
 0x54e   : > { %v3563_v49 = vadd.f32 %v3477_v35, %v3474_v0  ;;  %v3648_v35 = vld [vmem:[#allocation6 + $0x98] sm:$0xff] }
 0x54f   : > { %v3684_v0 = vld [vmem:[#allocation6 + $0x1b8] sm:$0xff] }
 0x551   : > { %v3534_v14 = vpop.f32.mrf.mxu3 }
 0x552   : > { %v3535_v21 = vadd.f32 %v3534_v14, %v3505_v2  ;;  %v3647_v2 = vld [vmem:[#allocation6 + $0x90] sm:$0xff]  ;;  %v3685_v14 = vld [vmem:[#allocation6 + $0x1c0] sm:$0xff] }
 0x553   : > { %v3479_v29 = vpop.f32.mrf.mxu1  ;;  %3699 = vmatpush.msrb.mxu0 %v3647_v2  ;;  %3725 = vmatpush.msrb.mxu1 %v3685_v14  ;;  %v3676_v2 = vld [vmem:[#allocation6 + $0x178] sm:$0xff]  ;;  %v3637_v14 = vld [vmem:[#allocation6 + $0x40] sm:$0xff] }
 0x554   : > { %v3480_v54 = vadd.f32 %v3479_v29, %v3450_v63  ;;  %v3688_v63 = vld [vmem:[#allocation6 + $0x1d8] sm:$0xff]  ;;  %v3650_v29 = vld [vmem:[#allocation6 + $0xa8] sm:$0xff]  ;;  %v3572_v8 = vadd.f32 %v3535_v21, %v3532_v53  ;;  %v3641_v21 = vld [vmem:[#allocation6 + $0x60] sm:$0xff] }
 0x555   : > { %3782 = vmatpush.msrb.mxu3 %v3688_v63  ;;  %3756 = vmatpush.msrb.mxu2 %v3650_v29  ;;  %v3559_v63 = vrot.slane %v3558_v34, 1  ;;  %v3639_v29 = vld [vmem:[#allocation6 + $0x50] sm:$0xff]  ;;  %v3677_v53 = vld [vmem:[#allocation6 + $0x180] sm:$0xff] }
 0x556   : > { %v3564_v33 = vadd.f32 %v3563_v49, %v3480_v54  ;;  %v3645_v54 = vld [vmem:[#allocation6 + $0x80] sm:$0xff]  ;;  %3726 = vmatpush.msrb.mxu1 %v3683_v23  ;;  %v3682_v49 = vld [vmem:[#allocation6 + $0x1a8] sm:$0xff] }
 0x557   : > { %3783 = vmatpush.msrb.mxu3 %v3686_v42  ;;  %3757 = vmatpush.msrb.mxu2 %v3648_v35  ;;  %v3675_v35 = vld [vmem:[#allocation6 + $0x170] sm:$0xff] }
 0x558   : > { %3700 = vmatpush.msrb.mxu0 %v3645_v54  ;;  %3727 = vmatpush.msrb.mxu1 %v3681_v58 }
 0x559   : > { %v3537_v38 = vpop.f32.mrf.mxu3  ;;  %3784 = vmatpush.msrb.mxu3 %v3684_v0  ;;  %v3560_v0 = vadd.f32 %v3559_v63, %v3558_v34  ;;  %v3670_v34 = vld [vmem:[#allocation6 + $0x148] sm:$0xff]  ;;  %v3667_v63 = vld [vmem:[#allocation6 + $0x130] sm:$0xff] }
 0x55a   : > { %v3538_v20 = vadd.f32 %v3537_v38, %v3508_v46  ;;  %v3646_v46 = vld [vmem:[#allocation6 + $0x88] sm:$0xff]  ;;  %3701 = vmatpush.msrb.mxu0 %v3643_v6 }
 0x55b   : > { %v3482_v5 = vpop.f32.mrf.mxu1  ;;  %3758 = vmatpush.msrb.mxu2 %v3646_v46  ;;  %3785 = vmatpush.msrb.mxu3 %v3682_v49  ;;  %v3672_v46 = vld [vmem:[#allocation6 + $0x158] sm:$0xff] }
 0x55c   : > { %v3483_v59 = vadd.f32 %v3482_v5, %v3453_v47  ;;  %v3573_v19 = vadd.f32 %v3572_v8, %v3538_v20  ;;  %v3551_v47 = vadd.f32 %v3550_v55, %v3549_v39  ;;  %3702 = vmatpush.msrb.mxu0 %v3641_v21  ;;  %v3640_v39 = vld [vmem:[#allocation6 + $0x58] sm:$0xff]  ;;  %v3638_v55 = vld [vmem:[#allocation6 + $0x48] sm:$0xff] }
 0x55d   : > { %3759 = vmatpush.msrb.mxu2 %v3644_v32  ;;  %3786 = vmatpush.msrb.mxu3 %v3680_v17  ;;  %v3674_v8 = vld [vmem:[#allocation6 + $0x168] sm:$0xff]  ;;  %v3631_v32 = vld [vmem:[#allocation6 + $0x10] sm:$0xff] }
 0x55e   : > { %v3565_v37 = vadd.f32 %v3564_v33, %v3483_v59  ;;  %v3679_v33 = vld [vmem:[#allocation6 + $0x190] sm:$0xff]  ;;  %v3642_v59 = vld [vmem:[#allocation6 + $0x68] sm:$0xff]  ;;  %3703 = vmatpush.msrb.mxu0 %v3639_v29  ;;  %v7329_v20 = vmul.f32 0.001953125, %v3551_v47  ;;  %v3669_v47 = vld [vmem:[#allocation6 + $0x140] sm:$0xff] }
 0x55f   : > { %3728 = vmatpush.msrb.mxu1 %v3679_v33  ;;  %3760 = vmatpush.msrb.mxu2 %v3642_v59  ;;  %v3668_v33 = vld [vmem:[#allocation6 + $0x138] sm:$0xff]  ;;  %v3629_v59 = vld [vmem:[#allocation6] sm:$0xff]  ;;  %v3666_v29 = vld [vmem:[#allocation6 + $0x128] sm:$0xff] }
 0x560   : > { %v3566_v56 = vrot.slane %v3565_v37, 4  ;;  %3787 = vmatpush.msrb.mxu3 %v3678_v18  ;;  %3704 = vmatpush.msrb.mxu0 %v3637_v14  ;;  %v3583_v49 = vmul.f32 %v7329_v20, %v7329_v20  ;;  %v7340_v14 = vld [vmem:[#allocation9 + $0xf0] sm:$0xff] }
 0x561   : > { %v3540_v10 = vpop.f32.mrf.mxu3  ;;  %3729 = vmatpush.msrb.mxu1 %v3677_v53  ;;  %3761 = vmatpush.msrb.mxu2 %v3640_v39  ;;  %v3665_v53 = vld [vmem:[#allocation6 + $0x120] sm:$0xff] }
 0x562   : > { %v3567_v38 = vadd.f32 %v3566_v56, %v3565_v37  ;;  %v3541_v43 = vadd.f32 %v3540_v10, %v3511_v57  ;;  %3788 = vmatpush.msrb.mxu3 %v3676_v2  ;;  %v3635_v56 = vld [vmem:[#allocation6 + $0x30] sm:$0xff]  ;;  %v3673_v57 = vld [vmem:[#allocation6 + $0x160] sm:$0xff]  ;;  %v3636_v10 = vld [vmem:[#allocation6 + $0x38] sm:$0xff] }
 0x563   : > { %3730 = vmatpush.msrb.mxu1 %v3675_v35  ;;  %3762 = vmatpush.msrb.mxu2 %v3638_v55  ;;  %v3663_v2 = vld [vmem:[#allocation6 + $0x110] sm:$0xff]  ;;  %v3662_v55 = vld [vmem:[#allocation6 + $0x108] sm:$0xff] }
 0x564   : > { %v3568_v5 = vrot.slane %v3567_v38, 2  ;;  %v3574_v13 = vadd.f32 %v3573_v19, %v3541_v43  ;;  %3789 = vmatpush.msrb.mxu3 %v3674_v8  ;;  %3705 = vmatpush.msrb.mxu0 %v3635_v56  ;;  %v3633_v19 = vld [vmem:[#allocation6 + $0x20] sm:$0xff]  ;;  %v3634_v43 = vld [vmem:[#allocation6 + $0x28] sm:$0xff] }
 0x565   : > { %3731 = vmatpush.msrb.mxu1 %v3673_v57  ;;  %3763 = vmatpush.msrb.mxu2 %v3636_v10  ;;  %v7343_v8 = vld [vmem:[#allocation9 + $0xf8] sm:$0xff]  ;;  %v7354_v57 = vld [vmem:[#allocation9 + $0xd0] sm:$0xff] }
 0x566   : > { %v3569_v36 = vadd.f32 %v3568_v5, %v3567_v38  ;;  %v3575_v25 = vrot.slane %v3574_v13, 4  ;;  %v3671_v38 = vld [vmem:[#allocation6 + $0x150] sm:$0xff]  ;;  %3790 = vmatpush.msrb.mxu3 %v3672_v46  ;;  %3706 = vmatpush.msrb.mxu0 %v3633_v19  ;;  %v3632_v5 = vld [vmem:[#allocation6 + $0x18] sm:$0xff]  ;;  %v3661_v56 = vld [vmem:[#allocation6 + $0x100] sm:$0xff] }
 0x567   : > { %3732 = vmatpush.msrb.mxu1 %v3671_v38  ;;  %3764 = vmatpush.msrb.mxu2 %v3634_v43  ;;  %v7358_v46 = vld [vmem:[#allocation9 + $0xd8] sm:$0xff]  ;;  %v7363_v38 = vld [vmem:[#allocation9 + $0xc0] sm:$0xff]  ;;  %v7367_v43 = vld [vmem:[#allocation9 + $0xc8] sm:$0xff] }
 0x568   : > { %v3570_v37 = vrot.slane %v3569_v36, 1  ;;  %v3576_v42 = vadd.f32 %v3575_v25, %v3574_v13  ;;  %v7333_v13 = vmul.f32 0.001953125, %v3560_v0  ;;  %3791 = vmatpush.msrb.mxu3 %v3670_v34  ;;  %3707 = vmatpush.msrb.mxu0 %v3631_v32  ;;  %v7346_v0 = vld [vmem:[#allocation9 + $0xe0] sm:$0xff] }
 0x569   : > { %3733 = vmatpush.msrb.mxu1 %v3669_v47  ;;  %3765 = vmatpush.msrb.mxu2 %v3632_v5  ;;  %v7388_v47 = vld [vmem:[#allocation9 + $0x90] sm:$0xff] }
 0x56a   : > { %v3571_v54 = vadd.f32 %v3570_v37, %v3569_v36  ;;  %v3577_v23 = vrot.slane %v3576_v42, 2  ;;  %v3630_v36 = vld [vmem:[#allocation6 + $0x8] sm:$0xff]  ;;  %3792 = vmatpush.msrb.mxu3 %v3668_v33  ;;  %3708 = vmatpush.msrb.mxu0 %v3629_v59  ;;  %v3584_v39 = vmul.f32 %v7333_v13, %v7333_v13  ;;  %v7407_v33 = vld [vmem:[#allocation9 + $0x70] sm:$0xff] }
 0x56b   : > { %3734 = vmatpush.msrb.mxu1 %v3667_v63  ;;  %3766 = vmatpush.msrb.mxu2 %v3630_v36  ;;  %v7421_v36 = vld [vmem:[#allocation9 + $0x60] sm:$0xff] }
 0x56c   : > { %v3581_v6 = vmul.f32 0.001953125, %v3571_v54  ;;  %v3578_v58 = vadd.f32 %v3577_v23, %v3576_v42  ;;  %v3664_v42 = vld [vmem:[#allocation6 + $0x118] sm:$0xff]  ;;  %3793 = vmatpush.msrb.mxu3 %v3666_v29  ;;  %3809 = vmatpush.msra.mxu0 %v7340_v14  ;;  %v7351_v23 = vld [vmem:[#allocation9 + $0xe8] sm:$0xff] }
 0x56d   : > { %3735 = vmatpush.msrb.mxu1 %v3665_v53  ;;  %3867 = vmatpush.msra.mxu2 %v7343_v8 }
 0x56e   : > { %v3585_v17 = vsub.f32 %v3581_v6, %v3583_v49  ;;  %v3579_v21 = vrot.slane %v3578_v58, 1  ;;  %3794 = vmatpush.msrb.mxu3 %v3664_v42  ;;  %3810 = vmatpush.msra.mxu0 %v7346_v0  ;;  %v7371_v6 = vld [vmem:[#allocation9 + $0xb0] sm:$0xff]  ;;  %v7481_v42 = vld [vmem:[#allocation9 + $0x18] sm:$0xff] }
 0x56f   : > { %3736 = vmatpush.msrb.mxu1 %v3663_v2  ;;  %3868 = vmatpush.msra.mxu2 %v7351_v23 }
 0x570   : > { %v7335_v25 = vadd.f32 1e-05, %v3585_v17  ;;  %v3580_v18 = vadd.f32 %v3579_v21, %v3578_v58  ;;  %3795 = vmatpush.msrb.mxu3 %v3662_v55  ;;  %3811 = vmatpush.msra.mxu0 %v7354_v57  ;;  %v7397_v17 = vld [vmem:[#allocation9 + $0x80] sm:$0xff] }
 0x571   : > { %3737 = vmatpush.msrb.mxu1 %v3661_v56  ;;  %3869 = vmatpush.msra.mxu2 %v7358_v46  ;;  %v7488_v55 = vld [vmem:[#allocation9] sm:$0xff]  ;;  %v7492_v56 = vld [vmem:[#allocation9 + $0x8] sm:$0xff] }
 0x572   : > { %4738 = vrsqrt.f32 %v7335_v25  ;;  %v3582_v37 = vmul.f32 0.001953125, %v3580_v18  ;;  %3896 = vmatpush.msra.mxu3 %v7050_v61  ;;  %3812 = vmatpush.msra.mxu0 %v7363_v38  ;;  %v7375_v61 = vld [vmem:[#allocation9 + $0xb8] sm:$0xff]  ;;  %vm3595_vm15 = vweird.f32 %v7335_v25  ;;  %v7443_v18 = vld [vmem:[#allocation9 + $0x40] sm:$0xff] }
 0x573   : > { %3838 = vmatpush.msra.mxu1 %v7052_v12  ;;  %3870 = vmatpush.msra.mxu2 %v7367_v43  ;;  %v7379_v12 = vld [vmem:[#allocation9 + $0xa0] sm:$0xff] }
 0x574   : > { %v3586_v35 = vsub.f32 %v3582_v37, %v3584_v39  ;;  %3897 = vmatpush.msra.mxu3 %v7054_v28  ;;  %3813 = vmatpush.msra.mxu0 %v7371_v6  ;;  %v7383_v28 = vld [vmem:[#allocation9 + $0xa8] sm:$0xff]  ;;  %v7653_v37 = vld [vmem:[#allocation14_spill] sm:$0xff] }
 0x575   : > { %3839 = vmatpush.msra.mxu1 %v7064_v50  ;;  %3871 = vmatpush.msra.mxu2 %v7375_v61 }
 0x576   : > { %v7349_v54 = vadd.f32 1e-05, %v3586_v35  ;;  %3898 = vmatpush.msra.mxu3 %v7066_v16  ;;  %3814 = vmatpush.msra.mxu0 %v7379_v12  ;;  %v7392_v16 = vld [vmem:[#allocation9 + $0x98] sm:$0xff]  ;;  %v7655_v35 = vld [vmem:[#allocation23_spill] sm:$0xff] }
 0x577   : > { %3840 = vmatpush.msra.mxu1 %v7077_v27  ;;  %3872 = vmatpush.msra.mxu2 %v7383_v28 }
 0x578   : > { %v4739_v10 = vpop.eup %4738  ;;  %4740 = vrsqrt.f32 %v7349_v54  ;;  %3899 = vmatpush.msra.mxu3 %v7079_v30  ;;  %3815 = vmatpush.msra.mxu0 %v7388_v47  ;;  %v7401_v30 = vld [vmem:[#allocation9 + $0x88] sm:$0xff]  ;;  %vm3605_vm2 = vweird.f32 %v7349_v54 }
 0x579   : > { %v3590_v19 = vmul.f32 %v4739_v10, %v7335_v25  ;;  %vm3596_vm14 = vweird.f32 %v4739_v10  ;;  %3841 = vmatpush.msra.mxu1 %v7094_v11  ;;  %3873 = vmatpush.msra.mxu2 %v7392_v16 }
 0x57a   : > { %3900 = vmatpush.msra.mxu3 %v7096_v26  ;;  %3816 = vmatpush.msra.mxu0 %v7397_v17  ;;  %vm3597_vm0 = vmor %vm3595_vm15, %vm3596_vm14 }
 0x57b   : > { %v3591_v49 = vmul.f32 %v4739_v10, %v3590_v19  ;;  %3842 = vmatpush.msra.mxu1 %v7098_v15  ;;  %3874 = vmatpush.msra.mxu2 %v7401_v30  ;;  %v7413_v15 = vld [vmem:[#allocation9 + $0x78] sm:$0xff]  ;;  %v7658_v19 = vld [vmem:[#allocation18_spill] sm:$0xff] }
 0x57c   : > { %3901 = vmatpush.msra.mxu3 %v7104_v1  ;;  %3817 = vmatpush.msra.mxu0 %v7407_v33 }
 0x57d   : > { %v3592_v58 = vmul.f32 0.5, %v3591_v49  ;;  %3843 = vmatpush.msra.mxu1 %v7108_v40  ;;  %3875 = vmatpush.msra.mxu2 %v7413_v15  ;;  %v7659_v49 = vld [vmem:[#allocation19_spill] sm:$0xff] }
 0x57e   : > { %v4741_v34 = vpop.eup %4740  ;;  %3902 = vmatpush.msra.mxu3 %v7110_v44  ;;  %3818 = vmatpush.msra.mxu0 %v7421_v36 }
 0x57f   : > { %v3593_v32 = vsub.f32 1.5, %v3592_v58  ;;  %v3600_v50 = vmul.f32 %v4741_v34, %v7349_v54  ;;  %vm3606_vm1 = vweird.f32 %v4741_v34  ;;  %3844 = vmatpush.msra.mxu1 %v7118_v51  ;;  %v7437_v51 = vld [vmem:[#allocation9 + $0x58] sm:$0xff] }
 0x580   : > { %3903 = vmatpush.msra.mxu3 %v7120_v41  ;;  %vm3607_vm3 = vmor %vm3605_vm2, %vm3606_vm1  ;;  %v7657_v54 = vld [vmem:[#allocation17_spill] sm:$0xff] }
 0x581   : > { %v3594_v27 = vmul.f32 %v4739_v10, %v3593_v32  ;;  %v3601_v5 = vmul.f32 %v4741_v34, %v3600_v50  ;;  %3845 = vmatpush.msra.mxu1 %v7135_v22  ;;  %v7451_v22 = vld [vmem:[#allocation9 + $0x48] sm:$0xff]  ;;  %v7660_v58 = vld [vmem:[#allocation25_spill] sm:$0xff]  ;;  %v7661_v32 = vld [vmem:[#allocation20_spill] sm:$0xff] }
 0x582   : > { %3904 = vmatpush.msra.mxu3 %v7137_v9  ;;  %v7662_v50 = vld [vmem:[#allocation21_spill] sm:$0xff] }
 0x583   : > { %v7404_v11 = vsel %vm3597_vm0, %v4739_v10, %v3594_v27  ;;  %v3602_v21 = vmul.f32 0.5, %v3601_v5  ;;  %3846 = vmatpush.msra.mxu1 %v7139_v45 }
 0x584   : > { %v3617_v26 = vmul.f32 %v7404_v11, %v7329_v20  ;;  %v3609_v1 = vmul.f32 %v7404_v11, %v7174_v62  ;;  %v7426_v20 = vld [vmem:[#allocation9 + $0x68] sm:$0xff]  ;;  %v7431_v62 = vld [vmem:[#allocation9 + $0x50] sm:$0xff]  ;;  %3905 = vmatpush.msra.mxu3 %v7145_v31  ;;  %v3611_v39 = vmul.f32 %v7404_v11, %v7209_v60  ;;  %v7467_v31 = vld [vmem:[#allocation9 + $0x20] sm:$0xff] }
 0x585   : > { %v3603_v59 = vsub.f32 1.5, %v3602_v21  ;;  %3876 = vmatpush.msra.mxu2 %v7426_v20  ;;  %3819 = vmatpush.msra.mxu0 %v7431_v62  ;;  %v7471_v60 = vld [vmem:[#allocation9 + $0x28] sm:$0xff]  ;;  %v7664_v21 = vld [vmem:[#allocation22_spill] sm:$0xff] }
 0x586   : > { %v7419_v63 = vsub.f32 0.001, %v3617_v26  ;;  %3847 = vmatpush.msra.mxu1 %v7151_v48  ;;  %3906 = vmatpush.msra.mxu3 %v7153_v52  ;;  %v7477_v52 = vld [vmem:[#allocation9 + $0x10] sm:$0xff]  ;;  %v7665_v26 = vld [vmem:[#allocation26_spill] sm:$0xff] }
 0x587   : > { %v3604_v40 = vmul.f32 %v4741_v34, %v3603_v59  ;;  %3877 = vmatpush.msra.mxu2 %v7437_v51  ;;  %3820 = vmatpush.msra.mxu0 %v7443_v18  ;;  %v4782_v59 = vld [vmem:[#allocation9 + $0x1d8] sm:$0xff] }
 0x588   : > { %v3621_v44 = vadd.f32 %v7419_v63, %v3609_v1  ;;  %v3623_v45 = vadd.f32 %v7419_v63, %v3611_v39  ;;  %3848 = vmatpush.msra.mxu1 %v7161_v4  ;;  %3907 = vmatpush.msra.mxu3 %v7163_v24  ;;  %v7654_v4 = vld [vmem:[#allocation15_spill] sm:$0xff]  ;;  %v3613_v24 = vmul.f32 %v7404_v11, %v7655_v35  ;;  %v4783_v1 = vld [vmem:[#allocation9 + $0x1d0] sm:$0xff] }
 0x589   : > { %v7434_v25 = vsel %vm3607_vm3, %v4741_v34, %v3604_v40  ;;  %3878 = vmatpush.msra.mxu2 %v7451_v22  ;;  %v4797_v40 = vld [vmem:[#allocation9 + $0x160] sm:$0xff] }
 0x58a   : > { %3709 = vmatmul.f32.vlgmr.msrb.gmra.mxu0 %v3621_v44  ;;  %3767 = vmatmul.f32.vlgmr.msrb.gmra.mxu2 %v3621_v44  ;;  %v3618_v41 = vmul.f32 %v7434_v25, %v7333_v13  ;;  %v3610_v29 = vmul.f32 %v7434_v25, %v7278_v7  ;;  %v7455_v13 = vld [vmem:[#allocation9 + $0x30] sm:$0xff]  ;;  %v7462_v7 = vld [vmem:[#allocation9 + $0x38] sm:$0xff]  ;;  %v3612_v48 = vmul.f32 %v7434_v25, %v7295_v3 }
 0x58b   : > { %3821 = vmatpush.msra.mxu0 %v7455_v13  ;;  %3879 = vmatpush.msra.mxu2 %v7462_v7  ;;  %v7656_v3 = vld [vmem:[#allocation16_spill] sm:$0xff]  ;;  %v3625_v10 = vadd.f32 %v7419_v63, %v3613_v24  ;;  %v3614_v34 = vmul.f32 %v7434_v25, %v7660_v58 }
 0x58c   : > { %v7448_v53 = vsub.f32 0.001, %v3618_v41  ;;  %3849 = vmatpush.msra.mxu1 %v7653_v37  ;;  %3908 = vmatpush.msra.mxu3 %v7654_v4  ;;  %v4799_v44 = vld [vmem:[#allocation9 + $0x150] sm:$0xff] }
 0x58d   : > { %3822 = vmatpush.msra.mxu0 %v7467_v31  ;;  %3880 = vmatpush.msra.mxu2 %v7471_v60  ;;  %v4803_v41 = vld [vmem:[#allocation9 + $0x130] sm:$0xff] }
 0x58e   : > { %v3622_v9 = vadd.f32 %v7448_v53, %v3610_v29  ;;  %v3624_v2 = vadd.f32 %v7448_v53, %v3612_v48  ;;  %3850 = vmatpush.msra.mxu1 %v7656_v3  ;;  %3909 = vmatpush.msra.mxu3 %v7657_v54  ;;  %v3626_v27 = vadd.f32 %v7448_v53, %v3614_v34  ;;  %v4805_v29 = vld [vmem:[#allocation9 + $0x120] sm:$0xff] }
 0x58f   : > { %3823 = vmatpush.msra.mxu0 %v7477_v52  ;;  %3881 = vmatpush.msra.mxu2 %v7481_v42 }
 0x590   : > { %3738 = vmatmul.f32.vlgmr.msrb.gmra.mxu1 %v3622_v9  ;;  %3796 = vmatmul.f32.vlgmr.msrb.gmra.mxu3 %v3622_v9  ;;  %v4809_v9 = vld [vmem:[#allocation9 + $0x100] sm:$0xff] }
 0x591   : > { %3824 = vmatpush.msra.mxu0 %v7488_v55  ;;  %3882 = vmatpush.msra.mxu2 %v7492_v56 }
 0x592   : > { %3712 = vmatmul.f32.gmra.mxu0 %v3623_v45  ;;  %3770 = vmatmul.f32.gmra.mxu2 %v3623_v45 }
 0x593   : > { %3851 = vmatpush.msra.mxu1 %v7658_v19  ;;  %3933 = vmatpush.msrb.mxu0 %v7340_v14  ;;  %v7663_v14 = vld [vmem:[#allocation24_spill] sm:$0xff] }
 0x594   : > { %3991 = vmatpush.msrb.mxu2 %v7343_v8  ;;  %3910 = vmatpush.msra.mxu3 %v7659_v49  ;;  %v3615_v5 = vmul.f32 %v7404_v11, %v7663_v14  ;;  %v4778_v8 = vld [vmem:[#allocation9 + $0x1f8] sm:$0xff]  ;;  %v4780_v11 = vld [vmem:[#allocation9 + $0x1e8] sm:$0xff] }
 0x595   : > { %3852 = vmatpush.msra.mxu1 %v7661_v32  ;;  %3934 = vmatpush.msrb.mxu0 %v7346_v0 }
 0x596   : > { %3992 = vmatpush.msrb.mxu2 %v7351_v23  ;;  %3911 = vmatpush.msra.mxu3 %v7662_v50  ;;  %v3627_v0 = vadd.f32 %v7419_v63, %v3615_v5  ;;  %v4779_v23 = vld [vmem:[#allocation9 + $0x1f0] sm:$0xff] }
 0x597   : > { %3853 = vmatpush.msra.mxu1 %v7664_v21  ;;  %3935 = vmatpush.msrb.mxu0 %v7354_v57  ;;  %v3616_v57 = vmul.f32 %v7434_v25, %v7665_v26  ;;  %v4787_v63 = vld [vmem:[#allocation9 + $0x1b0] sm:$0xff]  ;;  %v4801_v25 = vld [vmem:[#allocation9 + $0x140] sm:$0xff] }
 0x598   : > { %3741 = vmatmul.f32.gmra.mxu1 %v3624_v2  ;;  %3799 = vmatmul.f32.gmra.mxu3 %v3624_v2 }
 0x599   : > { %3993 = vmatpush.msrb.mxu2 %v7358_v46  ;;  %4020 = vmatpush.msrb.mxu3 %v4778_v8  ;;  %v4781_v46 = vld [vmem:[#allocation9 + $0x1e0] sm:$0xff] }
 0x59a   : > { %3715 = vmatmul.f32.gmra.mxu0 %v3625_v10  ;;  %3773 = vmatmul.f32.gmra.mxu2 %v3625_v10 }
 0x59b   : > { %3936 = vmatpush.msrb.mxu0 %v7363_v38  ;;  %3962 = vmatpush.msrb.mxu1 %v4779_v23  ;;  %v3628_v38 = vadd.f32 %v7448_v53, %v3616_v57  ;;  %v4806_v53 = vld [vmem:[#allocation9 + $0x118] sm:$0xff] }
 0x59c   : > { %3994 = vmatpush.msrb.mxu2 %v7367_v43  ;;  %4021 = vmatpush.msrb.mxu3 %v4780_v11  ;;  %v4784_v43 = vld [vmem:[#allocation9 + $0x1c8] sm:$0xff] }
 0x59d   : > { %3937 = vmatpush.msrb.mxu0 %v7371_v6  ;;  %3963 = vmatpush.msrb.mxu1 %v4781_v46  ;;  %v4785_v6 = vld [vmem:[#allocation9 + $0x1c0] sm:$0xff] }
 0x59e   : > { %3995 = vmatpush.msrb.mxu2 %v7375_v61  ;;  %4022 = vmatpush.msrb.mxu3 %v4782_v59  ;;  %v4786_v61 = vld [vmem:[#allocation9 + $0x1b8] sm:$0xff] }
 0x59f   : > { %3938 = vmatpush.msrb.mxu0 %v7379_v12  ;;  %3964 = vmatpush.msrb.mxu1 %v4783_v1  ;;  %v4788_v12 = vld [vmem:[#allocation9 + $0x1a8] sm:$0xff] }
 0x5a0   : > { %3744 = vmatmul.f32.gmra.mxu1 %v3626_v27  ;;  %3802 = vmatmul.f32.gmra.mxu3 %v3626_v27 }
 0x5a1   : > { %3996 = vmatpush.msrb.mxu2 %v7383_v28  ;;  %4023 = vmatpush.msrb.mxu3 %v4784_v43  ;;  %v4789_v28 = vld [vmem:[#allocation9 + $0x1a0] sm:$0xff] }
 0x5a2   : > { %3718 = vmatmul.f32.gmra.mxu0 %v3627_v0  ;;  %3776 = vmatmul.f32.gmra.mxu2 %v3627_v0 }
 0x5a3   : > { %3939 = vmatpush.msrb.mxu0 %v7388_v47  ;;  %3965 = vmatpush.msrb.mxu1 %v4785_v6  ;;  %v4790_v47 = vld [vmem:[#allocation9 + $0x198] sm:$0xff] }
 0x5a4   : > { %3997 = vmatpush.msrb.mxu2 %v7392_v16  ;;  %4024 = vmatpush.msrb.mxu3 %v4786_v61  ;;  %v4791_v16 = vld [vmem:[#allocation9 + $0x190] sm:$0xff] }
 0x5a5   : > { %3940 = vmatpush.msrb.mxu0 %v7397_v17  ;;  %3966 = vmatpush.msrb.mxu1 %v4787_v63  ;;  %v4792_v17 = vld [vmem:[#allocation9 + $0x188] sm:$0xff] }
 0x5a6   : > { %3998 = vmatpush.msrb.mxu2 %v7401_v30  ;;  %4025 = vmatpush.msrb.mxu3 %v4788_v12  ;;  %v4793_v30 = vld [vmem:[#allocation9 + $0x180] sm:$0xff] }
 0x5a7   : > { %3941 = vmatpush.msrb.mxu0 %v7407_v33  ;;  %3967 = vmatpush.msrb.mxu1 %v4789_v28  ;;  %v4794_v33 = vld [vmem:[#allocation9 + $0x178] sm:$0xff] }
 0x5a8   : > { %3747 = vmatmul.f32.gmra.mxu1 %v3628_v38  ;;  %3805 = vmatmul.f32.gmra.mxu3 %v3628_v38 }
 0x5a9   : > { %3999 = vmatpush.msrb.mxu2 %v7413_v15  ;;  %4026 = vmatpush.msrb.mxu3 %v4790_v47  ;;  %v4795_v15 = vld [vmem:[#allocation9 + $0x170] sm:$0xff] }
 0x5aa   : > { %3942 = vmatpush.msrb.mxu0 %v7421_v36  ;;  %3968 = vmatpush.msrb.mxu1 %v4791_v16  ;;  %v4796_v36 = vld [vmem:[#allocation9 + $0x168] sm:$0xff] }
 0x5ab   : > { %4000 = vmatpush.msrb.mxu2 %v7426_v20  ;;  %4027 = vmatpush.msrb.mxu3 %v4792_v17  ;;  %v4798_v20 = vld [vmem:[#allocation9 + $0x158] sm:$0xff] }
 0x5ac   : > { %3943 = vmatpush.msrb.mxu0 %v7431_v62  ;;  %3969 = vmatpush.msrb.mxu1 %v4793_v30  ;;  %v4800_v62 = vld [vmem:[#allocation9 + $0x148] sm:$0xff] }
 0x5ad   : > { %4001 = vmatpush.msrb.mxu2 %v7437_v51  ;;  %4028 = vmatpush.msrb.mxu3 %v4794_v33  ;;  %v4802_v51 = vld [vmem:[#allocation9 + $0x138] sm:$0xff] }
 0x5ae   : > { %3944 = vmatpush.msrb.mxu0 %v7443_v18  ;;  %3970 = vmatpush.msrb.mxu1 %v4795_v15  ;;  %v4804_v18 = vld [vmem:[#allocation9 + $0x128] sm:$0xff] }
 0x5af   : > { %4002 = vmatpush.msrb.mxu2 %v7451_v22  ;;  %4029 = vmatpush.msrb.mxu3 %v4796_v36  ;;  %v4807_v22 = vld [vmem:[#allocation9 + $0x110] sm:$0xff] }
 0x5b0   : > { %3945 = vmatpush.msrb.mxu0 %v7455_v13  ;;  %3971 = vmatpush.msrb.mxu1 %v4797_v40  ;;  %v4808_v13 = vld [vmem:[#allocation9 + $0x108] sm:$0xff] }
 0x5b1   : > { %4003 = vmatpush.msrb.mxu2 %v7462_v7  ;;  %4030 = vmatpush.msrb.mxu3 %v4798_v20 }
 0x5b2   : > { %3946 = vmatpush.msrb.mxu0 %v7467_v31  ;;  %3972 = vmatpush.msrb.mxu1 %v4799_v44 }
 0x5b3   : > { %4004 = vmatpush.msrb.mxu2 %v7471_v60  ;;  %4031 = vmatpush.msrb.mxu3 %v4800_v62 }
 0x5b4   : > { %3947 = vmatpush.msrb.mxu0 %v7477_v52  ;;  %3973 = vmatpush.msrb.mxu1 %v4801_v25 }
 0x5b5   : > { %4005 = vmatpush.msrb.mxu2 %v7481_v42  ;;  %4032 = vmatpush.msrb.mxu3 %v4802_v51 }
 0x5b6   : > { %3948 = vmatpush.msrb.mxu0 %v7488_v55  ;;  %3974 = vmatpush.msrb.mxu1 %v4803_v41 }
 0x5b7   : > { %4006 = vmatpush.msrb.mxu2 %v7492_v56  ;;  %4033 = vmatpush.msrb.mxu3 %v4804_v18 }
 0x5b8   : > { %3975 = vmatpush.msrb.mxu1 %v4805_v29 }
 0x5b9   : > { %4034 = vmatpush.msrb.mxu3 %v4806_v53 }
 0x5ba   : > { %3976 = vmatpush.msrb.mxu1 %v4807_v22 }
 0x5bb   : > { %4035 = vmatpush.msrb.mxu3 %v4808_v13 }
 0x5bc   : > { %3977 = vmatpush.msrb.mxu1 %v4809_v9 }
 0x607   : > { %v3710_v39 = vpop.f32.mrf.mxu0 }
 0x60d   : > { %v3739_v7 = vpop.f32.mrf.mxu1  ;;  %v3768_v45 = vpop.f32.mrf.mxu2 }
 0x60e   : > { %v7543_v31 = vadd.f32 %v3739_v7, %v3710_v39 }
 0x60f   : > { %v3713_v60 = vpop.f32.mrf.mxu0 }
 0x610   : > { %3825 = vmatmul.f32.vlgmr.msra.gmra.mxu0 %v7543_v31  ;;  %3883 = vmatmul.f32.vlgmr.msra.gmra.mxu2 %v7543_v31  ;;  %v3925_v27 = vmul.f32 %v7543_v31, %v7543_v31 }
 0x613   : > { %v3797_v48 = vpop.f32.mrf.mxu3 }
 0x614   : > { %v7547_v52 = vadd.f32 %v3797_v48, %v3768_v45 }
 0x615   : > { %v3742_v37 = vpop.f32.mrf.mxu1  ;;  %v3771_v4 = vpop.f32.mrf.mxu2 }
 0x616   : > { %v7549_v42 = vadd.f32 %v3742_v37, %v3713_v60  ;;  %3854 = vmatmul.f32.vlgmr.msra.gmra.mxu1 %v7547_v52  ;;  %3912 = vmatmul.f32.vlgmr.msra.gmra.mxu3 %v7547_v52  ;;  %v3926_v14 = vmul.f32 %v7547_v52, %v7547_v52 }
 0x617   : > { %v3716_v2 = vpop.f32.mrf.mxu0 }
 0x618   : > { %3828 = vmatmul.f32.gmra.mxu0 %v7549_v42  ;;  %3886 = vmatmul.f32.gmra.mxu2 %v7549_v42  ;;  %v3927_v5 = vmul.f32 %v7549_v42, %v7549_v42 }
 0x61b   : > { %v3800_v35 = vpop.f32.mrf.mxu3 }
 0x61c   : > { %v7555_v24 = vadd.f32 %v3800_v35, %v3771_v4 }
 0x61d   : > { %v3745_v55 = vpop.f32.mrf.mxu1  ;;  %v3774_v56 = vpop.f32.mrf.mxu2 }
 0x61e   : > { %v7557_v3 = vadd.f32 %v3745_v55, %v3716_v2  ;;  %3857 = vmatmul.f32.gmra.mxu1 %v7555_v24  ;;  %3915 = vmatmul.f32.gmra.mxu3 %v7555_v24  ;;  %v3928_v21 = vmul.f32 %v7555_v24, %v7555_v24 }
 0x61f   : > { %v3719_v19 = vpop.f32.mrf.mxu0 }
 0x620   : > { %3831 = vmatmul.f32.gmra.mxu0 %v7557_v3  ;;  %3889 = vmatmul.f32.gmra.mxu2 %v7557_v3  ;;  %v3929_v8 = vmul.f32 %v7557_v3, %v7557_v3 }
 0x623   : > { %v3803_v54 = vpop.f32.mrf.mxu3 }
 0x624   : > { %v7563_v10 = vadd.f32 %v3803_v54, %v3774_v56 }
 0x625   : > { %v3748_v49 = vpop.f32.mrf.mxu1  ;;  %v3777_v34 = vpop.f32.mrf.mxu2 }
 0x626   : > { %v7565_v58 = vadd.f32 %v3748_v49, %v3719_v19  ;;  %3860 = vmatmul.f32.gmra.mxu1 %v7563_v10  ;;  %3918 = vmatmul.f32.gmra.mxu3 %v7563_v10  ;;  %v3930_v0 = vmul.f32 %v7563_v10, %v7563_v10 }
 0x628   : > { %3834 = vmatmul.f32.gmra.mxu0 %v7565_v58  ;;  %3892 = vmatmul.f32.gmra.mxu2 %v7565_v58  ;;  %v3931_v23 = vmul.f32 %v7565_v58, %v7565_v58 }
 0x62b   : > { %v3806_v32 = vpop.f32.mrf.mxu3 }
 0x62c   : > { %v7571_v50 = vadd.f32 %v3806_v32, %v3777_v34 }
 0x62e   : > { %3863 = vmatmul.f32.gmra.mxu1 %v7571_v50  ;;  %3921 = vmatmul.f32.gmra.mxu3 %v7571_v50  ;;  %v3932_v11 = vmul.f32 %v7571_v50, %v7571_v50 }
 0x630   : > { %3949 = vmatmul.f32.vlgmr.msrb.gmra.mxu0 %v3925_v27  ;;  %4007 = vmatmul.f32.vlgmr.msrb.gmra.mxu2 %v3925_v27 }
 0x636   : > { %3978 = vmatmul.f32.vlgmr.msrb.gmra.mxu1 %v3926_v14  ;;  %4036 = vmatmul.f32.vlgmr.msrb.gmra.mxu3 %v3926_v14 }
 0x638   : > { %3952 = vmatmul.f32.gmra.mxu0 %v3927_v5  ;;  %4010 = vmatmul.f32.gmra.mxu2 %v3927_v5 }
 0x63e   : > { %3981 = vmatmul.f32.gmra.mxu1 %v3928_v21  ;;  %4039 = vmatmul.f32.gmra.mxu3 %v3928_v21 }
 0x640   : > { %3955 = vmatmul.f32.gmra.mxu0 %v3929_v8  ;;  %4013 = vmatmul.f32.gmra.mxu2 %v3929_v8 }
 0x646   : > { %3984 = vmatmul.f32.gmra.mxu1 %v3930_v0  ;;  %4042 = vmatmul.f32.gmra.mxu3 %v3930_v0 }
 0x648   : > { %3958 = vmatmul.f32.gmra.mxu0 %v3931_v23  ;;  %4016 = vmatmul.f32.gmra.mxu2 %v3931_v23 }
 0x64e   : > { %3987 = vmatmul.f32.gmra.mxu1 %v3932_v11  ;;  %4045 = vmatmul.f32.gmra.mxu3 %v3932_v11 }
 0x68d   : > { %v3826_v26 = vpop.f32.mrf.mxu0 }
 0x693   : > { %v3855_v57 = vpop.f32.mrf.mxu1  ;;  %v3884_v46 = vpop.f32.mrf.mxu2 }
 0x694   : > { %v3856_v20 = vadd.f32 %v3855_v57, %v3826_v26 }
 0x695   : > { %v3829_v59 = vpop.f32.mrf.mxu0 }
 0x699   : > { %v3913_v38 = vpop.f32.mrf.mxu3 }
 0x69a   : > { %v3914_v22 = vadd.f32 %v3913_v38, %v3884_v46 }
 0x69b   : > { %v3858_v1 = vpop.f32.mrf.mxu1  ;;  %v3887_v43 = vpop.f32.mrf.mxu2 }
 0x69c   : > { %v3859_v40 = vadd.f32 %v3858_v1, %v3829_v59 }
 0x69d   : > { %v3832_v6 = vpop.f32.mrf.mxu0 }
 0x69e   : > { %v4049_v25 = vadd.f32 %v3859_v40, %v3856_v20 }
 0x6a1   : > { %v3916_v61 = vpop.f32.mrf.mxu3 }
 0x6a2   : > { %v3917_v18 = vadd.f32 %v3916_v61, %v3887_v43 }
 0x6a3   : > { %v3861_v63 = vpop.f32.mrf.mxu1  ;;  %v3890_v12 = vpop.f32.mrf.mxu2 }
 0x6a4   : > { %v3862_v44 = vadd.f32 %v3861_v63, %v3832_v6  ;;  %v4058_v7 = vadd.f32 %v3917_v18, %v3914_v22 }
 0x6a5   : > { %v3835_v28 = vpop.f32.mrf.mxu0 }
 0x6a6   : > { %v4050_v29 = vadd.f32 %v4049_v25, %v3862_v44 }
 0x6a9   : > { %v3919_v47 = vpop.f32.mrf.mxu3 }
 0x6aa   : > { %v3920_v13 = vadd.f32 %v3919_v47, %v3890_v12 }
 0x6ab   : > { %v3864_v16 = vpop.f32.mrf.mxu1  ;;  %v3893_v17 = vpop.f32.mrf.mxu2 }
 0x6ac   : > { %v3865_v51 = vadd.f32 %v3864_v16, %v3835_v28  ;;  %v4059_v60 = vadd.f32 %v4058_v7, %v3920_v13 }
 0x6ad   : > { %v3950_v30 = vpop.f32.mrf.mxu0 }
 0x6ae   : > { %v4051_v9 = vadd.f32 %v4050_v29, %v3865_v51 }
 0x6b0   : > { %v4052_v48 = vrot.slane %v4051_v9, 4 }
 0x6b1   : > { %v3922_v33 = vpop.f32.mrf.mxu3 }
 0x6b2   : > { %v3923_v45 = vadd.f32 %v3922_v33, %v3893_v17  ;;  %v4053_v55 = vadd.f32 %v4052_v48, %v4051_v9 }
 0x6b3   : > { %v3979_v15 = vpop.f32.mrf.mxu1  ;;  %v4008_v36 = vpop.f32.mrf.mxu2 }
 0x6b4   : > { %v4060_v2 = vadd.f32 %v4059_v60, %v3923_v45  ;;  %v4054_v49 = vrot.slane %v4053_v55, 2  ;;  %v3980_v34 = vadd.f32 %v3979_v15, %v3950_v30 }
 0x6b5   : > { %v3953_v62 = vpop.f32.mrf.mxu0 }
 0x6b6   : > { %v4061_v56 = vrot.slane %v4060_v2, 4  ;;  %v4055_v0 = vadd.f32 %v4054_v49, %v4053_v55 }
 0x6b8   : > { %v4062_v14 = vadd.f32 %v4061_v56, %v4060_v2  ;;  %v4056_v1 = vrot.slane %v4055_v0, 1 }
 0x6b9   : > { %v4037_v41 = vpop.f32.mrf.mxu3 }
 0x6ba   : > { %v4063_v57 = vrot.slane %v4062_v14, 2  ;;  %v4038_v46 = vadd.f32 %v4037_v41, %v4008_v36  ;;  %v4057_v17 = vadd.f32 %v4056_v1, %v4055_v0 }
 0x6bb   : > { %v3982_v53 = vpop.f32.mrf.mxu1  ;;  %v4011_v39 = vpop.f32.mrf.mxu2 }
 0x6bc   : > { %v3983_v54 = vadd.f32 %v3982_v53, %v3953_v62  ;;  %v4064_v12 = vadd.f32 %v4063_v57, %v4062_v14  ;;  %v4067_v44 = vmul.f32 0.001953125, %v4057_v17 }
 0x6bd   : > { %v3956_v37 = vpop.f32.mrf.mxu0 }
 0x6be   : > { %v4069_v5 = vadd.f32 %v3983_v54, %v3980_v34  ;;  %v4065_v15 = vrot.slane %v4064_v12, 1  ;;  %v4089_v18 = vmul.f32 %v4067_v44, %v4067_v44 }
 0x6c0   : > { %v4066_v25 = vadd.f32 %v4065_v15, %v4064_v12 }
 0x6c1   : > { %v4040_v4 = vpop.f32.mrf.mxu3 }
 0x6c2   : > { %v4041_v23 = vadd.f32 %v4040_v4, %v4011_v39  ;;  %v4068_v22 = vmul.f32 0.001953125, %v4066_v25 }
 0x6c3   : > { %v3985_v35 = vpop.f32.mrf.mxu1  ;;  %v4014_v19 = vpop.f32.mrf.mxu2 }
 0x6c4   : > { %v3986_v32 = vadd.f32 %v3985_v35, %v3956_v37  ;;  %v4078_v43 = vadd.f32 %v4041_v23, %v4038_v46  ;;  %v4090_v45 = vmul.f32 %v4068_v22, %v4068_v22 }
 0x6c5   : > { %v3959_v21 = vpop.f32.mrf.mxu0 }
 0x6c6   : > { %v4070_v11 = vadd.f32 %v4069_v5, %v3986_v32 }
 0x6c9   : > { %v4043_v27 = vpop.f32.mrf.mxu3 }
 0x6ca   : > { %v4044_v59 = vadd.f32 %v4043_v27, %v4014_v19 }
 0x6cb   : > { %v3988_v8 = vpop.f32.mrf.mxu1  ;;  %v4017_v61 = vpop.f32.mrf.mxu2 }
 0x6cc   : > { %v3989_v26 = vadd.f32 %v3988_v8, %v3959_v21  ;;  %v4079_v28 = vadd.f32 %v4078_v43, %v4044_v59 }
 0x6ce   : > { %v4071_v38 = vadd.f32 %v4070_v11, %v3989_v26 }
 0x6d0   : > { %v4072_v6 = vrot.slane %v4071_v38, 4 }
 0x6d1   : > { %v4046_v63 = vpop.f32.mrf.mxu3 }
 0x6d2   : > { %v4073_v47 = vadd.f32 %v4072_v6, %v4071_v38  ;;  %v4047_v16 = vadd.f32 %v4046_v63, %v4017_v61 }
 0x6d4   : > { %v4074_v30 = vrot.slane %v4073_v47, 2  ;;  %v4080_v33 = vadd.f32 %v4079_v28, %v4047_v16 }
 0x6d6   : > { %v4075_v40 = vadd.f32 %v4074_v30, %v4073_v47  ;;  %v4081_v20 = vrot.slane %v4080_v33, 4 }
 0x6d8   : > { %v4076_v62 = vrot.slane %v4075_v40, 1  ;;  %v4082_v36 = vadd.f32 %v4081_v20, %v4080_v33 }
 0x6da   : > { %v4077_v51 = vadd.f32 %v4076_v62, %v4075_v40  ;;  %v4083_v41 = vrot.slane %v4082_v36, 2 }
 0x6dc   : > { %v4087_v29 = vmul.f32 0.001953125, %v4077_v51  ;;  %v4084_v53 = vadd.f32 %v4083_v41, %v4082_v36 }
 0x6de   : > { %v4091_v13 = vsub.f32 %v4087_v29, %v4089_v18  ;;  %v4085_v9 = vrot.slane %v4084_v53, 1 }
 0x6e0   : > { %v4093_v39 = vadd.f32 1e-05, %v4091_v13  ;;  %v4086_v7 = vadd.f32 %v4085_v9, %v4084_v53 }
 0x6e2   : > { %4742 = vrsqrt.f32 %v4093_v39  ;;  %v4088_v60 = vmul.f32 0.001953125, %v4086_v7  ;;  %vm4101_vm5 = vweird.f32 %v4093_v39 }
 0x6e4   : > { %v4092_v48 = vsub.f32 %v4088_v60, %v4090_v45 }
 0x6e6   : > { %v4094_v37 = vadd.f32 1e-05, %v4092_v48 }
 0x6e8   : > { %v4743_v4 = vpop.eup %4742  ;;  %4744 = vrsqrt.f32 %v4094_v37  ;;  %vm4111_vm8 = vweird.f32 %v4094_v37 }
 0x6e9   : > { %v4096_v2 = vmul.f32 %v4743_v4, %v4093_v39  ;;  %vm4102_vm4 = vweird.f32 %v4743_v4 }
 0x6ea   : > { %vm4103_vm6 = vmor %vm4101_vm5, %vm4102_vm4 }
 0x6eb   : > { %v4097_v35 = vmul.f32 %v4743_v4, %v4096_v2 }
 0x6ed   : > { %v4098_v55 = vmul.f32 0.5, %v4097_v35 }
 0x6ee   : > { %v4745_v56 = vpop.eup %4744 }
 0x6ef   : > { %v4099_v54 = vsub.f32 1.5, %v4098_v55  ;;  %v4106_v19 = vmul.f32 %v4745_v56, %v4094_v37  ;;  %vm4112_vm7 = vweird.f32 %v4745_v56 }
 0x6f0   : > { %vm4113_vm9 = vmor %vm4111_vm8, %vm4112_vm7 }
 0x6f1   : > { %v4100_v49 = vmul.f32 %v4743_v4, %v4099_v54  ;;  %v4107_v34 = vmul.f32 %v4745_v56, %v4106_v19 }
 0x6f3   : > { %v4104_v32 = vsel %vm4103_vm6, %v4743_v4, %v4100_v49  ;;  %v4108_v27 = vmul.f32 0.5, %v4107_v34 }
 0x6f4   : > { %v4123_v14 = vmul.f32 %v4104_v32, %v4067_v44  ;;  %v4115_v21 = vmul.f32 %v4104_v32, %v7543_v31  ;;  %v4117_v8 = vmul.f32 %v4104_v32, %v7549_v42  ;;  %v4119_v0 = vmul.f32 %v4104_v32, %v7557_v3 }
 0x6f5   : > { %v4109_v5 = vsub.f32 1.5, %v4108_v27  ;;  %v4121_v26 = vmul.f32 %v4104_v32, %v7565_v58 }
 0x6f6   : > { %v4125_v23 = vsub.f32 0.001, %v4123_v14 }
 0x6f7   : > { %v4110_v11 = vmul.f32 %v4745_v56, %v4109_v5 }
 0x6f8   : > { %v4127_v57 = vadd.f32 %v4125_v23, %v4115_v21  ;;  %v4129_v46 = vadd.f32 %v4125_v23, %v4117_v8  ;;  %v4131_v59 = vadd.f32 %v4125_v23, %v4119_v0  ;;  %v4133_v31 = vadd.f32 %v4125_v23, %v4121_v26 }
 0x6f9   : > { %v4114_v38 = vsel %vm4113_vm9, %v4745_v56, %v4110_v11 }
 0x6fa   : > { %4135 = vst [vmem:[%s314_s13] sm:$0xff] %v4127_v57  ;;  %v4124_v42 = vmul.f32 %v4114_v38, %v4068_v22  ;;  %v4116_v3 = vmul.f32 %v4114_v38, %v7547_v52  ;;  %v4118_v1 = vmul.f32 %v4114_v38, %v7555_v24  ;;  %v4120_v43 = vmul.f32 %v4114_v38, %v7563_v10 }
 0x6fb   : > { %4137 = vst [vmem:[%s314_s13 + $0x10] sm:$0xff] %v4129_v46  ;;  %v4122_v58 = vmul.f32 %v4114_v38, %v7571_v50 }
 0x6fc   : > { %4139 = vst [vmem:[%s314_s13 + $0x20] sm:$0xff] %v4131_v59  ;;  %v4126_v6 = vsub.f32 0.001, %v4124_v42 }
 0x6fd   : > { %4141 = vst [vmem:[%s314_s13 + $0x30] sm:$0xff] %v4133_v31 }
 0x6fe   : > { %v4128_v61 = vadd.f32 %v4126_v6, %v4116_v3  ;;  %v4130_v63 = vadd.f32 %v4126_v6, %v4118_v1  ;;  %v4132_v12 = vadd.f32 %v4126_v6, %v4120_v43  ;;  %v4134_v28 = vadd.f32 %v4126_v6, %v4122_v58 }
 0x700   : > { %4136 = vst [vmem:[%s314_s13 + $0x8] sm:$0xff] %v4128_v61 }
 0x701   : > { %4138 = vst [vmem:[%s314_s13 + $0x18] sm:$0xff] %v4130_v63 }
 0x702   : > { %4140 = vst [vmem:[%s314_s13 + $0x28] sm:$0xff] %v4132_v12 }
 0x703   : > { %4142 = vst [vmem:[%s314_s13 + $0x38] sm:$0xff] %v4134_v28 }
 0x704 PF: > { %s7666_s22 = smov %s5070_s18  ;;  %p17_p4 = scmp.ge.s32.totalorder %s5070_s18, 4  }
 0x705   : > { %s7667_s18 = smov %s4964_s19  ;;  %s7668_s19 = smov %s4968_s20 }
 0x706   : > { %s7669_s20 = smov %s5085_s26  ;;  %s7670_s21 = smov %s7666_s22 }
 0x707   :  { %19 = sbr.rel (!%p17_p4) target bundleno = 5 (0x5), region = 99 }
 0x70c   :  { %4164 = vsyncpa [#allocation5], 1 }
 0x70d   :  { %4166 = vsyncpa [#allocation5 + $0x1], 1 }
 0x70e   :  { %4167 = vsyncpa [#allocation7], 1 }
 0x70f   :  { %4168 = vsyncpa [#allocation10], 1 }

</bundles_post_ra>
